<compile_context>
chip_gen: v7x
topology: tpu7x:2x2x1
jax: 0.10.0
libtpu: 0.0.40
codegen_flags: <defaults>
</compile_context>

<pallas_src>
import functools
import math

import jax
import jax.numpy as jnp
from jax.experimental import pallas as pl
from jax.experimental.pallas import tpu as pltpu

D_PE = 32          # GPO(32, 32) in the reference module
D_HIDDEN = 32
L2_EPS = 1e-8
NEG_FILL = -10000.0
POOL_TEMP = 0.1


def _round_up(a, m):
    return ((a + m - 1) // m) * m


def _sigmoid(x):
    return 1.0 / (1.0 + jnp.exp(-x))


# ---------------------------------------------------------------------------
# Kernel 1: fc linear  y = where(mask, x @ W + b, -10000)
# (tiled, pipelined, f32 accumulator, bias + pre-sort mask fused into epilogue)
# ---------------------------------------------------------------------------
def _fc_mask_kernel(x_ref, w_ref, b_ref, m_ref, o_ref, acc_ref):
    k = pl.program_id(2)

    @pl.when(k == 0)
    def _init():
        acc_ref[...] = jnp.zeros_like(acc_ref)

    # activations: single f32 HBM pass, cast in-kernel; weights pre-cast bf16 once.
    acc_ref[...] += jnp.dot(x_ref[...].astype(jnp.bfloat16), w_ref[...],
                            preferred_element_type=jnp.float32)

    @pl.when(k == pl.num_programs(2) - 1)
    def _finalize():
        y = acc_ref[...] + b_ref[...]
        # fused pre-sort mask fill: padded regions -> -10000, consumed directly by sort
        o_ref[...] = jnp.where(m_ref[...] > 0.5, y, NEG_FILL)


def fc_linear_masked(x, w_bf16, b, mask_col, *, tm=512, tn=512, tk=512):
    """x: (M,K) f32, w_bf16: (K,N) bf16 (pre-transposed / pre-cast once),
    b: (1,N) f32, mask_col: (M,1) f32 -> (M,N) f32 masked features."""
    M, K = x.shape
    _, N = w_bf16.shape
    tm = min(tm, _round_up(M, 8))
    tn = min(tn, _round_up(N, 128))
    tk = min(tk, _round_up(K, 128))
    Mp, Kp, Np = _round_up(M, tm), _round_up(K, tk), _round_up(N, tn)
    # pads are no-ops for already-aligned problem sizes
    if (Mp, Kp) != (M, K):
        x = jnp.pad(x, ((0, Mp - M), (0, Kp - K)))
    if (Kp, Np) != w_bf16.shape:
        w_bf16 = jnp.pad(w_bf16, ((0, Kp - K), (0, Np - N)))
    if Np != N:
        b = jnp.pad(b, ((0, 0), (0, Np - N)))
    if Mp != M:
        mask_col = jnp.pad(mask_col, ((0, Mp - M), (0, 0)))

    out = pl.pallas_call(
        _fc_mask_kernel,
        out_shape=jax.ShapeDtypeStruct((Mp, Np), jnp.float32),
        grid_spec=pltpu.PrefetchScalarGridSpec(
            num_scalar_prefetch=0,
            grid=(Mp // tm, Np // tn, Kp // tk),
            in_specs=[
                pl.BlockSpec((tm, tk), lambda i, j, k: (i, k)),
                pl.BlockSpec((tk, tn), lambda i, j, k: (k, j)),
                pl.BlockSpec((1, tn), lambda i, j, k: (0, j)),
                pl.BlockSpec((tm, 1), lambda i, j, k: (i, 0)),
            ],
            out_specs=pl.BlockSpec((tm, tn), lambda i, j, k: (i, j)),
            scratch_shapes=[pltpu.VMEM((tm, tn), jnp.float32)],
        ),
        compiler_params=pltpu.CompilerParams(
            dimension_semantics=("parallel", "parallel", "arbitrary"),
            # working set for 512-tiles ~6 MiB double-buffered; 32 MiB is safe on v7x too
            vmem_limit_bytes=32 * 1024 * 1024,
        ),
    )(x, w_bf16, b, mask_col)
    return out[:M, :N]


# ---------------------------------------------------------------------------
# Kernel 2 (fully fused GPO weights): bidirectional GRU over the positional
# encoding + pooling-score projection + mask fill + temperature softmax.
# ---------------------------------------------------------------------------
def _gpo_weights_kernel(pe_ref, wih_f_ref, whh_f_ref, bih_f_ref, bhh_f_ref,
                        wih_b_ref, whh_b_ref, bih_b_ref, bhh_b_ref,
                        pool_w_ref, maskf_ref, out_ref):
    Bp, T = maskf_ref.shape
    H = whh_f_ref.shape[0]
    G = 3 * H

    pe = pe_ref[...]                                                     # (T, D_PE)
    # Input projections hoisted out of the serial recurrence: one gate-stacked
    # matmul per direction, input biases folded in.
    gi_f = jnp.dot(pe, wih_f_ref[...], preferred_element_type=jnp.float32) + bih_f_ref[...]
    gi_b = jnp.dot(pe, wih_b_ref[...], preferred_element_type=jnp.float32) + bih_b_ref[...]

    whh_f = whh_f_ref[...]                                               # (H, 3H)
    whh_b = whh_b_ref[...]
    # pre-broadcast loop-invariant operands once (JAX does not CSE broadcast_in_dim)
    bhh_f = jnp.broadcast_to(bhh_f_ref[...], (Bp, G))
    bhh_b = jnp.broadcast_to(bhh_b_ref[...], (Bp, G))
    pw = jnp.broadcast_to(pool_w_ref[...], (Bp, H))
    maskf = maskf_ref[...]                                               # (Bp, T)
    col = jax.lax.broadcasted_iota(jnp.int32, (1, T), 1)

    def cell(gi_row, h, whh, bhh):
        # single lane-stacked [r|z|n] recurrent matmul per step
        gh = jnp.dot(h, whh, preferred_element_type=jnp.float32) + bhh   # (Bp, 3H)
        r = _sigmoid(gi_row[:, 0:H] + gh[:, 0:H])
        z = _sigmoid(gi_row[:, H:2 * H] + gh[:, H:2 * H])
        n = jnp.tanh(gi_row[:, 2 * H:G] + r * gh[:, 2 * H:G])
        return (1.0 - z) * n + z * h

    h_f = jnp.zeros((Bp, H), jnp.float32)
    h_b = jnp.zeros((Bp, H), jnp.float32)
    scores = jnp.zeros((Bp, T), jnp.float32)

    # Fully unrolled time loop; fwd (t ascending) and bwd (t descending) recurrences
    # are independent, so their MXU / EUP work can be overlapped by the scheduler.
    for i in range(T):
        tb = T - 1 - i
        # forward direction (shared positional-encoding input; masked later)
        h_f = cell(gi_f[i:i + 1, :], h_f, whh_f, bhh_f)
        s_f = jnp.sum(h_f * pw, axis=1, keepdims=True)                   # (Bp, 1)
        # backward direction: mask-gated backward-in-time recurrence reproduces
        # pack_padded_sequence semantics (per-sample start at t = len-1), no gather.
        h_bn = cell(gi_b[tb:tb + 1, :], h_b, whh_b, bhh_b)
        h_b = h_bn * maskf[:, tb:tb + 1]
        s_b = jnp.sum(h_b * pw, axis=1, keepdims=True)
        scores = scores + jnp.where(col == i, s_f, 0.0) + jnp.where(col == tb, s_b, 0.0)

    scores = 0.5 * scores                                                # avg of the two halves
    scores = jnp.where(maskf > 0.5, scores, NEG_FILL)
    s = scores * (1.0 / POOL_TEMP)
    m = jnp.max(s, axis=1, keepdims=True)
    e = jnp.exp(s - m)
    out_ref[...] = e / jnp.sum(e, axis=1, keepdims=True)


def gpo_pool_weights(pe, prep, maskf):
    """pe: (T, D_PE), maskf: (Bp, T) -> softmax pool weights (Bp, T)."""
    Bp, T = maskf.shape
    return pl.pallas_call(
        _gpo_weights_kernel,
        out_shape=jax.ShapeDtypeStruct((Bp, T), jnp.float32),
    )(pe, prep["wih_f"], prep["whh_f"], prep["bih_f"], prep["bhh_f"],
      prep["wih_b"], prep["whh_b"], prep["bih_b"], prep["bhh_b"],
      prep["pool_w"], maskf)


# ---------------------------------------------------------------------------
# Kernel 3 (fused): weighted pooling over regions + l2 normalization,
# batched 8 samples per grid step (full-sublane, lane-dense stores).
# The post-sort mask is fused by pre-multiplying weights * mask (exact zeros).
# ---------------------------------------------------------------------------
def _pool_l2norm_kernel(feat_ref, w_ref, out_ref, *, eps):
    pooled = jnp.sum(feat_ref[...] * w_ref[...], axis=1)                 # (bb, E)
    norm = jnp.sqrt(jnp.sum(pooled * pooled, axis=-1, keepdims=True)) + eps
    out_ref[...] = pooled / norm


def pool_l2norm(sorted_feats, wm3, *, eps=L2_EPS, bb=8):
    Bp, T, E = sorted_feats.shape
    return pl.pallas_call(
        functools.partial(_pool_l2norm_kernel, eps=eps),
        out_shape=jax.ShapeDtypeStruct((Bp, E), jnp.float32),
        grid_spec=pltpu.PrefetchScalarGridSpec(
            num_scalar_prefetch=0,
            grid=(Bp // bb,),
            in_specs=[
                pl.BlockSpec((bb, T, E), lambda b: (b, 0, 0)),
                pl.BlockSpec((bb, T, 1), lambda b: (b, 0, 0)),
            ],
            out_specs=pl.BlockSpec((bb, E), lambda b: (b, 0)),
        ),
        compiler_params=pltpu.CompilerParams(dimension_semantics=("parallel",)),
    )(sorted_feats, wm3)


# ---------------------------------------------------------------------------
# Helpers: positional encoding, parameter init and one-time layout prep
# ---------------------------------------------------------------------------
def positional_encoding_1d(d_model, length):
    if d_model % 2 != 0:
        raise ValueError("d_model must be even")
    position = jnp.arange(length, dtype=jnp.float32)[:, None]
    div_term = jnp.exp(jnp.arange(0, d_model, 2, dtype=jnp.float32)
                       * -(math.log(10000.0) / d_model))
    pe = jnp.zeros((length, d_model), jnp.float32)
    pe = pe.at[:, 0::2].set(jnp.sin(position * div_term))
    pe = pe.at[:, 1::2].set(jnp.cos(position * div_term))
    return pe


def init_params(key, img_dim, embed_size, d_pe=D_PE, d_hidden=D_HIDDEN):
    ks = jax.random.split(key, 10)
    r = math.sqrt(6.0) / math.sqrt(img_dim + embed_size)   # Xavier (init_weights)
    s = 1.0 / math.sqrt(d_hidden)                          # PyTorch GRU/Linear default
    return dict(
        fc_w=jax.random.uniform(ks[0], (embed_size, img_dim), jnp.float32, -r, r),
        fc_b=jnp.zeros((embed_size,), jnp.float32),
        wih_f=jax.random.uniform(ks[1], (3 * d_hidden, d_pe), jnp.float32, -s, s),
        whh_f=jax.random.uniform(ks[2], (3 * d_hidden, d_hidden), jnp.float32, -s, s),
        bih_f=jax.random.uniform(ks[3], (3 * d_hidden,), jnp.float32, -s, s),
        bhh_f=jax.random.uniform(ks[4], (3 * d_hidden,), jnp.float32, -s, s),
        wih_b=jax.random.uniform(ks[5], (3 * d_hidden, d_pe), jnp.float32, -s, s),
        whh_b=jax.random.uniform(ks[6], (3 * d_hidden, d_hidden), jnp.float32, -s, s),
        bih_b=jax.random.uniform(ks[7], (3 * d_hidden,), jnp.float32, -s, s),
        bhh_b=jax.random.uniform(ks[8], (3 * d_hidden,), jnp.float32, -s, s),
        pool_w=jax.random.uniform(ks[9], (1, d_hidden), jnp.float32, -s, s),
    )


def prepare_params(params):
    """One-time layout prep (outside the per-call path): transpose + cast the fc
    weight, lane-stack GRU gates [r|z|n] along columns, biases as (1, 3H) rows."""
    return dict(
        fc_w_t=params["fc_w"].T.astype(jnp.bfloat16),    # (img_dim, E), pre-cast once
        fc_b=params["fc_b"][None, :],                    # (1, E)
        wih_f=params["wih_f"].T, bih_f=params["bih_f"][None, :],
        whh_f=params["whh_f"].T, bhh_f=params["bhh_f"][None, :],
        wih_b=params["wih_b"].T, bih_b=params["bih_b"][None, :],
        whh_b=params["whh_b"].T, bhh_b=params["bhh_b"][None, :],
        pool_w=params["pool_w"],                         # (1, H)
    )


# ---------------------------------------------------------------------------
# Full forward (Pallas path) — jit-friendly (no host syncs)
# ---------------------------------------------------------------------------
def encoder_image_aggr_forward(images, lengths, prep):
    B, K, img_dim = images.shape
    E = prep["fc_w_t"].shape[1]
    T = K    # static; positions >= length get exactly-zero softmax weight, so this
             # equals the PyTorch slice to max(lengths) (see notes).

    # pad batch to full sublanes once, up front (no-op when already aligned)
    Bp = _round_up(B, 8)
    if Bp != B:
        images = jnp.pad(images, ((0, Bp - B), (0, 0), (0, 0)))
        lengths = jnp.pad(lengths, (0, Bp - B), constant_values=1)

    maskf = (jnp.arange(T)[None, :] < lengths[:, None]).astype(jnp.float32)   # (Bp, T)

    # 1) fc: Pallas tiled matmul, fused bias + fused pre-sort mask fill (-10000)
    feats = fc_linear_masked(images.reshape(Bp * K, img_dim), prep["fc_w_t"],
                             prep["fc_b"], maskf.reshape(Bp * K, 1))
    feats = feats.reshape(Bp, K, E)

    # 2) GPO pool weights: single fused kernel (bi-GRU + score + mask + softmax)
    pe = positional_encoding_1d(D_PE, T)
    weights = gpo_pool_weights(pe, prep, maskf)                               # (Bp, T)

    # 3) per-column descending sort over the region axis.
    # TODO(synk): no clean in-kernel sort primitive; done with XLA's jnp.sort
    # (an in-kernel bitonic network over <=64 sublanes is the longer-term fix).
    sf = -jnp.sort(-feats, axis=1)

    # 4) fused post-sort mask (weights*mask gives exact zeros) + pool + l2norm
    wm3 = (weights * maskf)[:, :, None]                                       # (Bp, T, 1)
    out = pool_l2norm(sf, wm3)                                                # (Bp, E)
    return out[:B]


# ---------------------------------------------------------------------------
# Pure-JAX reference mirroring the PyTorch module (per-sample GRU loops)
# ---------------------------------------------------------------------------
def _ref_gru_cell(x, h, wih, whh, bih, bhh, H):
    gi = wih @ x + bih
    gh = whh @ h + bhh
    r = _sigmoid(gi[0:H] + gh[0:H])
    z = _sigmoid(gi[H:2 * H] + gh[H:2 * H])
    n = jnp.tanh(gi[2 * H:3 * H] + r * gh[2 * H:3 * H])
    return (1.0 - z) * n + z * h


def ref_forward(images, lengths, params):
    B, K, _ = images.shape
    H = D_HIDDEN
    feats = jnp.einsum("bkd,ed->bke", images, params["fc_w"]) + params["fc_b"]
    T = int(jnp.max(lengths))
    feats = feats[:, :T, :]
    pe = positional_encoding_1d(D_PE, T)
    mask = jnp.arange(T)[None, :] < lengths[:, None]
    embs = []
    for b in range(B):
        L = int(lengths[b])
        h = jnp.zeros((H,), jnp.float32)
        fwd = []
        for t in range(L):
            h = _ref_gru_cell(pe[t], h, params["wih_f"], params["whh_f"],
                              params["bih_f"], params["bhh_f"], H)
            fwd.append(h)
        h = jnp.zeros((H,), jnp.float32)
        bwd = [None] * L
        for t in range(L - 1, -1, -1):
            h = _ref_gru_cell(pe[t], h, params["wih_b"], params["whh_b"],
                              params["bih_b"], params["bhh_b"], H)
            bwd[t] = h
        emb = jnp.zeros((T, 2 * H), jnp.float32)
        emb = emb.at[:L].set(jnp.concatenate([jnp.stack(fwd), jnp.stack(bwd)], axis=-1))
        embs.append(emb)
    out_emb = jnp.stack(embs)                                     # (B, T, 2H)
    out_avg = (out_emb[:, :, :H] + out_emb[:, :, H:]) / 2.0
    scores = out_avg @ params["pool_w"].T                         # (B, T, 1)
    scores = jnp.where(mask[:, :, None], scores, NEG_FILL)
    weights = jax.nn.softmax(scores / POOL_TEMP, axis=1)
    sf = jnp.where(mask[:, :, None], feats, NEG_FILL)
    sf = -jnp.sort(-sf, axis=1)
    sf = jnp.where(mask[:, :, None], sf, 0.0)
    pooled = jnp.sum(sf * weights, axis=1)
    norm = jnp.sqrt(jnp.sum(pooled ** 2, axis=-1, keepdims=True)) + L2_EPS
    return pooled / norm


# ---------------------------------------------------------------------------
if __name__ == "__main__":
    B, K = 2, 8                      # batch, image regions
    img_dim, embed_size = 16, 32

    key = jax.random.PRNGKey(0)
    key, kx = jax.random.split(key)
    images = jax.random.normal(kx, (B, K, img_dim), dtype=jnp.float32)
    image_lengths = jnp.array([8, 5], dtype=jnp.int32)

    params = init_params(key, img_dim, embed_size)
    prep = prepare_params(params)    # one-time weight layout prep (off the hot path)

    fwd = jax.jit(encoder_image_aggr_forward)
    out = jax.block_until_ready(fwd(images, image_lengths, prep))

    ref = ref_forward(images, image_lengths, params)
    assert out.shape == (B, embed_size)
    max_err = float(jnp.max(jnp.abs(out - ref)))
    # fc matmul runs with bf16 operands on the MXU (f32 accumulate) -> loose tolerance.
    assert jnp.allclose(out, ref, atol=2e-2, rtol=2e-2), f"max abs err {max_err}"

    print("KERNEL_OK")
</pallas_src>

<mosaic_0001>
module attributes {stable_mosaic.version = 11 : i64} {
  func.func @_fc_mask_kernel(%arg0: i32, %arg1: i32, %arg2: i32, %arg3: memref<64x128xf32, #tpu.memory_space<vmem>>, %arg4: memref<128x128xbf16, #tpu.memory_space<vmem>>, %arg5: memref<1x128xf32, #tpu.memory_space<vmem>>, %arg6: memref<64x1xf32, #tpu.memory_space<vmem>>, %arg7: memref<64x128xf32, #tpu.memory_space<vmem>>, %arg8: memref<64x128xf32, #tpu.memory_space<vmem>>) attributes {dimension_semantics = [#tpu.dimension_semantics<parallel>, #tpu.dimension_semantics<parallel>, #tpu.dimension_semantics<arbitrary>], iteration_bounds = array<i64: 1, 1, 1>, scalar_prefetch = 0 : i64, scratch_operands = 1 : i64, tpu.core_type = #tpu.core_type<tc>, window_params = [{transform_indices = @transform_0, window_bounds = array<i64: 64, 128>}, {transform_indices = @transform_1, window_bounds = array<i64: 128, 128>}, {transform_indices = @transform_2, window_bounds = array<i64: 1, 128>}, {transform_indices = @transform_3, window_bounds = array<i64: 64, 1>}, {transform_indices = @transform_4, window_bounds = array<i64: 64, 128>}]} {
    %c0_i32 = arith.constant 0 : i32
    %0 = arith.cmpi eq, %arg2, %c0_i32 : i32
    %1 = arith.extui %0 : i1 to i32
    %c0_i32_0 = arith.constant 0 : i32
    %2 = arith.cmpi ne, %1, %c0_i32_0 : i32
    scf.if %2 {
      %cst_10 = arith.constant 0.000000e+00 : f32
      %13 = vector.broadcast %cst_10 : f32 to vector<64x128xf32>
      %c0_11 = arith.constant 0 : index
      %c0_12 = arith.constant 0 : index
      %14 = vector.load %arg8[%c0_11, %c0_12] : memref<64x128xf32, #tpu.memory_space<vmem>>, vector<64x128xf32>
      tpu.vector_store %arg8[%c0_11, %c0_12], %13 {strides = array<i32>} : memref<64x128xf32, #tpu.memory_space<vmem>>, vector<64x128xf32>,
    } else {
    }
    %c0 = arith.constant 0 : index
    %c0_1 = arith.constant 0 : index
    %3 = vector.load %arg8[%c0, %c0_1] : memref<64x128xf32, #tpu.memory_space<vmem>>, vector<64x128xf32>
    %c0_2 = arith.constant 0 : index
    %c0_3 = arith.constant 0 : index
    %4 = vector.load %arg3[%c0_2, %c0_3] : memref<64x128xf32, #tpu.memory_space<vmem>>, vector<64x128xf32>
    %5 = arith.truncf %4 : vector<64x128xf32> to vector<64x128xbf16>
    %c0_4 = arith.constant 0 : index
    %c0_5 = arith.constant 0 : index
    %6 = vector.load %arg4[%c0_4, %c0_5] : memref<128x128xbf16, #tpu.memory_space<vmem>>, vector<128x128xbf16>
    %cst = arith.constant dense<0.000000e+00> : vector<64x128xf32>
    %7 = tpu.matmul %5, %6, %cst {dimension_numbers = #tpu.dot_dimension_numbers<[1], [0], [0], [1], [0, 0, 1, 1], [], []>} : vector<64x128xbf16>, vector<128x128xbf16>, vector<64x128xf32> -> vector<64x128xf32>
    %8 = arith.addf %3, %7 : vector<64x128xf32>
    %c0_6 = arith.constant 0 : index
    %c0_7 = arith.constant 0 : index
    %9 = vector.load %arg8[%c0_6, %c0_7] : memref<64x128xf32, #tpu.memory_space<vmem>>, vector<64x128xf32>
    tpu.vector_store %arg8[%c0_6, %c0_7], %8 {strides = array<i32>} : memref<64x128xf32, #tpu.memory_space<vmem>>, vector<64x128xf32>,
    %c0_i32_8 = arith.constant 0 : i32
    %10 = arith.cmpi eq, %arg2, %c0_i32_8 : i32
    %11 = arith.extui %10 : i1 to i32
    %c0_i32_9 = arith.constant 0 : i32
    %12 = arith.cmpi ne, %11, %c0_i32_9 : i32
    scf.if %12 {
      %c0_10 = arith.constant 0 : index
      %c0_11 = arith.constant 0 : index
      %13 = vector.load %arg8[%c0_10, %c0_11] : memref<64x128xf32, #tpu.memory_space<vmem>>, vector<64x128xf32>
      %c0_12 = arith.constant 0 : index
      %c0_13 = arith.constant 0 : index
      %14 = vector.load %arg5[%c0_12, %c0_13] : memref<1x128xf32, #tpu.memory_space<vmem>>, vector<1x128xf32>
      %15 = vector.broadcast %14 : vector<1x128xf32> to vector<64x128xf32>
      %16 = arith.addf %13, %15 : vector<64x128xf32>
      %c0_14 = arith.constant 0 : index
      %c0_15 = arith.constant 0 : index
      %17 = vector.load %arg6[%c0_14, %c0_15] : memref<64x1xf32, #tpu.memory_space<vmem>>, vector<64x1xf32>
      %cst_16 = arith.constant 5.000000e-01 : f32
      %18 = vector.broadcast %cst_16 : f32 to vector<64x1xf32>
      %19 = arith.cmpf ogt, %17, %18 : vector<64x1xf32>
      %cst_17 = arith.constant -1.000000e+04 : f32
      %20 = vector.shape_cast %19 : vector<64x1xi1> to vector<64x1xi1>
      %21 = vector.broadcast %20 : vector<64x1xi1> to vector<64x128xi1>
      %22 = vector.broadcast %cst_17 : f32 to vector<64x128xf32>
      %23 = arith.select %21, %16, %22 : vector<64x128xi1>, vector<64x128xf32>
      %c0_18 = arith.constant 0 : index
      %c0_19 = arith.constant 0 : index
      %24 = vector.load %arg7[%c0_18, %c0_19] : memref<64x128xf32, #tpu.memory_space<vmem>>, vector<64x128xf32>
      tpu.vector_store %arg7[%c0_18, %c0_19], %23 {strides = array<i32>} : memref<64x128xf32, #tpu.memory_space<vmem>>, vector<64x128xf32>,
    } else {
    }
    return
  }
  func.func @transform_0(%arg0: i32, %arg1: i32, %arg2: i32) -> (i32, i32) {
    %c0_i32 = arith.constant 0 : i32
    return %arg0, %arg2 : i32, i32
  }
  func.func @transform_1(%arg0: i32, %arg1: i32, %arg2: i32) -> (i32, i32) {
    %c0_i32 = arith.constant 0 : i32
    return %arg2, %arg1 : i32, i32
  }
  func.func @transform_2(%arg0: i32, %arg1: i32, %arg2: i32) -> (i32, i32) {
    %c0_i32 = arith.constant 0 : i32
    %c0_i32_0 = arith.constant 0 : i32
    return %c0_i32, %arg1 : i32, i32
  }
  func.func @transform_3(%arg0: i32, %arg1: i32, %arg2: i32) -> (i32, i32) {
    %c0_i32 = arith.constant 0 : i32
    %c0_i32_0 = arith.constant 0 : i32
    return %arg0, %c0_i32 : i32, i32
  }
  func.func @transform_4(%arg0: i32, %arg1: i32, %arg2: i32) -> (i32, i32) {
    %c0_i32 = arith.constant 0 : i32
    return %arg0, %arg1 : i32, i32
  }
}

module attributes {stable_mosaic.version = 11 : i64} {
  func.func @_gpo_weights_kernel(%arg0: memref<8x32xf32, #tpu.memory_space<vmem>>, %arg1: memref<32x96xf32, #tpu.memory_space<vmem>>, %arg2: memref<32x96xf32, #tpu.memory_space<vmem>>, %arg3: memref<1x96xf32, #tpu.memory_space<vmem>>, %arg4: memref<1x96xf32, #tpu.memory_space<vmem>>, %arg5: memref<32x96xf32, #tpu.memory_space<vmem>>, %arg6: memref<32x96xf32, #tpu.memory_space<vmem>>, %arg7: memref<1x96xf32, #tpu.memory_space<vmem>>, %arg8: memref<1x96xf32, #tpu.memory_space<vmem>>, %arg9: memref<1x32xf32, #tpu.memory_space<vmem>>, %arg10: memref<8x8xf32, #tpu.memory_space<vmem>>, %arg11: memref<8x8xf32, #tpu.memory_space<vmem>>) attributes {dimension_semantics = [], scalar_prefetch = 0 : i64, scratch_operands = 0 : i64, tpu.core_type = #tpu.core_type<tc>} {
    %c0 = arith.constant 0 : index
    %c0_0 = arith.constant 0 : index
    %0 = vector.load %arg0[%c0, %c0_0] : memref<8x32xf32, #tpu.memory_space<vmem>>, vector<8x32xf32>
    %c0_1 = arith.constant 0 : index
    %c0_2 = arith.constant 0 : index
    %1 = vector.load %arg1[%c0_1, %c0_2] : memref<32x96xf32, #tpu.memory_space<vmem>>, vector<32x96xf32>
    %cst = arith.constant dense<0.000000e+00> : vector<8x96xf32>
    %2 = tpu.matmul %0, %1, %cst {dimension_numbers = #tpu.dot_dimension_numbers<[1], [0], [0], [1], [0, 0, 1, 1], [], []>} : vector<8x32xf32>, vector<32x96xf32>, vector<8x96xf32> -> vector<8x96xf32>
    %c0_3 = arith.constant 0 : index
    %c0_4 = arith.constant 0 : index
    %3 = vector.load %arg3[%c0_3, %c0_4] : memref<1x96xf32, #tpu.memory_space<vmem>>, vector<1x96xf32>
    %4 = vector.broadcast %3 : vector<1x96xf32> to vector<8x96xf32>
    %5 = arith.addf %2, %4 : vector<8x96xf32>
    %c0_5 = arith.constant 0 : index
    %c0_6 = arith.constant 0 : index
    %6 = vector.load %arg5[%c0_5, %c0_6] : memref<32x96xf32, #tpu.memory_space<vmem>>, vector<32x96xf32>
    %cst_7 = arith.constant dense<0.000000e+00> : vector<8x96xf32>
    %7 = tpu.matmul %0, %6, %cst_7 {dimension_numbers = #tpu.dot_dimension_numbers<[1], [0], [0], [1], [0, 0, 1, 1], [], []>} : vector<8x32xf32>, vector<32x96xf32>, vector<8x96xf32> -> vector<8x96xf32>
    %c0_8 = arith.constant 0 : index
    %c0_9 = arith.constant 0 : index
    %8 = vector.load %arg7[%c0_8, %c0_9] : memref<1x96xf32, #tpu.memory_space<vmem>>, vector<1x96xf32>
    %9 = vector.broadcast %8 : vector<1x96xf32> to vector<8x96xf32>
    %10 = arith.addf %7, %9 : vector<8x96xf32>
    %c0_10 = arith.constant 0 : index
    %c0_11 = arith.constant 0 : index
    %11 = vector.load %arg2[%c0_10, %c0_11] : memref<32x96xf32, #tpu.memory_space<vmem>>, vector<32x96xf32>
    %c0_12 = arith.constant 0 : index
    %c0_13 = arith.constant 0 : index
    %12 = vector.load %arg6[%c0_12, %c0_13] : memref<32x96xf32, #tpu.memory_space<vmem>>, vector<32x96xf32>
    %c0_14 = arith.constant 0 : index
    %c0_15 = arith.constant 0 : index
    %13 = vector.load %arg4[%c0_14, %c0_15] : memref<1x96xf32, #tpu.memory_space<vmem>>, vector<1x96xf32>
    %14 = vector.shape_cast %13 : vector<1x96xf32> to vector<1x96xf32>
    %15 = vector.broadcast %14 : vector<1x96xf32> to vector<8x96xf32>
    %c0_16 = arith.constant 0 : index
    %c0_17 = arith.constant 0 : index
    %16 = vector.load %arg8[%c0_16, %c0_17] : memref<1x96xf32, #tpu.memory_space<vmem>>, vector<1x96xf32>
    %17 = vector.shape_cast %16 : vector<1x96xf32> to vector<1x96xf32>
    %18 = vector.broadcast %17 : vector<1x96xf32> to vector<8x96xf32>
    %c0_18 = arith.constant 0 : index
    %c0_19 = arith.constant 0 : index
    %19 = vector.load %arg9[%c0_18, %c0_19] : memref<1x32xf32, #tpu.memory_space<vmem>>, vector<1x32xf32>
    %20 = vector.shape_cast %19 : vector<1x32xf32> to vector<1x32xf32>
    %21 = vector.broadcast %20 : vector<1x32xf32> to vector<8x32xf32>
    %c0_20 = arith.constant 0 : index
    %c0_21 = arith.constant 0 : index
    %22 = vector.load %arg10[%c0_20, %c0_21] : memref<8x8xf32, #tpu.memory_space<vmem>>, vector<8x8xf32>
    %23 = tpu.iota {dimensions = array<i32: 1>} : vector<1x8xi32>
    %cst_22 = arith.constant 0.000000e+00 : f32
    %24 = vector.broadcast %cst_22 : f32 to vector<8x32xf32>
    %cst_23 = arith.constant 0.000000e+00 : f32
    %25 = vector.broadcast %cst_23 : f32 to vector<8x32xf32>
    %cst_24 = arith.constant 0.000000e+00 : f32
    %26 = vector.broadcast %cst_24 : f32 to vector<8x8xf32>
    %27 = vector.extract_strided_slice %5 {offsets = [0, 0], sizes = [1, 96], strides = [1, 1]} : vector<8x96xf32> to vector<1x96xf32>
    %cst_25 = arith.constant dense<0.000000e+00> : vector<8x96xf32>
    %28 = tpu.matmul %24, %11, %cst_25 {dimension_numbers = #tpu.dot_dimension_numbers<[1], [0], [0], [1], [0, 0, 1, 1], [], []>} : vector<8x32xf32>, vector<32x96xf32>, vector<8x96xf32> -> vector<8x96xf32>
    %29 = arith.addf %28, %15 : vector<8x96xf32>
    %30 = vector.extract_strided_slice %27 {offsets = [0, 0], sizes = [1, 32], strides = [1, 1]} : vector<1x96xf32> to vector<1x32xf32>
    %31 = vector.extract_strided_slice %29 {offsets = [0, 0], sizes = [8, 32], strides = [1, 1]} : vector<8x96xf32> to vector<8x32xf32>
    %32 = vector.broadcast %30 : vector<1x32xf32> to vector<8x32xf32>
    %33 = arith.addf %32, %31 : vector<8x32xf32>
    %cst_26 = arith.constant 0.000000e+00 : f32
    %34 = vector.broadcast %cst_26 : f32 to vector<8x32xf32>
    %35 = arith.subf %34, %33 : vector<8x32xf32>
    %36 = math.exp %35 : vector<8x32xf32>
    %cst_27 = arith.constant 1.000000e+00 : f32
    %37 = vector.broadcast %cst_27 : f32 to vector<8x32xf32>
    %38 = arith.addf %37, %36 : vector<8x32xf32>
    %cst_28 = arith.constant 1.000000e+00 : f32
    %39 = vector.broadcast %cst_28 : f32 to vector<8x32xf32>
    %40 = arith.divf %39, %38 : vector<8x32xf32>
    %41 = vector.extract_strided_slice %27 {offsets = [0, 32], sizes = [1, 32], strides = [1, 1]} : vector<1x96xf32> to vector<1x32xf32>
    %42 = vector.extract_strided_slice %29 {offsets = [0, 32], sizes = [8, 32], strides = [1, 1]} : vector<8x96xf32> to vector<8x32xf32>
    %43 = vector.broadcast %41 : vector<1x32xf32> to vector<8x32xf32>
    %44 = arith.addf %43, %42 : vector<8x32xf32>
    %cst_29 = arith.constant 0.000000e+00 : f32
    %45 = vector.broadcast %cst_29 : f32 to vector<8x32xf32>
    %46 = arith.subf %45, %44 : vector<8x32xf32>
    %47 = math.exp %46 : vector<8x32xf32>
    %cst_30 = arith.constant 1.000000e+00 : f32
    %48 = vector.broadcast %cst_30 : f32 to vector<8x32xf32>
    %49 = arith.addf %48, %47 : vector<8x32xf32>
    %cst_31 = arith.constant 1.000000e+00 : f32
    %50 = vector.broadcast %cst_31 : f32 to vector<8x32xf32>
    %51 = arith.divf %50, %49 : vector<8x32xf32>
    %52 = vector.extract_strided_slice %27 {offsets = [0, 64], sizes = [1, 32], strides = [1, 1]} : vector<1x96xf32> to vector<1x32xf32>
    %53 = vector.extract_strided_slice %29 {offsets = [0, 64], sizes = [8, 32], strides = [1, 1]} : vector<8x96xf32> to vector<8x32xf32>
    %54 = arith.mulf %40, %53 : vector<8x32xf32>
    %55 = vector.broadcast %52 : vector<1x32xf32> to vector<8x32xf32>
    %56 = arith.addf %55, %54 : vector<8x32xf32>
    %57 = math.tanh %56 : vector<8x32xf32>
    %cst_32 = arith.constant 1.000000e+00 : f32
    %58 = vector.broadcast %cst_32 : f32 to vector<8x32xf32>
    %59 = arith.subf %58, %51 : vector<8x32xf32>
    %60 = arith.mulf %59, %57 : vector<8x32xf32>
    %61 = arith.mulf %51, %24 : vector<8x32xf32>
    %62 = arith.addf %60, %61 : vector<8x32xf32>
    %63 = arith.mulf %62, %21 : vector<8x32xf32>
    %cst_33 = arith.constant dense<0.000000e+00> : vector<8xf32>
    %64 = vector.multi_reduction <add>, %63, %cst_33 [1] : vector<8x32xf32> to vector<8xf32>
    %65 = vector.shape_cast %64 : vector<8xf32> to vector<8x1xf32>
    %66 = vector.extract_strided_slice %10 {offsets = [7, 0], sizes = [1, 96], strides = [1, 1]} : vector<8x96xf32> to vector<1x96xf32>
    %cst_34 = arith.constant dense<0.000000e+00> : vector<8x96xf32>
    %67 = tpu.matmul %25, %12, %cst_34 {dimension_numbers = #tpu.dot_dimension_numbers<[1], [0], [0], [1], [0, 0, 1, 1], [], []>} : vector<8x32xf32>, vector<32x96xf32>, vector<8x96xf32> -> vector<8x96xf32>
    %68 = arith.addf %67, %18 : vector<8x96xf32>
    %69 = vector.extract_strided_slice %66 {offsets = [0, 0], sizes = [1, 32], strides = [1, 1]} : vector<1x96xf32> to vector<1x32xf32>
    %70 = vector.extract_strided_slice %68 {offsets = [0, 0], sizes = [8, 32], strides = [1, 1]} : vector<8x96xf32> to vector<8x32xf32>
    %71 = vector.broadcast %69 : vector<1x32xf32> to vector<8x32xf32>
    %72 = arith.addf %71, %70 : vector<8x32xf32>
    %cst_35 = arith.constant 0.000000e+00 : f32
    %73 = vector.broadcast %cst_35 : f32 to vector<8x32xf32>
    %74 = arith.subf %73, %72 : vector<8x32xf32>
    %75 = math.exp %74 : vector<8x32xf32>
    %cst_36 = arith.constant 1.000000e+00 : f32
    %76 = vector.broadcast %cst_36 : f32 to vector<8x32xf32>
    %77 = arith.addf %76, %75 : vector<8x32xf32>
    %cst_37 = arith.constant 1.000000e+00 : f32
    %78 = vector.broadcast %cst_37 : f32 to vector<8x32xf32>
    %79 = arith.divf %78, %77 : vector<8x32xf32>
    %80 = vector.extract_strided_slice %66 {offsets = [0, 32], sizes = [1, 32], strides = [1, 1]} : vector<1x96xf32> to vector<1x32xf32>
    %81 = vector.extract_strided_slice %68 {offsets = [0, 32], sizes = [8, 32], strides = [1, 1]} : vector<8x96xf32> to vector<8x32xf32>
    %82 = vector.broadcast %80 : vector<1x32xf32> to vector<8x32xf32>
    %83 = arith.addf %82, %81 : vector<8x32xf32>
    %cst_38 = arith.constant 0.000000e+00 : f32
    %84 = vector.broadcast %cst_38 : f32 to vector<8x32xf32>
    %85 = arith.subf %84, %83 : vector<8x32xf32>
    %86 = math.exp %85 : vector<8x32xf32>
    %cst_39 = arith.constant 1.000000e+00 : f32
    %87 = vector.broadcast %cst_39 : f32 to vector<8x32xf32>
    %88 = arith.addf %87, %86 : vector<8x32xf32>
    %cst_40 = arith.constant 1.000000e+00 : f32
    %89 = vector.broadcast %cst_40 : f32 to vector<8x32xf32>
    %90 = arith.divf %89, %88 : vector<8x32xf32>
    %91 = vector.extract_strided_slice %66 {offsets = [0, 64], sizes = [1, 32], strides = [1, 1]} : vector<1x96xf32> to vector<1x32xf32>
    %92 = vector.extract_strided_slice %68 {offsets = [0, 64], sizes = [8, 32], strides = [1, 1]} : vector<8x96xf32> to vector<8x32xf32>
    %93 = arith.mulf %79, %92 : vector<8x32xf32>
    %94 = vector.broadcast %91 : vector<1x32xf32> to vector<8x32xf32>
    %95 = arith.addf %94, %93 : vector<8x32xf32>
    %96 = math.tanh %95 : vector<8x32xf32>
    %cst_41 = arith.constant 1.000000e+00 : f32
    %97 = vector.broadcast %cst_41 : f32 to vector<8x32xf32>
    %98 = arith.subf %97, %90 : vector<8x32xf32>
    %99 = arith.mulf %98, %96 : vector<8x32xf32>
    %100 = arith.mulf %90, %25 : vector<8x32xf32>
    %101 = arith.addf %99, %100 : vector<8x32xf32>
    %102 = vector.extract_strided_slice %22 {offsets = [0, 7], sizes = [8, 1], strides = [1, 1]} : vector<8x8xf32> to vector<8x1xf32>
    %103 = vector.broadcast %102 : vector<8x1xf32> to vector<8x32xf32>
    %104 = arith.mulf %101, %103 : vector<8x32xf32>
    %105 = arith.mulf %104, %21 : vector<8x32xf32>
    %cst_42 = arith.constant dense<0.000000e+00> : vector<8xf32>
    %106 = vector.multi_reduction <add>, %105, %cst_42 [1] : vector<8x32xf32> to vector<8xf32>
    %107 = vector.shape_cast %106 : vector<8xf32> to vector<8x1xf32>
    %c0_i32 = arith.constant 0 : i32
    %108 = vector.broadcast %c0_i32 : i32 to vector<1x8xi32>
    %109 = arith.cmpi eq, %23, %108 : vector<1x8xi32>
    %cst_43 = arith.constant 0.000000e+00 : f32
    %110 = vector.shape_cast %109 : vector<1x8xi1> to vector<1x8xi1>
    %111 = vector.broadcast %110 : vector<1x8xi1> to vector<8x8xi1>
    %112 = vector.shape_cast %65 : vector<8x1xf32> to vector<8x1xf32>
    %113 = vector.broadcast %112 : vector<8x1xf32> to vector<8x8xf32>
    %114 = vector.broadcast %cst_43 : f32 to vector<8x8xf32>
    %115 = arith.select %111, %113, %114 : vector<8x8xi1>, vector<8x8xf32>
    %116 = arith.addf %26, %115 : vector<8x8xf32>
    %c7_i32 = arith.constant 7 : i32
    %117 = vector.broadcast %c7_i32 : i32 to vector<1x8xi32>
    %118 = arith.cmpi eq, %23, %117 : vector<1x8xi32>
    %cst_44 = arith.constant 0.000000e+00 : f32
    %119 = vector.shape_cast %118 : vector<1x8xi1> to vector<1x8xi1>
    %120 = vector.broadcast %119 : vector<1x8xi1> to vector<8x8xi1>
    %121 = vector.shape_cast %107 : vector<8x1xf32> to vector<8x1xf32>
    %122 = vector.broadcast %121 : vector<8x1xf32> to vector<8x8xf32>
    %123 = vector.broadcast %cst_44 : f32 to vector<8x8xf32>
    %124 = arith.select %120, %122, %123 : vector<8x8xi1>, vector<8x8xf32>
    %125 = arith.addf %116, %124 : vector<8x8xf32>
    %126 = vector.extract_strided_slice %5 {offsets = [1, 0], sizes = [1, 96], strides = [1, 1]} : vector<8x96xf32> to vector<1x96xf32>
    %cst_45 = arith.constant dense<0.000000e+00> : vector<8x96xf32>
    %127 = tpu.matmul %62, %11, %cst_45 {dimension_numbers = #tpu.dot_dimension_numbers<[1], [0], [0], [1], [0, 0, 1, 1], [], []>} : vector<8x32xf32>, vector<32x96xf32>, vector<8x96xf32> -> vector<8x96xf32>
    %128 = arith.addf %127, %15 : vector<8x96xf32>
    %129 = vector.extract_strided_slice %126 {offsets = [0, 0], sizes = [1, 32], strides = [1, 1]} : vector<1x96xf32> to vector<1x32xf32>
    %130 = vector.extract_strided_slice %128 {offsets = [0, 0], sizes = [8, 32], strides = [1, 1]} : vector<8x96xf32> to vector<8x32xf32>
    %131 = vector.broadcast %129 : vector<1x32xf32> to vector<8x32xf32>
    %132 = arith.addf %131, %130 : vector<8x32xf32>
    %cst_46 = arith.constant 0.000000e+00 : f32
    %133 = vector.broadcast %cst_46 : f32 to vector<8x32xf32>
    %134 = arith.subf %133, %132 : vector<8x32xf32>
    %135 = math.exp %134 : vector<8x32xf32>
    %cst_47 = arith.constant 1.000000e+00 : f32
    %136 = vector.broadcast %cst_47 : f32 to vector<8x32xf32>
    %137 = arith.addf %136, %135 : vector<8x32xf32>
    %cst_48 = arith.constant 1.000000e+00 : f32
    %138 = vector.broadcast %cst_48 : f32 to vector<8x32xf32>
    %139 = arith.divf %138, %137 : vector<8x32xf32>
    %140 = vector.extract_strided_slice %126 {offsets = [0, 32], sizes = [1, 32], strides = [1, 1]} : vector<1x96xf32> to vector<1x32xf32>
    %141 = vector.extract_strided_slice %128 {offsets = [0, 32], sizes = [8, 32], strides = [1, 1]} : vector<8x96xf32> to vector<8x32xf32>
    %142 = vector.broadcast %140 : vector<1x32xf32> to vector<8x32xf32>
    %143 = arith.addf %142, %141 : vector<8x32xf32>
    %cst_49 = arith.constant 0.000000e+00 : f32
    %144 = vector.broadcast %cst_49 : f32 to vector<8x32xf32>
    %145 = arith.subf %144, %143 : vector<8x32xf32>
    %146 = math.exp %145 : vector<8x32xf32>
    %cst_50 = arith.constant 1.000000e+00 : f32
    %147 = vector.broadcast %cst_50 : f32 to vector<8x32xf32>
    %148 = arith.addf %147, %146 : vector<8x32xf32>
    %cst_51 = arith.constant 1.000000e+00 : f32
    %149 = vector.broadcast %cst_51 : f32 to vector<8x32xf32>
    %150 = arith.divf %149, %148 : vector<8x32xf32>
    %151 = vector.extract_strided_slice %126 {offsets = [0, 64], sizes = [1, 32], strides = [1, 1]} : vector<1x96xf32> to vector<1x32xf32>
    %152 = vector.extract_strided_slice %128 {offsets = [0, 64], sizes = [8, 32], strides = [1, 1]} : vector<8x96xf32> to vector<8x32xf32>
    %153 = arith.mulf %139, %152 : vector<8x32xf32>
    %154 = vector.broadcast %151 : vector<1x32xf32> to vector<8x32xf32>
    %155 = arith.addf %154, %153 : vector<8x32xf32>
    %156 = math.tanh %155 : vector<8x32xf32>
    %cst_52 = arith.constant 1.000000e+00 : f32
    %157 = vector.broadcast %cst_52 : f32 to vector<8x32xf32>
    %158 = arith.subf %157, %150 : vector<8x32xf32>
    %159 = arith.mulf %158, %156 : vector<8x32xf32>
    %160 = arith.mulf %150, %62 : vector<8x32xf32>
    %161 = arith.addf %159, %160 : vector<8x32xf32>
    %162 = arith.mulf %161, %21 : vector<8x32xf32>
    %cst_53 = arith.constant dense<0.000000e+00> : vector<8xf32>
    %163 = vector.multi_reduction <add>, %162, %cst_53 [1] : vector<8x32xf32> to vector<8xf32>
    %164 = vector.shape_cast %163 : vector<8xf32> to vector<8x1xf32>
    %165 = vector.extract_strided_slice %10 {offsets = [6, 0], sizes = [1, 96], strides = [1, 1]} : vector<8x96xf32> to vector<1x96xf32>
    %cst_54 = arith.constant dense<0.000000e+00> : vector<8x96xf32>
    %166 = tpu.matmul %104, %12, %cst_54 {dimension_numbers = #tpu.dot_dimension_numbers<[1], [0], [0], [1], [0, 0, 1, 1], [], []>} : vector<8x32xf32>, vector<32x96xf32>, vector<8x96xf32> -> vector<8x96xf32>
    %167 = arith.addf %166, %18 : vector<8x96xf32>
    %168 = vector.extract_strided_slice %165 {offsets = [0, 0], sizes = [1, 32], strides = [1, 1]} : vector<1x96xf32> to vector<1x32xf32>
    %169 = vector.extract_strided_slice %167 {offsets = [0, 0], sizes = [8, 32], strides = [1, 1]} : vector<8x96xf32> to vector<8x32xf32>
    %170 = vector.broadcast %168 : vector<1x32xf32> to vector<8x32xf32>
    %171 = arith.addf %170, %169 : vector<8x32xf32>
    %cst_55 = arith.constant 0.000000e+00 : f32
    %172 = vector.broadcast %cst_55 : f32 to vector<8x32xf32>
    %173 = arith.subf %172, %171 : vector<8x32xf32>
    %174 = math.exp %173 : vector<8x32xf32>
    %cst_56 = arith.constant 1.000000e+00 : f32
    %175 = vector.broadcast %cst_56 : f32 to vector<8x32xf32>
    %176 = arith.addf %175, %174 : vector<8x32xf32>
    %cst_57 = arith.constant 1.000000e+00 : f32
    %177 = vector.broadcast %cst_57 : f32 to vector<8x32xf32>
    %178 = arith.divf %177, %176 : vector<8x32xf32>
    %179 = vector.extract_strided_slice %165 {offsets = [0, 32], sizes = [1, 32], strides = [1, 1]} : vector<1x96xf32> to vector<1x32xf32>
    %180 = vector.extract_strided_slice %167 {offsets = [0, 32], sizes = [8, 32], strides = [1, 1]} : vector<8x96xf32> to vector<8x32xf32>
    %181 = vector.broadcast %179 : vector<1x32xf32> to vector<8x32xf32>
    %182 = arith.addf %181, %180 : vector<8x32xf32>
    %cst_58 = arith.constant 0.000000e+00 : f32
    %183 = vector.broadcast %cst_58 : f32 to vector<8x32xf32>
    %184 = arith.subf %183, %182 : vector<8x32xf32>
    %185 = math.exp %184 : vector<8x32xf32>
    %cst_59 = arith.constant 1.000000e+00 : f32
    %186 = vector.broadcast %cst_59 : f32 to vector<8x32xf32>
    %187 = arith.addf %186, %185 : vector<8x32xf32>
    %cst_60 = arith.constant 1.000000e+00 : f32
    %188 = vector.broadcast %cst_60 : f32 to vector<8x32xf32>
    %189 = arith.divf %188, %187 : vector<8x32xf32>
    %190 = vector.extract_strided_slice %165 {offsets = [0, 64], sizes = [1, 32], strides = [1, 1]} : vector<1x96xf32> to vector<1x32xf32>
    %191 = vector.extract_strided_slice %167 {offsets = [0, 64], sizes = [8, 32], strides = [1, 1]} : vector<8x96xf32> to vector<8x32xf32>
    %192 = arith.mulf %178, %191 : vector<8x32xf32>
    %193 = vector.broadcast %190 : vector<1x32xf32> to vector<8x32xf32>
    %194 = arith.addf %193, %192 : vector<8x32xf32>
    %195 = math.tanh %194 : vector<8x32xf32>
    %cst_61 = arith.constant 1.000000e+00 : f32
    %196 = vector.broadcast %cst_61 : f32 to vector<8x32xf32>
    %197 = arith.subf %196, %189 : vector<8x32xf32>
    %198 = arith.mulf %197, %195 : vector<8x32xf32>
    %199 = arith.mulf %189, %104 : vector<8x32xf32>
    %200 = arith.addf %198, %199 : vector<8x32xf32>
    %201 = vector.extract_strided_slice %22 {offsets = [0, 6], sizes = [8, 1], strides = [1, 1]} : vector<8x8xf32> to vector<8x1xf32>
    %202 = vector.broadcast %201 : vector<8x1xf32> to vector<8x32xf32>
    %203 = arith.mulf %200, %202 : vector<8x32xf32>
    %204 = arith.mulf %203, %21 : vector<8x32xf32>
    %cst_62 = arith.constant dense<0.000000e+00> : vector<8xf32>
    %205 = vector.multi_reduction <add>, %204, %cst_62 [1] : vector<8x32xf32> to vector<8xf32>
    %206 = vector.shape_cast %205 : vector<8xf32> to vector<8x1xf32>
    %c1_i32 = arith.constant 1 : i32
    %207 = vector.broadcast %c1_i32 : i32 to vector<1x8xi32>
    %208 = arith.cmpi eq, %23, %207 : vector<1x8xi32>
    %cst_63 = arith.constant 0.000000e+00 : f32
    %209 = vector.shape_cast %208 : vector<1x8xi1> to vector<1x8xi1>
    %210 = vector.broadcast %209 : vector<1x8xi1> to vector<8x8xi1>
    %211 = vector.shape_cast %164 : vector<8x1xf32> to vector<8x1xf32>
    %212 = vector.broadcast %211 : vector<8x1xf32> to vector<8x8xf32>
    %213 = vector.broadcast %cst_63 : f32 to vector<8x8xf32>
    %214 = arith.select %210, %212, %213 : vector<8x8xi1>, vector<8x8xf32>
    %215 = arith.addf %125, %214 : vector<8x8xf32>
    %c6_i32 = arith.constant 6 : i32
    %216 = vector.broadcast %c6_i32 : i32 to vector<1x8xi32>
    %217 = arith.cmpi eq, %23, %216 : vector<1x8xi32>
    %cst_64 = arith.constant 0.000000e+00 : f32
    %218 = vector.shape_cast %217 : vector<1x8xi1> to vector<1x8xi1>
    %219 = vector.broadcast %218 : vector<1x8xi1> to vector<8x8xi1>
    %220 = vector.shape_cast %206 : vector<8x1xf32> to vector<8x1xf32>
    %221 = vector.broadcast %220 : vector<8x1xf32> to vector<8x8xf32>
    %222 = vector.broadcast %cst_64 : f32 to vector<8x8xf32>
    %223 = arith.select %219, %221, %222 : vector<8x8xi1>, vector<8x8xf32>
    %224 = arith.addf %215, %223 : vector<8x8xf32>
    %225 = vector.extract_strided_slice %5 {offsets = [2, 0], sizes = [1, 96], strides = [1, 1]} : vector<8x96xf32> to vector<1x96xf32>
    %cst_65 = arith.constant dense<0.000000e+00> : vector<8x96xf32>
    %226 = tpu.matmul %161, %11, %cst_65 {dimension_numbers = #tpu.dot_dimension_numbers<[1], [0], [0], [1], [0, 0, 1, 1], [], []>} : vector<8x32xf32>, vector<32x96xf32>, vector<8x96xf32> -> vector<8x96xf32>
    %227 = arith.addf %226, %15 : vector<8x96xf32>
    %228 = vector.extract_strided_slice %225 {offsets = [0, 0], sizes = [1, 32], strides = [1, 1]} : vector<1x96xf32> to vector<1x32xf32>
    %229 = vector.extract_strided_slice %227 {offsets = [0, 0], sizes = [8, 32], strides = [1, 1]} : vector<8x96xf32> to vector<8x32xf32>
    %230 = vector.broadcast %228 : vector<1x32xf32> to vector<8x32xf32>
    %231 = arith.addf %230, %229 : vector<8x32xf32>
    %cst_66 = arith.constant 0.000000e+00 : f32
    %232 = vector.broadcast %cst_66 : f32 to vector<8x32xf32>
    %233 = arith.subf %232, %231 : vector<8x32xf32>
    %234 = math.exp %233 : vector<8x32xf32>
    %cst_67 = arith.constant 1.000000e+00 : f32
    %235 = vector.broadcast %cst_67 : f32 to vector<8x32xf32>
    %236 = arith.addf %235, %234 : vector<8x32xf32>
    %cst_68 = arith.constant 1.000000e+00 : f32
    %237 = vector.broadcast %cst_68 : f32 to vector<8x32xf32>
    %238 = arith.divf %237, %236 : vector<8x32xf32>
    %239 = vector.extract_strided_slice %225 {offsets = [0, 32], sizes = [1, 32], strides = [1, 1]} : vector<1x96xf32> to vector<1x32xf32>
    %240 = vector.extract_strided_slice %227 {offsets = [0, 32], sizes = [8, 32], strides = [1, 1]} : vector<8x96xf32> to vector<8x32xf32>
    %241 = vector.broadcast %239 : vector<1x32xf32> to vector<8x32xf32>
    %242 = arith.addf %241, %240 : vector<8x32xf32>
    %cst_69 = arith.constant 0.000000e+00 : f32
    %243 = vector.broadcast %cst_69 : f32 to vector<8x32xf32>
    %244 = arith.subf %243, %242 : vector<8x32xf32>
    %245 = math.exp %244 : vector<8x32xf32>
    %cst_70 = arith.constant 1.000000e+00 : f32
    %246 = vector.broadcast %cst_70 : f32 to vector<8x32xf32>
    %247 = arith.addf %246, %245 : vector<8x32xf32>
    %cst_71 = arith.constant 1.000000e+00 : f32
    %248 = vector.broadcast %cst_71 : f32 to vector<8x32xf32>
    %249 = arith.divf %248, %247 : vector<8x32xf32>
    %250 = vector.extract_strided_slice %225 {offsets = [0, 64], sizes = [1, 32], strides = [1, 1]} : vector<1x96xf32> to vector<1x32xf32>
    %251 = vector.extract_strided_slice %227 {offsets = [0, 64], sizes = [8, 32], strides = [1, 1]} : vector<8x96xf32> to vector<8x32xf32>
    %252 = arith.mulf %238, %251 : vector<8x32xf32>
    %253 = vector.broadcast %250 : vector<1x32xf32> to vector<8x32xf32>
    %254 = arith.addf %253, %252 : vector<8x32xf32>
    %255 = math.tanh %254 : vector<8x32xf32>
    %cst_72 = arith.constant 1.000000e+00 : f32
    %256 = vector.broadcast %cst_72 : f32 to vector<8x32xf32>
    %257 = arith.subf %256, %249 : vector<8x32xf32>
    %258 = arith.mulf %257, %255 : vector<8x32xf32>
    %259 = arith.mulf %249, %161 : vector<8x32xf32>
    %260 = arith.addf %258, %259 : vector<8x32xf32>
    %261 = arith.mulf %260, %21 : vector<8x32xf32>
    %cst_73 = arith.constant dense<0.000000e+00> : vector<8xf32>
    %262 = vector.multi_reduction <add>, %261, %cst_73 [1] : vector<8x32xf32> to vector<8xf32>
    %263 = vector.shape_cast %262 : vector<8xf32> to vector<8x1xf32>
    %264 = vector.extract_strided_slice %10 {offsets = [5, 0], sizes = [1, 96], strides = [1, 1]} : vector<8x96xf32> to vector<1x96xf32>
    %cst_74 = arith.constant dense<0.000000e+00> : vector<8x96xf32>
    %265 = tpu.matmul %203, %12, %cst_74 {dimension_numbers = #tpu.dot_dimension_numbers<[1], [0], [0], [1], [0, 0, 1, 1], [], []>} : vector<8x32xf32>, vector<32x96xf32>, vector<8x96xf32> -> vector<8x96xf32>
    %266 = arith.addf %265, %18 : vector<8x96xf32>
    %267 = vector.extract_strided_slice %264 {offsets = [0, 0], sizes = [1, 32], strides = [1, 1]} : vector<1x96xf32> to vector<1x32xf32>
    %268 = vector.extract_strided_slice %266 {offsets = [0, 0], sizes = [8, 32], strides = [1, 1]} : vector<8x96xf32> to vector<8x32xf32>
    %269 = vector.broadcast %267 : vector<1x32xf32> to vector<8x32xf32>
    %270 = arith.addf %269, %268 : vector<8x32xf32>
    %cst_75 = arith.constant 0.000000e+00 : f32
    %271 = vector.broadcast %cst_75 : f32 to vector<8x32xf32>
    %272 = arith.subf %271, %270 : vector<8x32xf32>
    %273 = math.exp %272 : vector<8x32xf32>
    %cst_76 = arith.constant 1.000000e+00 : f32
    %274 = vector.broadcast %cst_76 : f32 to vector<8x32xf32>
    %275 = arith.addf %274, %273 : vector<8x32xf32>
    %cst_77 = arith.constant 1.000000e+00 : f32
    %276 = vector.broadcast %cst_77 : f32 to vector<8x32xf32>
    %277 = arith.divf %276, %275 : vector<8x32xf32>
    %278 = vector.extract_strided_slice %264 {offsets = [0, 32], sizes = [1, 32], strides = [1, 1]} : vector<1x96xf32> to vector<1x32xf32>
    %279 = vector.extract_strided_slice %266 {offsets = [0, 32], sizes = [8, 32], strides = [1, 1]} : vector<8x96xf32> to vector<8x32xf32>
    %280 = vector.broadcast %278 : vector<1x32xf32> to vector<8x32xf32>
    %281 = arith.addf %280, %279 : vector<8x32xf32>
    %cst_78 = arith.constant 0.000000e+00 : f32
    %282 = vector.broadcast %cst_78 : f32 to vector<8x32xf32>
    %283 = arith.subf %282, %281 : vector<8x32xf32>
    %284 = math.exp %283 : vector<8x32xf32>
    %cst_79 = arith.constant 1.000000e+00 : f32
    %285 = vector.broadcast %cst_79 : f32 to vector<8x32xf32>
    %286 = arith.addf %285, %284 : vector<8x32xf32>
    %cst_80 = arith.constant 1.000000e+00 : f32
    %287 = vector.broadcast %cst_80 : f32 to vector<8x32xf32>
    %288 = arith.divf %287, %286 : vector<8x32xf32>
    %289 = vector.extract_strided_slice %264 {offsets = [0, 64], sizes = [1, 32], strides = [1, 1]} : vector<1x96xf32> to vector<1x32xf32>
    %290 = vector.extract_strided_slice %266 {offsets = [0, 64], sizes = [8, 32], strides = [1, 1]} : vector<8x96xf32> to vector<8x32xf32>
    %291 = arith.mulf %277, %290 : vector<8x32xf32>
    %292 = vector.broadcast %289 : vector<1x32xf32> to vector<8x32xf32>
    %293 = arith.addf %292, %291 : vector<8x32xf32>
    %294 = math.tanh %293 : vector<8x32xf32>
    %cst_81 = arith.constant 1.000000e+00 : f32
    %295 = vector.broadcast %cst_81 : f32 to vector<8x32xf32>
    %296 = arith.subf %295, %288 : vector<8x32xf32>
    %297 = arith.mulf %296, %294 : vector<8x32xf32>
    %298 = arith.mulf %288, %203 : vector<8x32xf32>
    %299 = arith.addf %297, %298 : vector<8x32xf32>
    %300 = vector.extract_strided_slice %22 {offsets = [0, 5], sizes = [8, 1], strides = [1, 1]} : vector<8x8xf32> to vector<8x1xf32>
    %301 = vector.broadcast %300 : vector<8x1xf32> to vector<8x32xf32>
    %302 = arith.mulf %299, %301 : vector<8x32xf32>
    %303 = arith.mulf %302, %21 : vector<8x32xf32>
    %cst_82 = arith.constant dense<0.000000e+00> : vector<8xf32>
    %304 = vector.multi_reduction <add>, %303, %cst_82 [1] : vector<8x32xf32> to vector<8xf32>
    %305 = vector.shape_cast %304 : vector<8xf32> to vector<8x1xf32>
    %c2_i32 = arith.constant 2 : i32
    %306 = vector.broadcast %c2_i32 : i32 to vector<1x8xi32>
    %307 = arith.cmpi eq, %23, %306 : vector<1x8xi32>
    %cst_83 = arith.constant 0.000000e+00 : f32
    %308 = vector.shape_cast %307 : vector<1x8xi1> to vector<1x8xi1>
    %309 = vector.broadcast %308 : vector<1x8xi1> to vector<8x8xi1>
    %310 = vector.shape_cast %263 : vector<8x1xf32> to vector<8x1xf32>
    %311 = vector.broadcast %310 : vector<8x1xf32> to vector<8x8xf32>
    %312 = vector.broadcast %cst_83 : f32 to vector<8x8xf32>
    %313 = arith.select %309, %311, %312 : vector<8x8xi1>, vector<8x8xf32>
    %314 = arith.addf %224, %313 : vector<8x8xf32>
    %c5_i32 = arith.constant 5 : i32
    %315 = vector.broadcast %c5_i32 : i32 to vector<1x8xi32>
    %316 = arith.cmpi eq, %23, %315 : vector<1x8xi32>
    %cst_84 = arith.constant 0.000000e+00 : f32
    %317 = vector.shape_cast %316 : vector<1x8xi1> to vector<1x8xi1>
    %318 = vector.broadcast %317 : vector<1x8xi1> to vector<8x8xi1>
    %319 = vector.shape_cast %305 : vector<8x1xf32> to vector<8x1xf32>
    %320 = vector.broadcast %319 : vector<8x1xf32> to vector<8x8xf32>
    %321 = vector.broadcast %cst_84 : f32 to vector<8x8xf32>
    %322 = arith.select %318, %320, %321 : vector<8x8xi1>, vector<8x8xf32>
    %323 = arith.addf %314, %322 : vector<8x8xf32>
    %324 = vector.extract_strided_slice %5 {offsets = [3, 0], sizes = [1, 96], strides = [1, 1]} : vector<8x96xf32> to vector<1x96xf32>
    %cst_85 = arith.constant dense<0.000000e+00> : vector<8x96xf32>
    %325 = tpu.matmul %260, %11, %cst_85 {dimension_numbers = #tpu.dot_dimension_numbers<[1], [0], [0], [1], [0, 0, 1, 1], [], []>} : vector<8x32xf32>, vector<32x96xf32>, vector<8x96xf32> -> vector<8x96xf32>
    %326 = arith.addf %325, %15 : vector<8x96xf32>
    %327 = vector.extract_strided_slice %324 {offsets = [0, 0], sizes = [1, 32], strides = [1, 1]} : vector<1x96xf32> to vector<1x32xf32>
    %328 = vector.extract_strided_slice %326 {offsets = [0, 0], sizes = [8, 32], strides = [1, 1]} : vector<8x96xf32> to vector<8x32xf32>
    %329 = vector.broadcast %327 : vector<1x32xf32> to vector<8x32xf32>
    %330 = arith.addf %329, %328 : vector<8x32xf32>
    %cst_86 = arith.constant 0.000000e+00 : f32
    %331 = vector.broadcast %cst_86 : f32 to vector<8x32xf32>
    %332 = arith.subf %331, %330 : vector<8x32xf32>
    %333 = math.exp %332 : vector<8x32xf32>
    %cst_87 = arith.constant 1.000000e+00 : f32
    %334 = vector.broadcast %cst_87 : f32 to vector<8x32xf32>
    %335 = arith.addf %334, %333 : vector<8x32xf32>
    %cst_88 = arith.constant 1.000000e+00 : f32
    %336 = vector.broadcast %cst_88 : f32 to vector<8x32xf32>
    %337 = arith.divf %336, %335 : vector<8x32xf32>
    %338 = vector.extract_strided_slice %324 {offsets = [0, 32], sizes = [1, 32], strides = [1, 1]} : vector<1x96xf32> to vector<1x32xf32>
    %339 = vector.extract_strided_slice %326 {offsets = [0, 32], sizes = [8, 32], strides = [1, 1]} : vector<8x96xf32> to vector<8x32xf32>
    %340 = vector.broadcast %338 : vector<1x32xf32> to vector<8x32xf32>
    %341 = arith.addf %340, %339 : vector<8x32xf32>
    %cst_89 = arith.constant 0.000000e+00 : f32
    %342 = vector.broadcast %cst_89 : f32 to vector<8x32xf32>
    %343 = arith.subf %342, %341 : vector<8x32xf32>
    %344 = math.exp %343 : vector<8x32xf32>
    %cst_90 = arith.constant 1.000000e+00 : f32
    %345 = vector.broadcast %cst_90 : f32 to vector<8x32xf32>
    %346 = arith.addf %345, %344 : vector<8x32xf32>
    %cst_91 = arith.constant 1.000000e+00 : f32
    %347 = vector.broadcast %cst_91 : f32 to vector<8x32xf32>
    %348 = arith.divf %347, %346 : vector<8x32xf32>
    %349 = vector.extract_strided_slice %324 {offsets = [0, 64], sizes = [1, 32], strides = [1, 1]} : vector<1x96xf32> to vector<1x32xf32>
    %350 = vector.extract_strided_slice %326 {offsets = [0, 64], sizes = [8, 32], strides = [1, 1]} : vector<8x96xf32> to vector<8x32xf32>
    %351 = arith.mulf %337, %350 : vector<8x32xf32>
    %352 = vector.broadcast %349 : vector<1x32xf32> to vector<8x32xf32>
    %353 = arith.addf %352, %351 : vector<8x32xf32>
    %354 = math.tanh %353 : vector<8x32xf32>
    %cst_92 = arith.constant 1.000000e+00 : f32
    %355 = vector.broadcast %cst_92 : f32 to vector<8x32xf32>
    %356 = arith.subf %355, %348 : vector<8x32xf32>
    %357 = arith.mulf %356, %354 : vector<8x32xf32>
    %358 = arith.mulf %348, %260 : vector<8x32xf32>
    %359 = arith.addf %357, %358 : vector<8x32xf32>
    %360 = arith.mulf %359, %21 : vector<8x32xf32>
    %cst_93 = arith.constant dense<0.000000e+00> : vector<8xf32>
    %361 = vector.multi_reduction <add>, %360, %cst_93 [1] : vector<8x32xf32> to vector<8xf32>
    %362 = vector.shape_cast %361 : vector<8xf32> to vector<8x1xf32>
    %363 = vector.extract_strided_slice %10 {offsets = [4, 0], sizes = [1, 96], strides = [1, 1]} : vector<8x96xf32> to vector<1x96xf32>
    %cst_94 = arith.constant dense<0.000000e+00> : vector<8x96xf32>
    %364 = tpu.matmul %302, %12, %cst_94 {dimension_numbers = #tpu.dot_dimension_numbers<[1], [0], [0], [1], [0, 0, 1, 1], [], []>} : vector<8x32xf32>, vector<32x96xf32>, vector<8x96xf32> -> vector<8x96xf32>
    %365 = arith.addf %364, %18 : vector<8x96xf32>
    %366 = vector.extract_strided_slice %363 {offsets = [0, 0], sizes = [1, 32], strides = [1, 1]} : vector<1x96xf32> to vector<1x32xf32>
    %367 = vector.extract_strided_slice %365 {offsets = [0, 0], sizes = [8, 32], strides = [1, 1]} : vector<8x96xf32> to vector<8x32xf32>
    %368 = vector.broadcast %366 : vector<1x32xf32> to vector<8x32xf32>
    %369 = arith.addf %368, %367 : vector<8x32xf32>
    %cst_95 = arith.constant 0.000000e+00 : f32
    %370 = vector.broadcast %cst_95 : f32 to vector<8x32xf32>
    %371 = arith.subf %370, %369 : vector<8x32xf32>
    %372 = math.exp %371 : vector<8x32xf32>
    %cst_96 = arith.constant 1.000000e+00 : f32
    %373 = vector.broadcast %cst_96 : f32 to vector<8x32xf32>
    %374 = arith.addf %373, %372 : vector<8x32xf32>
    %cst_97 = arith.constant 1.000000e+00 : f32
    %375 = vector.broadcast %cst_97 : f32 to vector<8x32xf32>
    %376 = arith.divf %375, %374 : vector<8x32xf32>
    %377 = vector.extract_strided_slice %363 {offsets = [0, 32], sizes = [1, 32], strides = [1, 1]} : vector<1x96xf32> to vector<1x32xf32>
    %378 = vector.extract_strided_slice %365 {offsets = [0, 32], sizes = [8, 32], strides = [1, 1]} : vector<8x96xf32> to vector<8x32xf32>
    %379 = vector.broadcast %377 : vector<1x32xf32> to vector<8x32xf32>
    %380 = arith.addf %379, %378 : vector<8x32xf32>
    %cst_98 = arith.constant 0.000000e+00 : f32
    %381 = vector.broadcast %cst_98 : f32 to vector<8x32xf32>
    %382 = arith.subf %381, %380 : vector<8x32xf32>
    %383 = math.exp %382 : vector<8x32xf32>
    %cst_99 = arith.constant 1.000000e+00 : f32
    %384 = vector.broadcast %cst_99 : f32 to vector<8x32xf32>
    %385 = arith.addf %384, %383 : vector<8x32xf32>
    %cst_100 = arith.constant 1.000000e+00 : f32
    %386 = vector.broadcast %cst_100 : f32 to vector<8x32xf32>
    %387 = arith.divf %386, %385 : vector<8x32xf32>
    %388 = vector.extract_strided_slice %363 {offsets = [0, 64], sizes = [1, 32], strides = [1, 1]} : vector<1x96xf32> to vector<1x32xf32>
    %389 = vector.extract_strided_slice %365 {offsets = [0, 64], sizes = [8, 32], strides = [1, 1]} : vector<8x96xf32> to vector<8x32xf32>
    %390 = arith.mulf %376, %389 : vector<8x32xf32>
    %391 = vector.broadcast %388 : vector<1x32xf32> to vector<8x32xf32>
    %392 = arith.addf %391, %390 : vector<8x32xf32>
    %393 = math.tanh %392 : vector<8x32xf32>
    %cst_101 = arith.constant 1.000000e+00 : f32
    %394 = vector.broadcast %cst_101 : f32 to vector<8x32xf32>
    %395 = arith.subf %394, %387 : vector<8x32xf32>
    %396 = arith.mulf %395, %393 : vector<8x32xf32>
    %397 = arith.mulf %387, %302 : vector<8x32xf32>
    %398 = arith.addf %396, %397 : vector<8x32xf32>
    %399 = vector.extract_strided_slice %22 {offsets = [0, 4], sizes = [8, 1], strides = [1, 1]} : vector<8x8xf32> to vector<8x1xf32>
    %400 = vector.broadcast %399 : vector<8x1xf32> to vector<8x32xf32>
    %401 = arith.mulf %398, %400 : vector<8x32xf32>
    %402 = arith.mulf %401, %21 : vector<8x32xf32>
    %cst_102 = arith.constant dense<0.000000e+00> : vector<8xf32>
    %403 = vector.multi_reduction <add>, %402, %cst_102 [1] : vector<8x32xf32> to vector<8xf32>
    %404 = vector.shape_cast %403 : vector<8xf32> to vector<8x1xf32>
    %c3_i32 = arith.constant 3 : i32
    %405 = vector.broadcast %c3_i32 : i32 to vector<1x8xi32>
    %406 = arith.cmpi eq, %23, %405 : vector<1x8xi32>
    %cst_103 = arith.constant 0.000000e+00 : f32
    %407 = vector.shape_cast %406 : vector<1x8xi1> to vector<1x8xi1>
    %408 = vector.broadcast %407 : vector<1x8xi1> to vector<8x8xi1>
    %409 = vector.shape_cast %362 : vector<8x1xf32> to vector<8x1xf32>
    %410 = vector.broadcast %409 : vector<8x1xf32> to vector<8x8xf32>
    %411 = vector.broadcast %cst_103 : f32 to vector<8x8xf32>
    %412 = arith.select %408, %410, %411 : vector<8x8xi1>, vector<8x8xf32>
    %413 = arith.addf %323, %412 : vector<8x8xf32>
    %c4_i32 = arith.constant 4 : i32
    %414 = vector.broadcast %c4_i32 : i32 to vector<1x8xi32>
    %415 = arith.cmpi eq, %23, %414 : vector<1x8xi32>
    %cst_104 = arith.constant 0.000000e+00 : f32
    %416 = vector.shape_cast %415 : vector<1x8xi1> to vector<1x8xi1>
    %417 = vector.broadcast %416 : vector<1x8xi1> to vector<8x8xi1>
    %418 = vector.shape_cast %404 : vector<8x1xf32> to vector<8x1xf32>
    %419 = vector.broadcast %418 : vector<8x1xf32> to vector<8x8xf32>
    %420 = vector.broadcast %cst_104 : f32 to vector<8x8xf32>
    %421 = arith.select %417, %419, %420 : vector<8x8xi1>, vector<8x8xf32>
    %422 = arith.addf %413, %421 : vector<8x8xf32>
    %423 = vector.extract_strided_slice %5 {offsets = [4, 0], sizes = [1, 96], strides = [1, 1]} : vector<8x96xf32> to vector<1x96xf32>
    %cst_105 = arith.constant dense<0.000000e+00> : vector<8x96xf32>
    %424 = tpu.matmul %359, %11, %cst_105 {dimension_numbers = #tpu.dot_dimension_numbers<[1], [0], [0], [1], [0, 0, 1, 1], [], []>} : vector<8x32xf32>, vector<32x96xf32>, vector<8x96xf32> -> vector<8x96xf32>
    %425 = arith.addf %424, %15 : vector<8x96xf32>
    %426 = vector.extract_strided_slice %423 {offsets = [0, 0], sizes = [1, 32], strides = [1, 1]} : vector<1x96xf32> to vector<1x32xf32>
    %427 = vector.extract_strided_slice %425 {offsets = [0, 0], sizes = [8, 32], strides = [1, 1]} : vector<8x96xf32> to vector<8x32xf32>
    %428 = vector.broadcast %426 : vector<1x32xf32> to vector<8x32xf32>
    %429 = arith.addf %428, %427 : vector<8x32xf32>
    %cst_106 = arith.constant 0.000000e+00 : f32
    %430 = vector.broadcast %cst_106 : f32 to vector<8x32xf32>
    %431 = arith.subf %430, %429 : vector<8x32xf32>
    %432 = math.exp %431 : vector<8x32xf32>
    %cst_107 = arith.constant 1.000000e+00 : f32
    %433 = vector.broadcast %cst_107 : f32 to vector<8x32xf32>
    %434 = arith.addf %433, %432 : vector<8x32xf32>
    %cst_108 = arith.constant 1.000000e+00 : f32
    %435 = vector.broadcast %cst_108 : f32 to vector<8x32xf32>
    %436 = arith.divf %435, %434 : vector<8x32xf32>
    %437 = vector.extract_strided_slice %423 {offsets = [0, 32], sizes = [1, 32], strides = [1, 1]} : vector<1x96xf32> to vector<1x32xf32>
    %438 = vector.extract_strided_slice %425 {offsets = [0, 32], sizes = [8, 32], strides = [1, 1]} : vector<8x96xf32> to vector<8x32xf32>
    %439 = vector.broadcast %437 : vector<1x32xf32> to vector<8x32xf32>
    %440 = arith.addf %439, %438 : vector<8x32xf32>
    %cst_109 = arith.constant 0.000000e+00 : f32
    %441 = vector.broadcast %cst_109 : f32 to vector<8x32xf32>
    %442 = arith.subf %441, %440 : vector<8x32xf32>
    %443 = math.exp %442 : vector<8x32xf32>
    %cst_110 = arith.constant 1.000000e+00 : f32
    %444 = vector.broadcast %cst_110 : f32 to vector<8x32xf32>
    %445 = arith.addf %444, %443 : vector<8x32xf32>
    %cst_111 = arith.constant 1.000000e+00 : f32
    %446 = vector.broadcast %cst_111 : f32 to vector<8x32xf32>
    %447 = arith.divf %446, %445 : vector<8x32xf32>
    %448 = vector.extract_strided_slice %423 {offsets = [0, 64], sizes = [1, 32], strides = [1, 1]} : vector<1x96xf32> to vector<1x32xf32>
    %449 = vector.extract_strided_slice %425 {offsets = [0, 64], sizes = [8, 32], strides = [1, 1]} : vector<8x96xf32> to vector<8x32xf32>
    %450 = arith.mulf %436, %449 : vector<8x32xf32>
    %451 = vector.broadcast %448 : vector<1x32xf32> to vector<8x32xf32>
    %452 = arith.addf %451, %450 : vector<8x32xf32>
    %453 = math.tanh %452 : vector<8x32xf32>
    %cst_112 = arith.constant 1.000000e+00 : f32
    %454 = vector.broadcast %cst_112 : f32 to vector<8x32xf32>
    %455 = arith.subf %454, %447 : vector<8x32xf32>
    %456 = arith.mulf %455, %453 : vector<8x32xf32>
    %457 = arith.mulf %447, %359 : vector<8x32xf32>
    %458 = arith.addf %456, %457 : vector<8x32xf32>
    %459 = arith.mulf %458, %21 : vector<8x32xf32>
    %cst_113 = arith.constant dense<0.000000e+00> : vector<8xf32>
    %460 = vector.multi_reduction <add>, %459, %cst_113 [1] : vector<8x32xf32> to vector<8xf32>
    %461 = vector.shape_cast %460 : vector<8xf32> to vector<8x1xf32>
    %462 = vector.extract_strided_slice %10 {offsets = [3, 0], sizes = [1, 96], strides = [1, 1]} : vector<8x96xf32> to vector<1x96xf32>
    %cst_114 = arith.constant dense<0.000000e+00> : vector<8x96xf32>
    %463 = tpu.matmul %401, %12, %cst_114 {dimension_numbers = #tpu.dot_dimension_numbers<[1], [0], [0], [1], [0, 0, 1, 1], [], []>} : vector<8x32xf32>, vector<32x96xf32>, vector<8x96xf32> -> vector<8x96xf32>
    %464 = arith.addf %463, %18 : vector<8x96xf32>
    %465 = vector.extract_strided_slice %462 {offsets = [0, 0], sizes = [1, 32], strides = [1, 1]} : vector<1x96xf32> to vector<1x32xf32>
    %466 = vector.extract_strided_slice %464 {offsets = [0, 0], sizes = [8, 32], strides = [1, 1]} : vector<8x96xf32> to vector<8x32xf32>
    %467 = vector.broadcast %465 : vector<1x32xf32> to vector<8x32xf32>
    %468 = arith.addf %467, %466 : vector<8x32xf32>
    %cst_115 = arith.constant 0.000000e+00 : f32
    %469 = vector.broadcast %cst_115 : f32 to vector<8x32xf32>
    %470 = arith.subf %469, %468 : vector<8x32xf32>
    %471 = math.exp %470 : vector<8x32xf32>
    %cst_116 = arith.constant 1.000000e+00 : f32
    %472 = vector.broadcast %cst_116 : f32 to vector<8x32xf32>
    %473 = arith.addf %472, %471 : vector<8x32xf32>
    %cst_117 = arith.constant 1.000000e+00 : f32
    %474 = vector.broadcast %cst_117 : f32 to vector<8x32xf32>
    %475 = arith.divf %474, %473 : vector<8x32xf32>
    %476 = vector.extract_strided_slice %462 {offsets = [0, 32], sizes = [1, 32], strides = [1, 1]} : vector<1x96xf32> to vector<1x32xf32>
    %477 = vector.extract_strided_slice %464 {offsets = [0, 32], sizes = [8, 32], strides = [1, 1]} : vector<8x96xf32> to vector<8x32xf32>
    %478 = vector.broadcast %476 : vector<1x32xf32> to vector<8x32xf32>
    %479 = arith.addf %478, %477 : vector<8x32xf32>
    %cst_118 = arith.constant 0.000000e+00 : f32
    %480 = vector.broadcast %cst_118 : f32 to vector<8x32xf32>
    %481 = arith.subf %480, %479 : vector<8x32xf32>
    %482 = math.exp %481 : vector<8x32xf32>
    %cst_119 = arith.constant 1.000000e+00 : f32
    %483 = vector.broadcast %cst_119 : f32 to vector<8x32xf32>
    %484 = arith.addf %483, %482 : vector<8x32xf32>
    %cst_120 = arith.constant 1.000000e+00 : f32
    %485 = vector.broadcast %cst_120 : f32 to vector<8x32xf32>
    %486 = arith.divf %485, %484 : vector<8x32xf32>
    %487 = vector.extract_strided_slice %462 {offsets = [0, 64], sizes = [1, 32], strides = [1, 1]} : vector<1x96xf32> to vector<1x32xf32>
    %488 = vector.extract_strided_slice %464 {offsets = [0, 64], sizes = [8, 32], strides = [1, 1]} : vector<8x96xf32> to vector<8x32xf32>
    %489 = arith.mulf %475, %488 : vector<8x32xf32>
    %490 = vector.broadcast %487 : vector<1x32xf32> to vector<8x32xf32>
    %491 = arith.addf %490, %489 : vector<8x32xf32>
    %492 = math.tanh %491 : vector<8x32xf32>
    %cst_121 = arith.constant 1.000000e+00 : f32
    %493 = vector.broadcast %cst_121 : f32 to vector<8x32xf32>
    %494 = arith.subf %493, %486 : vector<8x32xf32>
    %495 = arith.mulf %494, %492 : vector<8x32xf32>
    %496 = arith.mulf %486, %401 : vector<8x32xf32>
    %497 = arith.addf %495, %496 : vector<8x32xf32>
    %498 = vector.extract_strided_slice %22 {offsets = [0, 3], sizes = [8, 1], strides = [1, 1]} : vector<8x8xf32> to vector<8x1xf32>
    %499 = vector.broadcast %498 : vector<8x1xf32> to vector<8x32xf32>
    %500 = arith.mulf %497, %499 : vector<8x32xf32>
    %501 = arith.mulf %500, %21 : vector<8x32xf32>
    %cst_122 = arith.constant dense<0.000000e+00> : vector<8xf32>
    %502 = vector.multi_reduction <add>, %501, %cst_122 [1] : vector<8x32xf32> to vector<8xf32>
    %503 = vector.shape_cast %502 : vector<8xf32> to vector<8x1xf32>
    %c4_i32_123 = arith.constant 4 : i32
    %504 = vector.broadcast %c4_i32_123 : i32 to vector<1x8xi32>
    %505 = arith.cmpi eq, %23, %504 : vector<1x8xi32>
    %cst_124 = arith.constant 0.000000e+00 : f32
    %506 = vector.shape_cast %505 : vector<1x8xi1> to vector<1x8xi1>
    %507 = vector.broadcast %506 : vector<1x8xi1> to vector<8x8xi1>
    %508 = vector.shape_cast %461 : vector<8x1xf32> to vector<8x1xf32>
    %509 = vector.broadcast %508 : vector<8x1xf32> to vector<8x8xf32>
    %510 = vector.broadcast %cst_124 : f32 to vector<8x8xf32>
    %511 = arith.select %507, %509, %510 : vector<8x8xi1>, vector<8x8xf32>
    %512 = arith.addf %422, %511 : vector<8x8xf32>
    %c3_i32_125 = arith.constant 3 : i32
    %513 = vector.broadcast %c3_i32_125 : i32 to vector<1x8xi32>
    %514 = arith.cmpi eq, %23, %513 : vector<1x8xi32>
    %cst_126 = arith.constant 0.000000e+00 : f32
    %515 = vector.shape_cast %514 : vector<1x8xi1> to vector<1x8xi1>
    %516 = vector.broadcast %515 : vector<1x8xi1> to vector<8x8xi1>
    %517 = vector.shape_cast %503 : vector<8x1xf32> to vector<8x1xf32>
    %518 = vector.broadcast %517 : vector<8x1xf32> to vector<8x8xf32>
    %519 = vector.broadcast %cst_126 : f32 to vector<8x8xf32>
    %520 = arith.select %516, %518, %519 : vector<8x8xi1>, vector<8x8xf32>
    %521 = arith.addf %512, %520 : vector<8x8xf32>
    %522 = vector.extract_strided_slice %5 {offsets = [5, 0], sizes = [1, 96], strides = [1, 1]} : vector<8x96xf32> to vector<1x96xf32>
    %cst_127 = arith.constant dense<0.000000e+00> : vector<8x96xf32>
    %523 = tpu.matmul %458, %11, %cst_127 {dimension_numbers = #tpu.dot_dimension_numbers<[1], [0], [0], [1], [0, 0, 1, 1], [], []>} : vector<8x32xf32>, vector<32x96xf32>, vector<8x96xf32> -> vector<8x96xf32>
    %524 = arith.addf %523, %15 : vector<8x96xf32>
    %525 = vector.extract_strided_slice %522 {offsets = [0, 0], sizes = [1, 32], strides = [1, 1]} : vector<1x96xf32> to vector<1x32xf32>
    %526 = vector.extract_strided_slice %524 {offsets = [0, 0], sizes = [8, 32], strides = [1, 1]} : vector<8x96xf32> to vector<8x32xf32>
    %527 = vector.broadcast %525 : vector<1x32xf32> to vector<8x32xf32>
    %528 = arith.addf %527, %526 : vector<8x32xf32>
    %cst_128 = arith.constant 0.000000e+00 : f32
    %529 = vector.broadcast %cst_128 : f32 to vector<8x32xf32>
    %530 = arith.subf %529, %528 : vector<8x32xf32>
    %531 = math.exp %530 : vector<8x32xf32>
    %cst_129 = arith.constant 1.000000e+00 : f32
    %532 = vector.broadcast %cst_129 : f32 to vector<8x32xf32>
    %533 = arith.addf %532, %531 : vector<8x32xf32>
    %cst_130 = arith.constant 1.000000e+00 : f32
    %534 = vector.broadcast %cst_130 : f32 to vector<8x32xf32>
    %535 = arith.divf %534, %533 : vector<8x32xf32>
    %536 = vector.extract_strided_slice %522 {offsets = [0, 32], sizes = [1, 32], strides = [1, 1]} : vector<1x96xf32> to vector<1x32xf32>
    %537 = vector.extract_strided_slice %524 {offsets = [0, 32], sizes = [8, 32], strides = [1, 1]} : vector<8x96xf32> to vector<8x32xf32>
    %538 = vector.broadcast %536 : vector<1x32xf32> to vector<8x32xf32>
    %539 = arith.addf %538, %537 : vector<8x32xf32>
    %cst_131 = arith.constant 0.000000e+00 : f32
    %540 = vector.broadcast %cst_131 : f32 to vector<8x32xf32>
    %541 = arith.subf %540, %539 : vector<8x32xf32>
    %542 = math.exp %541 : vector<8x32xf32>
    %cst_132 = arith.constant 1.000000e+00 : f32
    %543 = vector.broadcast %cst_132 : f32 to vector<8x32xf32>
    %544 = arith.addf %543, %542 : vector<8x32xf32>
    %cst_133 = arith.constant 1.000000e+00 : f32
    %545 = vector.broadcast %cst_133 : f32 to vector<8x32xf32>
    %546 = arith.divf %545, %544 : vector<8x32xf32>
    %547 = vector.extract_strided_slice %522 {offsets = [0, 64], sizes = [1, 32], strides = [1, 1]} : vector<1x96xf32> to vector<1x32xf32>
    %548 = vector.extract_strided_slice %524 {offsets = [0, 64], sizes = [8, 32], strides = [1, 1]} : vector<8x96xf32> to vector<8x32xf32>
    %549 = arith.mulf %535, %548 : vector<8x32xf32>
    %550 = vector.broadcast %547 : vector<1x32xf32> to vector<8x32xf32>
    %551 = arith.addf %550, %549 : vector<8x32xf32>
    %552 = math.tanh %551 : vector<8x32xf32>
    %cst_134 = arith.constant 1.000000e+00 : f32
    %553 = vector.broadcast %cst_134 : f32 to vector<8x32xf32>
    %554 = arith.subf %553, %546 : vector<8x32xf32>
    %555 = arith.mulf %554, %552 : vector<8x32xf32>
    %556 = arith.mulf %546, %458 : vector<8x32xf32>
    %557 = arith.addf %555, %556 : vector<8x32xf32>
    %558 = arith.mulf %557, %21 : vector<8x32xf32>
    %cst_135 = arith.constant dense<0.000000e+00> : vector<8xf32>
    %559 = vector.multi_reduction <add>, %558, %cst_135 [1] : vector<8x32xf32> to vector<8xf32>
    %560 = vector.shape_cast %559 : vector<8xf32> to vector<8x1xf32>
    %561 = vector.extract_strided_slice %10 {offsets = [2, 0], sizes = [1, 96], strides = [1, 1]} : vector<8x96xf32> to vector<1x96xf32>
    %cst_136 = arith.constant dense<0.000000e+00> : vector<8x96xf32>
    %562 = tpu.matmul %500, %12, %cst_136 {dimension_numbers = #tpu.dot_dimension_numbers<[1], [0], [0], [1], [0, 0, 1, 1], [], []>} : vector<8x32xf32>, vector<32x96xf32>, vector<8x96xf32> -> vector<8x96xf32>
    %563 = arith.addf %562, %18 : vector<8x96xf32>
    %564 = vector.extract_strided_slice %561 {offsets = [0, 0], sizes = [1, 32], strides = [1, 1]} : vector<1x96xf32> to vector<1x32xf32>
    %565 = vector.extract_strided_slice %563 {offsets = [0, 0], sizes = [8, 32], strides = [1, 1]} : vector<8x96xf32> to vector<8x32xf32>
    %566 = vector.broadcast %564 : vector<1x32xf32> to vector<8x32xf32>
    %567 = arith.addf %566, %565 : vector<8x32xf32>
    %cst_137 = arith.constant 0.000000e+00 : f32
    %568 = vector.broadcast %cst_137 : f32 to vector<8x32xf32>
    %569 = arith.subf %568, %567 : vector<8x32xf32>
    %570 = math.exp %569 : vector<8x32xf32>
    %cst_138 = arith.constant 1.000000e+00 : f32
    %571 = vector.broadcast %cst_138 : f32 to vector<8x32xf32>
    %572 = arith.addf %571, %570 : vector<8x32xf32>
    %cst_139 = arith.constant 1.000000e+00 : f32
    %573 = vector.broadcast %cst_139 : f32 to vector<8x32xf32>
    %574 = arith.divf %573, %572 : vector<8x32xf32>
    %575 = vector.extract_strided_slice %561 {offsets = [0, 32], sizes = [1, 32], strides = [1, 1]} : vector<1x96xf32> to vector<1x32xf32>
    %576 = vector.extract_strided_slice %563 {offsets = [0, 32], sizes = [8, 32], strides = [1, 1]} : vector<8x96xf32> to vector<8x32xf32>
    %577 = vector.broadcast %575 : vector<1x32xf32> to vector<8x32xf32>
    %578 = arith.addf %577, %576 : vector<8x32xf32>
    %cst_140 = arith.constant 0.000000e+00 : f32
    %579 = vector.broadcast %cst_140 : f32 to vector<8x32xf32>
    %580 = arith.subf %579, %578 : vector<8x32xf32>
    %581 = math.exp %580 : vector<8x32xf32>
    %cst_141 = arith.constant 1.000000e+00 : f32
    %582 = vector.broadcast %cst_141 : f32 to vector<8x32xf32>
    %583 = arith.addf %582, %581 : vector<8x32xf32>
    %cst_142 = arith.constant 1.000000e+00 : f32
    %584 = vector.broadcast %cst_142 : f32 to vector<8x32xf32>
    %585 = arith.divf %584, %583 : vector<8x32xf32>
    %586 = vector.extract_strided_slice %561 {offsets = [0, 64], sizes = [1, 32], strides = [1, 1]} : vector<1x96xf32> to vector<1x32xf32>
    %587 = vector.extract_strided_slice %563 {offsets = [0, 64], sizes = [8, 32], strides = [1, 1]} : vector<8x96xf32> to vector<8x32xf32>
    %588 = arith.mulf %574, %587 : vector<8x32xf32>
    %589 = vector.broadcast %586 : vector<1x32xf32> to vector<8x32xf32>
    %590 = arith.addf %589, %588 : vector<8x32xf32>
    %591 = math.tanh %590 : vector<8x32xf32>
    %cst_143 = arith.constant 1.000000e+00 : f32
    %592 = vector.broadcast %cst_143 : f32 to vector<8x32xf32>
    %593 = arith.subf %592, %585 : vector<8x32xf32>
    %594 = arith.mulf %593, %591 : vector<8x32xf32>
    %595 = arith.mulf %585, %500 : vector<8x32xf32>
    %596 = arith.addf %594, %595 : vector<8x32xf32>
    %597 = vector.extract_strided_slice %22 {offsets = [0, 2], sizes = [8, 1], strides = [1, 1]} : vector<8x8xf32> to vector<8x1xf32>
    %598 = vector.broadcast %597 : vector<8x1xf32> to vector<8x32xf32>
    %599 = arith.mulf %596, %598 : vector<8x32xf32>
    %600 = arith.mulf %599, %21 : vector<8x32xf32>
    %cst_144 = arith.constant dense<0.000000e+00> : vector<8xf32>
    %601 = vector.multi_reduction <add>, %600, %cst_144 [1] : vector<8x32xf32> to vector<8xf32>
    %602 = vector.shape_cast %601 : vector<8xf32> to vector<8x1xf32>
    %c5_i32_145 = arith.constant 5 : i32
    %603 = vector.broadcast %c5_i32_145 : i32 to vector<1x8xi32>
    %604 = arith.cmpi eq, %23, %603 : vector<1x8xi32>
    %cst_146 = arith.constant 0.000000e+00 : f32
    %605 = vector.shape_cast %604 : vector<1x8xi1> to vector<1x8xi1>
    %606 = vector.broadcast %605 : vector<1x8xi1> to vector<8x8xi1>
    %607 = vector.shape_cast %560 : vector<8x1xf32> to vector<8x1xf32>
    %608 = vector.broadcast %607 : vector<8x1xf32> to vector<8x8xf32>
    %609 = vector.broadcast %cst_146 : f32 to vector<8x8xf32>
    %610 = arith.select %606, %608, %609 : vector<8x8xi1>, vector<8x8xf32>
    %611 = arith.addf %521, %610 : vector<8x8xf32>
    %c2_i32_147 = arith.constant 2 : i32
    %612 = vector.broadcast %c2_i32_147 : i32 to vector<1x8xi32>
    %613 = arith.cmpi eq, %23, %612 : vector<1x8xi32>
    %cst_148 = arith.constant 0.000000e+00 : f32
    %614 = vector.shape_cast %613 : vector<1x8xi1> to vector<1x8xi1>
    %615 = vector.broadcast %614 : vector<1x8xi1> to vector<8x8xi1>
    %616 = vector.shape_cast %602 : vector<8x1xf32> to vector<8x1xf32>
    %617 = vector.broadcast %616 : vector<8x1xf32> to vector<8x8xf32>
    %618 = vector.broadcast %cst_148 : f32 to vector<8x8xf32>
    %619 = arith.select %615, %617, %618 : vector<8x8xi1>, vector<8x8xf32>
    %620 = arith.addf %611, %619 : vector<8x8xf32>
    %621 = vector.extract_strided_slice %5 {offsets = [6, 0], sizes = [1, 96], strides = [1, 1]} : vector<8x96xf32> to vector<1x96xf32>
    %cst_149 = arith.constant dense<0.000000e+00> : vector<8x96xf32>
    %622 = tpu.matmul %557, %11, %cst_149 {dimension_numbers = #tpu.dot_dimension_numbers<[1], [0], [0], [1], [0, 0, 1, 1], [], []>} : vector<8x32xf32>, vector<32x96xf32>, vector<8x96xf32> -> vector<8x96xf32>
    %623 = arith.addf %622, %15 : vector<8x96xf32>
    %624 = vector.extract_strided_slice %621 {offsets = [0, 0], sizes = [1, 32], strides = [1, 1]} : vector<1x96xf32> to vector<1x32xf32>
    %625 = vector.extract_strided_slice %623 {offsets = [0, 0], sizes = [8, 32], strides = [1, 1]} : vector<8x96xf32> to vector<8x32xf32>
    %626 = vector.broadcast %624 : vector<1x32xf32> to vector<8x32xf32>
    %627 = arith.addf %626, %625 : vector<8x32xf32>
    %cst_150 = arith.constant 0.000000e+00 : f32
    %628 = vector.broadcast %cst_150 : f32 to vector<8x32xf32>
    %629 = arith.subf %628, %627 : vector<8x32xf32>
    %630 = math.exp %629 : vector<8x32xf32>
    %cst_151 = arith.constant 1.000000e+00 : f32
    %631 = vector.broadcast %cst_151 : f32 to vector<8x32xf32>
    %632 = arith.addf %631, %630 : vector<8x32xf32>
    %cst_152 = arith.constant 1.000000e+00 : f32
    %633 = vector.broadcast %cst_152 : f32 to vector<8x32xf32>
    %634 = arith.divf %633, %632 : vector<8x32xf32>
    %635 = vector.extract_strided_slice %621 {offsets = [0, 32], sizes = [1, 32], strides = [1, 1]} : vector<1x96xf32> to vector<1x32xf32>
    %636 = vector.extract_strided_slice %623 {offsets = [0, 32], sizes = [8, 32], strides = [1, 1]} : vector<8x96xf32> to vector<8x32xf32>
    %637 = vector.broadcast %635 : vector<1x32xf32> to vector<8x32xf32>
    %638 = arith.addf %637, %636 : vector<8x32xf32>
    %cst_153 = arith.constant 0.000000e+00 : f32
    %639 = vector.broadcast %cst_153 : f32 to vector<8x32xf32>
    %640 = arith.subf %639, %638 : vector<8x32xf32>
    %641 = math.exp %640 : vector<8x32xf32>
    %cst_154 = arith.constant 1.000000e+00 : f32
    %642 = vector.broadcast %cst_154 : f32 to vector<8x32xf32>
    %643 = arith.addf %642, %641 : vector<8x32xf32>
    %cst_155 = arith.constant 1.000000e+00 : f32
    %644 = vector.broadcast %cst_155 : f32 to vector<8x32xf32>
    %645 = arith.divf %644, %643 : vector<8x32xf32>
    %646 = vector.extract_strided_slice %621 {offsets = [0, 64], sizes = [1, 32], strides = [1, 1]} : vector<1x96xf32> to vector<1x32xf32>
    %647 = vector.extract_strided_slice %623 {offsets = [0, 64], sizes = [8, 32], strides = [1, 1]} : vector<8x96xf32> to vector<8x32xf32>
    %648 = arith.mulf %634, %647 : vector<8x32xf32>
    %649 = vector.broadcast %646 : vector<1x32xf32> to vector<8x32xf32>
    %650 = arith.addf %649, %648 : vector<8x32xf32>
    %651 = math.tanh %650 : vector<8x32xf32>
    %cst_156 = arith.constant 1.000000e+00 : f32
    %652 = vector.broadcast %cst_156 : f32 to vector<8x32xf32>
    %653 = arith.subf %652, %645 : vector<8x32xf32>
    %654 = arith.mulf %653, %651 : vector<8x32xf32>
    %655 = arith.mulf %645, %557 : vector<8x32xf32>
    %656 = arith.addf %654, %655 : vector<8x32xf32>
    %657 = arith.mulf %656, %21 : vector<8x32xf32>
    %cst_157 = arith.constant dense<0.000000e+00> : vector<8xf32>
    %658 = vector.multi_reduction <add>, %657, %cst_157 [1] : vector<8x32xf32> to vector<8xf32>
    %659 = vector.shape_cast %658 : vector<8xf32> to vector<8x1xf32>
    %660 = vector.extract_strided_slice %10 {offsets = [1, 0], sizes = [1, 96], strides = [1, 1]} : vector<8x96xf32> to vector<1x96xf32>
    %cst_158 = arith.constant dense<0.000000e+00> : vector<8x96xf32>
    %661 = tpu.matmul %599, %12, %cst_158 {dimension_numbers = #tpu.dot_dimension_numbers<[1], [0], [0], [1], [0, 0, 1, 1], [], []>} : vector<8x32xf32>, vector<32x96xf32>, vector<8x96xf32> -> vector<8x96xf32>
    %662 = arith.addf %661, %18 : vector<8x96xf32>
    %663 = vector.extract_strided_slice %660 {offsets = [0, 0], sizes = [1, 32], strides = [1, 1]} : vector<1x96xf32> to vector<1x32xf32>
    %664 = vector.extract_strided_slice %662 {offsets = [0, 0], sizes = [8, 32], strides = [1, 1]} : vector<8x96xf32> to vector<8x32xf32>
    %665 = vector.broadcast %663 : vector<1x32xf32> to vector<8x32xf32>
    %666 = arith.addf %665, %664 : vector<8x32xf32>
    %cst_159 = arith.constant 0.000000e+00 : f32
    %667 = vector.broadcast %cst_159 : f32 to vector<8x32xf32>
    %668 = arith.subf %667, %666 : vector<8x32xf32>
    %669 = math.exp %668 : vector<8x32xf32>
    %cst_160 = arith.constant 1.000000e+00 : f32
    %670 = vector.broadcast %cst_160 : f32 to vector<8x32xf32>
    %671 = arith.addf %670, %669 : vector<8x32xf32>
    %cst_161 = arith.constant 1.000000e+00 : f32
    %672 = vector.broadcast %cst_161 : f32 to vector<8x32xf32>
    %673 = arith.divf %672, %671 : vector<8x32xf32>
    %674 = vector.extract_strided_slice %660 {offsets = [0, 32], sizes = [1, 32], strides = [1, 1]} : vector<1x96xf32> to vector<1x32xf32>
    %675 = vector.extract_strided_slice %662 {offsets = [0, 32], sizes = [8, 32], strides = [1, 1]} : vector<8x96xf32> to vector<8x32xf32>
    %676 = vector.broadcast %674 : vector<1x32xf32> to vector<8x32xf32>
    %677 = arith.addf %676, %675 : vector<8x32xf32>
    %cst_162 = arith.constant 0.000000e+00 : f32
    %678 = vector.broadcast %cst_162 : f32 to vector<8x32xf32>
    %679 = arith.subf %678, %677 : vector<8x32xf32>
    %680 = math.exp %679 : vector<8x32xf32>
    %cst_163 = arith.constant 1.000000e+00 : f32
    %681 = vector.broadcast %cst_163 : f32 to vector<8x32xf32>
    %682 = arith.addf %681, %680 : vector<8x32xf32>
    %cst_164 = arith.constant 1.000000e+00 : f32
    %683 = vector.broadcast %cst_164 : f32 to vector<8x32xf32>
    %684 = arith.divf %683, %682 : vector<8x32xf32>
    %685 = vector.extract_strided_slice %660 {offsets = [0, 64], sizes = [1, 32], strides = [1, 1]} : vector<1x96xf32> to vector<1x32xf32>
    %686 = vector.extract_strided_slice %662 {offsets = [0, 64], sizes = [8, 32], strides = [1, 1]} : vector<8x96xf32> to vector<8x32xf32>
    %687 = arith.mulf %673, %686 : vector<8x32xf32>
    %688 = vector.broadcast %685 : vector<1x32xf32> to vector<8x32xf32>
    %689 = arith.addf %688, %687 : vector<8x32xf32>
    %690 = math.tanh %689 : vector<8x32xf32>
    %cst_165 = arith.constant 1.000000e+00 : f32
    %691 = vector.broadcast %cst_165 : f32 to vector<8x32xf32>
    %692 = arith.subf %691, %684 : vector<8x32xf32>
    %693 = arith.mulf %692, %690 : vector<8x32xf32>
    %694 = arith.mulf %684, %599 : vector<8x32xf32>
    %695 = arith.addf %693, %694 : vector<8x32xf32>
    %696 = vector.extract_strided_slice %22 {offsets = [0, 1], sizes = [8, 1], strides = [1, 1]} : vector<8x8xf32> to vector<8x1xf32>
    %697 = vector.broadcast %696 : vector<8x1xf32> to vector<8x32xf32>
    %698 = arith.mulf %695, %697 : vector<8x32xf32>
    %699 = arith.mulf %698, %21 : vector<8x32xf32>
    %cst_166 = arith.constant dense<0.000000e+00> : vector<8xf32>
    %700 = vector.multi_reduction <add>, %699, %cst_166 [1] : vector<8x32xf32> to vector<8xf32>
    %701 = vector.shape_cast %700 : vector<8xf32> to vector<8x1xf32>
    %c6_i32_167 = arith.constant 6 : i32
    %702 = vector.broadcast %c6_i32_167 : i32 to vector<1x8xi32>
    %703 = arith.cmpi eq, %23, %702 : vector<1x8xi32>
    %cst_168 = arith.constant 0.000000e+00 : f32
    %704 = vector.shape_cast %703 : vector<1x8xi1> to vector<1x8xi1>
    %705 = vector.broadcast %704 : vector<1x8xi1> to vector<8x8xi1>
    %706 = vector.shape_cast %659 : vector<8x1xf32> to vector<8x1xf32>
    %707 = vector.broadcast %706 : vector<8x1xf32> to vector<8x8xf32>
    %708 = vector.broadcast %cst_168 : f32 to vector<8x8xf32>
    %709 = arith.select %705, %707, %708 : vector<8x8xi1>, vector<8x8xf32>
    %710 = arith.addf %620, %709 : vector<8x8xf32>
    %c1_i32_169 = arith.constant 1 : i32
    %711 = vector.broadcast %c1_i32_169 : i32 to vector<1x8xi32>
    %712 = arith.cmpi eq, %23, %711 : vector<1x8xi32>
    %cst_170 = arith.constant 0.000000e+00 : f32
    %713 = vector.shape_cast %712 : vector<1x8xi1> to vector<1x8xi1>
    %714 = vector.broadcast %713 : vector<1x8xi1> to vector<8x8xi1>
    %715 = vector.shape_cast %701 : vector<8x1xf32> to vector<8x1xf32>
    %716 = vector.broadcast %715 : vector<8x1xf32> to vector<8x8xf32>
    %717 = vector.broadcast %cst_170 : f32 to vector<8x8xf32>
    %718 = arith.select %714, %716, %717 : vector<8x8xi1>, vector<8x8xf32>
    %719 = arith.addf %710, %718 : vector<8x8xf32>
    %720 = vector.extract_strided_slice %5 {offsets = [7, 0], sizes = [1, 96], strides = [1, 1]} : vector<8x96xf32> to vector<1x96xf32>
    %cst_171 = arith.constant dense<0.000000e+00> : vector<8x96xf32>
    %721 = tpu.matmul %656, %11, %cst_171 {dimension_numbers = #tpu.dot_dimension_numbers<[1], [0], [0], [1], [0, 0, 1, 1], [], []>} : vector<8x32xf32>, vector<32x96xf32>, vector<8x96xf32> -> vector<8x96xf32>
    %722 = arith.addf %721, %15 : vector<8x96xf32>
    %723 = vector.extract_strided_slice %720 {offsets = [0, 0], sizes = [1, 32], strides = [1, 1]} : vector<1x96xf32> to vector<1x32xf32>
    %724 = vector.extract_strided_slice %722 {offsets = [0, 0], sizes = [8, 32], strides = [1, 1]} : vector<8x96xf32> to vector<8x32xf32>
    %725 = vector.broadcast %723 : vector<1x32xf32> to vector<8x32xf32>
    %726 = arith.addf %725, %724 : vector<8x32xf32>
    %cst_172 = arith.constant 0.000000e+00 : f32
    %727 = vector.broadcast %cst_172 : f32 to vector<8x32xf32>
    %728 = arith.subf %727, %726 : vector<8x32xf32>
    %729 = math.exp %728 : vector<8x32xf32>
    %cst_173 = arith.constant 1.000000e+00 : f32
    %730 = vector.broadcast %cst_173 : f32 to vector<8x32xf32>
    %731 = arith.addf %730, %729 : vector<8x32xf32>
    %cst_174 = arith.constant 1.000000e+00 : f32
    %732 = vector.broadcast %cst_174 : f32 to vector<8x32xf32>
    %733 = arith.divf %732, %731 : vector<8x32xf32>
    %734 = vector.extract_strided_slice %720 {offsets = [0, 32], sizes = [1, 32], strides = [1, 1]} : vector<1x96xf32> to vector<1x32xf32>
    %735 = vector.extract_strided_slice %722 {offsets = [0, 32], sizes = [8, 32], strides = [1, 1]} : vector<8x96xf32> to vector<8x32xf32>
    %736 = vector.broadcast %734 : vector<1x32xf32> to vector<8x32xf32>
    %737 = arith.addf %736, %735 : vector<8x32xf32>
    %cst_175 = arith.constant 0.000000e+00 : f32
    %738 = vector.broadcast %cst_175 : f32 to vector<8x32xf32>
    %739 = arith.subf %738, %737 : vector<8x32xf32>
    %740 = math.exp %739 : vector<8x32xf32>
    %cst_176 = arith.constant 1.000000e+00 : f32
    %741 = vector.broadcast %cst_176 : f32 to vector<8x32xf32>
    %742 = arith.addf %741, %740 : vector<8x32xf32>
    %cst_177 = arith.constant 1.000000e+00 : f32
    %743 = vector.broadcast %cst_177 : f32 to vector<8x32xf32>
    %744 = arith.divf %743, %742 : vector<8x32xf32>
    %745 = vector.extract_strided_slice %720 {offsets = [0, 64], sizes = [1, 32], strides = [1, 1]} : vector<1x96xf32> to vector<1x32xf32>
    %746 = vector.extract_strided_slice %722 {offsets = [0, 64], sizes = [8, 32], strides = [1, 1]} : vector<8x96xf32> to vector<8x32xf32>
    %747 = arith.mulf %733, %746 : vector<8x32xf32>
    %748 = vector.broadcast %745 : vector<1x32xf32> to vector<8x32xf32>
    %749 = arith.addf %748, %747 : vector<8x32xf32>
    %750 = math.tanh %749 : vector<8x32xf32>
    %cst_178 = arith.constant 1.000000e+00 : f32
    %751 = vector.broadcast %cst_178 : f32 to vector<8x32xf32>
    %752 = arith.subf %751, %744 : vector<8x32xf32>
    %753 = arith.mulf %752, %750 : vector<8x32xf32>
    %754 = arith.mulf %744, %656 : vector<8x32xf32>
    %755 = arith.addf %753, %754 : vector<8x32xf32>
    %756 = arith.mulf %755, %21 : vector<8x32xf32>
    %cst_179 = arith.constant dense<0.000000e+00> : vector<8xf32>
    %757 = vector.multi_reduction <add>, %756, %cst_179 [1] : vector<8x32xf32> to vector<8xf32>
    %758 = vector.shape_cast %757 : vector<8xf32> to vector<8x1xf32>
    %759 = vector.extract_strided_slice %10 {offsets = [0, 0], sizes = [1, 96], strides = [1, 1]} : vector<8x96xf32> to vector<1x96xf32>
    %cst_180 = arith.constant dense<0.000000e+00> : vector<8x96xf32>
    %760 = tpu.matmul %698, %12, %cst_180 {dimension_numbers = #tpu.dot_dimension_numbers<[1], [0], [0], [1], [0, 0, 1, 1], [], []>} : vector<8x32xf32>, vector<32x96xf32>, vector<8x96xf32> -> vector<8x96xf32>
    %761 = arith.addf %760, %18 : vector<8x96xf32>
    %762 = vector.extract_strided_slice %759 {offsets = [0, 0], sizes = [1, 32], strides = [1, 1]} : vector<1x96xf32> to vector<1x32xf32>
    %763 = vector.extract_strided_slice %761 {offsets = [0, 0], sizes = [8, 32], strides = [1, 1]} : vector<8x96xf32> to vector<8x32xf32>
    %764 = vector.broadcast %762 : vector<1x32xf32> to vector<8x32xf32>
    %765 = arith.addf %764, %763 : vector<8x32xf32>
    %cst_181 = arith.constant 0.000000e+00 : f32
    %766 = vector.broadcast %cst_181 : f32 to vector<8x32xf32>
    %767 = arith.subf %766, %765 : vector<8x32xf32>
    %768 = math.exp %767 : vector<8x32xf32>
    %cst_182 = arith.constant 1.000000e+00 : f32
    %769 = vector.broadcast %cst_182 : f32 to vector<8x32xf32>
    %770 = arith.addf %769, %768 : vector<8x32xf32>
    %cst_183 = arith.constant 1.000000e+00 : f32
    %771 = vector.broadcast %cst_183 : f32 to vector<8x32xf32>
    %772 = arith.divf %771, %770 : vector<8x32xf32>
    %773 = vector.extract_strided_slice %759 {offsets = [0, 32], sizes = [1, 32], strides = [1, 1]} : vector<1x96xf32> to vector<1x32xf32>
    %774 = vector.extract_strided_slice %761 {offsets = [0, 32], sizes = [8, 32], strides = [1, 1]} : vector<8x96xf32> to vector<8x32xf32>
    %775 = vector.broadcast %773 : vector<1x32xf32> to vector<8x32xf32>
    %776 = arith.addf %775, %774 : vector<8x32xf32>
    %cst_184 = arith.constant 0.000000e+00 : f32
    %777 = vector.broadcast %cst_184 : f32 to vector<8x32xf32>
    %778 = arith.subf %777, %776 : vector<8x32xf32>
    %779 = math.exp %778 : vector<8x32xf32>
    %cst_185 = arith.constant 1.000000e+00 : f32
    %780 = vector.broadcast %cst_185 : f32 to vector<8x32xf32>
    %781 = arith.addf %780, %779 : vector<8x32xf32>
    %cst_186 = arith.constant 1.000000e+00 : f32
    %782 = vector.broadcast %cst_186 : f32 to vector<8x32xf32>
    %783 = arith.divf %782, %781 : vector<8x32xf32>
    %784 = vector.extract_strided_slice %759 {offsets = [0, 64], sizes = [1, 32], strides = [1, 1]} : vector<1x96xf32> to vector<1x32xf32>
    %785 = vector.extract_strided_slice %761 {offsets = [0, 64], sizes = [8, 32], strides = [1, 1]} : vector<8x96xf32> to vector<8x32xf32>
    %786 = arith.mulf %772, %785 : vector<8x32xf32>
    %787 = vector.broadcast %784 : vector<1x32xf32> to vector<8x32xf32>
    %788 = arith.addf %787, %786 : vector<8x32xf32>
    %789 = math.tanh %788 : vector<8x32xf32>
    %cst_187 = arith.constant 1.000000e+00 : f32
    %790 = vector.broadcast %cst_187 : f32 to vector<8x32xf32>
    %791 = arith.subf %790, %783 : vector<8x32xf32>
    %792 = arith.mulf %791, %789 : vector<8x32xf32>
    %793 = arith.mulf %783, %698 : vector<8x32xf32>
    %794 = arith.addf %792, %793 : vector<8x32xf32>
    %795 = vector.extract_strided_slice %22 {offsets = [0, 0], sizes = [8, 1], strides = [1, 1]} : vector<8x8xf32> to vector<8x1xf32>
    %796 = vector.broadcast %795 : vector<8x1xf32> to vector<8x32xf32>
    %797 = arith.mulf %794, %796 : vector<8x32xf32>
    %798 = arith.mulf %797, %21 : vector<8x32xf32>
    %cst_188 = arith.constant dense<0.000000e+00> : vector<8xf32>
    %799 = vector.multi_reduction <add>, %798, %cst_188 [1] : vector<8x32xf32> to vector<8xf32>
    %800 = vector.shape_cast %799 : vector<8xf32> to vector<8x1xf32>
    %c7_i32_189 = arith.constant 7 : i32
    %801 = vector.broadcast %c7_i32_189 : i32 to vector<1x8xi32>
    %802 = arith.cmpi eq, %23, %801 : vector<1x8xi32>
    %cst_190 = arith.constant 0.000000e+00 : f32
    %803 = vector.shape_cast %802 : vector<1x8xi1> to vector<1x8xi1>
    %804 = vector.broadcast %803 : vector<1x8xi1> to vector<8x8xi1>
    %805 = vector.shape_cast %758 : vector<8x1xf32> to vector<8x1xf32>
    %806 = vector.broadcast %805 : vector<8x1xf32> to vector<8x8xf32>
    %807 = vector.broadcast %cst_190 : f32 to vector<8x8xf32>
    %808 = arith.select %804, %806, %807 : vector<8x8xi1>, vector<8x8xf32>
    %809 = arith.addf %719, %808 : vector<8x8xf32>
    %c0_i32_191 = arith.constant 0 : i32
    %810 = vector.broadcast %c0_i32_191 : i32 to vector<1x8xi32>
    %811 = arith.cmpi eq, %23, %810 : vector<1x8xi32>
    %cst_192 = arith.constant 0.000000e+00 : f32
    %812 = vector.shape_cast %811 : vector<1x8xi1> to vector<1x8xi1>
    %813 = vector.broadcast %812 : vector<1x8xi1> to vector<8x8xi1>
    %814 = vector.shape_cast %800 : vector<8x1xf32> to vector<8x1xf32>
    %815 = vector.broadcast %814 : vector<8x1xf32> to vector<8x8xf32>
    %816 = vector.broadcast %cst_192 : f32 to vector<8x8xf32>
    %817 = arith.select %813, %815, %816 : vector<8x8xi1>, vector<8x8xf32>
    %818 = arith.addf %809, %817 : vector<8x8xf32>
    %cst_193 = arith.constant 5.000000e-01 : f32
    %819 = vector.broadcast %cst_193 : f32 to vector<8x8xf32>
    %820 = arith.mulf %819, %818 : vector<8x8xf32>
    %cst_194 = arith.constant 5.000000e-01 : f32
    %821 = vector.broadcast %cst_194 : f32 to vector<8x8xf32>
    %822 = arith.cmpf ogt, %22, %821 : vector<8x8xf32>
    %cst_195 = arith.constant -1.000000e+04 : f32
    %823 = vector.broadcast %cst_195 : f32 to vector<8x8xf32>
    %824 = arith.select %822, %820, %823 : vector<8x8xi1>, vector<8x8xf32>
    %cst_196 = arith.constant 1.000000e+01 : f32
    %825 = vector.broadcast %cst_196 : f32 to vector<8x8xf32>
    %826 = arith.mulf %824, %825 : vector<8x8xf32>
    %cst_197 = arith.constant dense<0xFF800000> : vector<8xf32>
    %827 = vector.multi_reduction <maximumf>, %826, %cst_197 [1] : vector<8x8xf32> to vector<8xf32>
    %828 = vector.shape_cast %827 : vector<8xf32> to vector<8x1xf32>
    %829 = vector.broadcast %828 : vector<8x1xf32> to vector<8x8xf32>
    %830 = arith.subf %826, %829 : vector<8x8xf32>
    %831 = math.exp %830 : vector<8x8xf32>
    %cst_198 = arith.constant dense<0.000000e+00> : vector<8xf32>
    %832 = vector.multi_reduction <add>, %831, %cst_198 [1] : vector<8x8xf32> to vector<8xf32>
    %833 = vector.shape_cast %832 : vector<8xf32> to vector<8x1xf32>
    %834 = vector.broadcast %833 : vector<8x1xf32> to vector<8x8xf32>
    %835 = arith.divf %831, %834 : vector<8x8xf32>
    %c0_199 = arith.constant 0 : index
    %c0_200 = arith.constant 0 : index
    %836 = vector.load %arg11[%c0_199, %c0_200] : memref<8x8xf32, #tpu.memory_space<vmem>>, vector<8x8xf32>
    tpu.vector_store %arg11[%c0_199, %c0_200], %835 {strides = array<i32>} : memref<8x8xf32, #tpu.memory_space<vmem>>, vector<8x8xf32>,
    return
  }
}

module attributes {stable_mosaic.version = 11 : i64} {
  func.func @_pool_l2norm_kernel(%arg0: i32, %arg1: memref<8x8x32xf32, #tpu.memory_space<vmem>>, %arg2: memref<8x8x1xf32, #tpu.memory_space<vmem>>, %arg3: memref<8x32xf32, #tpu.memory_space<vmem>>) attributes {dimension_semantics = [#tpu.dimension_semantics<parallel>], iteration_bounds = array<i64: 1>, scalar_prefetch = 0 : i64, scratch_operands = 0 : i64, tpu.core_type = #tpu.core_type<tc>, window_params = [{transform_indices = @transform_0, window_bounds = array<i64: 8, 8, 32>}, {transform_indices = @transform_1, window_bounds = array<i64: 8, 8, 1>}, {transform_indices = @transform_2, window_bounds = array<i64: 8, 32>}]} {
    %c0 = arith.constant 0 : index
    %c0_0 = arith.constant 0 : index
    %c0_1 = arith.constant 0 : index
    %0 = vector.load %arg1[%c0, %c0_0, %c0_1] : memref<8x8x32xf32, #tpu.memory_space<vmem>>, vector<8x8x32xf32>
    %c0_2 = arith.constant 0 : index
    %c0_3 = arith.constant 0 : index
    %c0_4 = arith.constant 0 : index
    %1 = vector.load %arg2[%c0_2, %c0_3, %c0_4] : memref<8x8x1xf32, #tpu.memory_space<vmem>>, vector<8x8x1xf32>
    %2 = vector.broadcast %1 : vector<8x8x1xf32> to vector<8x8x32xf32>
    %3 = arith.mulf %0, %2 : vector<8x8x32xf32>
    %cst = arith.constant dense<0.000000e+00> : vector<8x32xf32>
    %4 = vector.multi_reduction <add>, %3, %cst [1] : vector<8x8x32xf32> to vector<8x32xf32>
    %5 = arith.mulf %4, %4 : vector<8x32xf32>
    %cst_5 = arith.constant dense<0.000000e+00> : vector<8xf32>
    %6 = vector.multi_reduction <add>, %5, %cst_5 [1] : vector<8x32xf32> to vector<8xf32>
    %7 = vector.shape_cast %6 : vector<8xf32> to vector<8x1xf32>
    %8 = math.sqrt %7 : vector<8x1xf32>
    %cst_6 = arith.constant 9.99999993E-9 : f32
    %9 = vector.broadcast %cst_6 : f32 to vector<8x1xf32>
    %10 = arith.addf %8, %9 : vector<8x1xf32>
    %11 = vector.broadcast %10 : vector<8x1xf32> to vector<8x32xf32>
    %12 = arith.divf %4, %11 : vector<8x32xf32>
    %c0_7 = arith.constant 0 : index
    %c0_8 = arith.constant 0 : index
    %13 = vector.load %arg3[%c0_7, %c0_8] : memref<8x32xf32, #tpu.memory_space<vmem>>, vector<8x32xf32>
    tpu.vector_store %arg3[%c0_7, %c0_8], %12 {strides = array<i32>} : memref<8x32xf32, #tpu.memory_space<vmem>>, vector<8x32xf32>,
    return
  }
  func.func @transform_0(%arg0: i32) -> (i32, i32, i32) {
    %c0_i32 = arith.constant 0 : i32
    %c0_i32_0 = arith.constant 0 : i32
    %c0_i32_1 = arith.constant 0 : i32
    return %arg0, %c0_i32, %c0_i32_0 : i32, i32, i32
  }
  func.func @transform_1(%arg0: i32) -> (i32, i32, i32) {
    %c0_i32 = arith.constant 0 : i32
    %c0_i32_0 = arith.constant 0 : i32
    %c0_i32_1 = arith.constant 0 : i32
    return %arg0, %c0_i32, %c0_i32_0 : i32, i32, i32
  }
  func.func @transform_2(%arg0: i32) -> (i32, i32) {
    %c0_i32 = arith.constant 0 : i32
    %c0_i32_0 = arith.constant 0 : i32
    return %arg0, %c0_i32 : i32, i32
  }
}

</mosaic_0001>

<bundles_post_ra>
// kernel: neg.3
= control target key start
LH: loop header
LB: loop body
LE: loop exit
PB: predicated region body
PF: predicated region fallthrough
CT: control target
= control target key end

     0   :  { %s136_s0 = inlined_call_operand.vmem [shape: f32[8,8,32], index: 0, kind: input, shape index: {}]   ;;  %s137_s1 = inlined_call_operand.vmem [shape: f32[8,8,32], index: 1, kind: output, shape index: {}]  }
   0x1   :  { %v2_v0 = vld [vmem:[%s136_s0] sm:$0xff]  ;;  %v64_v1 = vld [vmem:[%s136_s0 + $0x8] sm:$0xff]  ;;  %v66_v2 = vld [vmem:[%s136_s0 + $0x10] sm:$0xff] }
   0x2   :  { %v5_v3 = vxor.u32 2147483648, %v2_v0  ;;  %v12_v4 = vxor.u32 2147483648, %v64_v1  ;;  %v20_v5 = vxor.u32 2147483648, %v66_v2  ;;  %v68_v6 = vld [vmem:[%s136_s0 + $0x18] sm:$0xff]  ;;  %v70_v7 = vld [vmem:[%s136_s0 + $0x20] sm:$0xff]  ;;  %v72_v8 = vld [vmem:[%s136_s0 + $0x28] sm:$0xff] }
   0x3   :  { %v28_v9 = vxor.u32 2147483648, %v68_v6  ;;  %v36_v10 = vxor.u32 2147483648, %v70_v7  ;;  %v44_v11 = vxor.u32 2147483648, %v72_v8  ;;  %v74_v12 = vld [vmem:[%s136_s0 + $0x30] sm:$0xff]  ;;  %v76_v13 = vld [vmem:[%s136_s0 + $0x38] sm:$0xff] }
   0x4   :  { %7 = vst [vmem:[%s137_s1] sm:$0xff] %v5_v3  ;;  %65 = vst [vmem:[%s137_s1 + $0x8] sm:$0xff] %v12_v4  ;;  %v52_v14 = vxor.u32 2147483648, %v74_v12  ;;  %v60_v15 = vxor.u32 2147483648, %v76_v13 }
   0x5   :  { %67 = vst [vmem:[%s137_s1 + $0x10] sm:$0xff] %v20_v5  ;;  %69 = vst [vmem:[%s137_s1 + $0x18] sm:$0xff] %v28_v9 }
   0x6   :  { %71 = vst [vmem:[%s137_s1 + $0x20] sm:$0xff] %v36_v10  ;;  %73 = vst [vmem:[%s137_s1 + $0x28] sm:$0xff] %v44_v11 }
   0x7   :  { %75 = vst [vmem:[%s137_s1 + $0x30] sm:$0xff] %v52_v14  ;;  %77 = vst [vmem:[%s137_s1 + $0x38] sm:$0xff] %v60_v15 }

// kernel: encoder_image_aggr_forward.3
= control target key start
LH: loop header
LB: loop body
LE: loop exit
PB: predicated region body
PF: predicated region fallthrough
CT: control target
= control target key end

     0   :  { %v369_v1 = vmov 0   ;;  %s509_s1 = inlined_call_operand.vmem [shape: bf16[128,128], index: 1, kind: input, shape index: {}]   ;;  %s510_s0 = inlined_call_operand.vmem [shape: f32[64,128], index: 0, kind: input, shape index: {}]   ;;  %s511_s3 = inlined_call_operand.vmem [shape: f32[64,1], index: 3, kind: input, shape index: {}]   ;;  %s512_s2 = inlined_call_operand.vmem [shape: f32[1,128], index: 2, kind: input, shape index: {}]   ;;  %s513_s4 = inlined_call_operand.vmem [shape: f32[64,128], index: 4, kind: output, shape index: {}]  }
   0x1   :  { %v361_v0 = vld [vmem:[%s509_s1] sm:$0xff]   ;;  %360 = vset.pattern.permute.xlu1 %v369_v1  ;;  %359 = vset.pattern.permute.xlu0 %v369_v1  ;;  %v362_v2 = vld [vmem:[%s509_s1 + $0x8] sm:$0xff]   ;;  %v363_v3 = vld [vmem:[%s509_s1 + $0x10] sm:$0xff]  }
   0x2   :  { %318 = vmatprep.subr.bf16.mxu0 %v361_v0  ;;  %342 = vmatprep.subr.bf16.mxu1 %v361_v0  ;;  %v364_v4 = vld [vmem:[%s509_s1 + $0x18] sm:$0xff]   ;;  %v38_v5 = vld [vmem:[%s510_s0] sm:$0xff]  ;;  %v39_v6 = vld [vmem:[%s510_s0 + $0x8] sm:$0xff] }
   0x3   :  { %319 = vmatpush3.bf16.msra.mxu0 %v361_v0  ;;  %350 = vmatpush3.bf16.msra.mxu1 %v361_v0  ;;  %v42_v7 = vld [vmem:[%s510_s0 + $0x20] sm:$0xff]  ;;  %v46_v8 = vpack.c.bf16 %v39_v6, %v38_v5  ;;  %v43_v9 = vld [vmem:[%s510_s0 + $0x28] sm:$0xff]  ;;  %v223_v11 = vld [vmem:[%s511_s3 + $0x10] sm:$0xff] }
   0x4   :  { %320 = vmatprep.subr.bf16.mxu0 %v362_v2  ;;  %343 = vmatprep.subr.bf16.mxu1 %v362_v2  ;;  %v48_v10 = vpack.c.bf16 %v43_v9, %v42_v7  ;;  %vm231_vm0 = vcmp.gt.f32.partialorder %v223_v11, 0.5  ;;  %v221_v12 = vld [vmem:[%s511_s3] sm:$0xff]  ;;  %v224_v13 = vld [vmem:[%s511_s3 + $0x18] sm:$0xff]  ;;  %v222_v14 = vld [vmem:[%s511_s3 + $0x8] sm:$0xff] }
   0x5   :  { %v365_v15 = vld [vmem:[%s509_s1 + $0x20] sm:$0xff]   ;;  %v239_v16 = vsel %vm231_vm0, 1, %v369_v1  ;;  %vm229_vm1 = vcmp.gt.f32.partialorder %v221_v12, 0.5  ;;  %vm232_vm2 = vcmp.gt.f32.partialorder %v224_v13, 0.5  ;;  %vm230_vm3 = vcmp.gt.f32.partialorder %v222_v14, 0.5  ;;  %334 = vmatprep.mubr.bf16.mxu0 %v46_v8  ;;  %v226_v18 = vld [vmem:[%s511_s3 + $0x28] sm:$0xff] }
   0x6   :  { %338 = vmatprep.mubr.bf16.mxu1 %v48_v10  ;;  %v237_v17 = vsel %vm229_vm1, 1, %v369_v1  ;;  %v225_v19 = vld [vmem:[%s511_s3 + $0x20] sm:$0xff]  ;;  %252 = vperm.xlu1 %360, %v239_v16   ;;  %v240_v20 = vsel %vm232_vm2, 1, %v369_v1  ;;  %v238_v21 = vsel %vm230_vm3, 1, %v369_v1  ;;  %v366_v22 = vld [vmem:[%s509_s1 + $0x28] sm:$0xff]   ;;  %vm234_vm4 = vcmp.gt.f32.partialorder %v226_v18, 0.5 }
   0x7   :  { %321 = vmatpush3.bf16.msra.mxu0 %v362_v2  ;;  %351 = vmatpush3.bf16.msra.mxu1 %v362_v2  ;;  %vm233_vm5 = vcmp.gt.f32.partialorder %v225_v19, 0.5  ;;  %v228_v23 = vld [vmem:[%s511_s3 + $0x38] sm:$0xff]  ;;  %v227_v24 = vld [vmem:[%s511_s3 + $0x30] sm:$0xff]  ;;  %v242_v25 = vsel %vm234_vm4, 1, %v369_v1  ;;  %v305_v43 = vld [vmem:[%s512_s2] ss:$0 sm:$0xff] }
   0x8   :  { %322 = vmatprep.subr.bf16.mxu0 %v363_v3  ;;  %344 = vmatprep.subr.bf16.mxu1 %v363_v3  ;;  %v241_v26 = vsel %vm233_vm5, 1, %v369_v1  ;;  %v367_v27 = vld [vmem:[%s509_s1 + $0x30] sm:$0xff]   ;;  %vm236_vm6 = vcmp.gt.f32.partialorder %v228_v23, 0.5  ;;  %vm235_vm7 = vcmp.gt.f32.partialorder %v227_v24, 0.5  ;;  %v368_v30 = vld [vmem:[%s509_s1 + $0x38] sm:$0xff]  }
   0x9   :  { %246 = vperm.xlu0 %359, %v237_v17   ;;  %v244_v28 = vsel %vm236_vm6, 1, %v369_v1  ;;  %v243_v29 = vsel %vm235_vm7, 1, %v369_v1  ;;  %v40_v31 = vld [vmem:[%s510_s0 + $0x10] sm:$0xff]  ;;  %v41_v32 = vld [vmem:[%s510_s0 + $0x18] sm:$0xff] }
   0xa   :  { %255 = vperm.xlu1 %360, %v240_v20   ;;  %v44_v33 = vld [vmem:[%s510_s0 + $0x30] sm:$0xff]  ;;  %v45_v34 = vld [vmem:[%s510_s0 + $0x38] sm:$0xff]  ;;  %v47_v35 = vpack.c.bf16 %v41_v32, %v40_v31 }
   0xb   :  { %323 = vmatpush3.bf16.msra.mxu0 %v363_v3  ;;  %352 = vmatpush3.bf16.msra.mxu1 %v363_v3  ;;  %v49_v36 = vpack.c.bf16 %v45_v34, %v44_v33 }
   0xc   :  { %324 = vmatprep.subr.bf16.mxu0 %v364_v4  ;;  %345 = vmatprep.subr.bf16.mxu1 %v364_v4 }
   0xd   :  { %249 = vperm.xlu0 %359, %v238_v21  }
   0xe   :  { %261 = vperm.xlu1 %360, %v242_v25  }
   0xf   :  { %325 = vmatpush3.bf16.msra.mxu0 %v364_v4  ;;  %353 = vmatpush3.bf16.msra.mxu1 %v364_v4 }
  0x10   :  { %326 = vmatprep.subr.bf16.mxu0 %v365_v15  ;;  %346 = vmatprep.subr.bf16.mxu1 %v365_v15 }
  0x11   :  { %258 = vperm.xlu0 %359, %v241_v26  }
  0x12   :  { %267 = vperm.xlu1 %360, %v244_v28  }
  0x13   :  { %327 = vmatpush3.bf16.msra.mxu0 %v365_v15  ;;  %354 = vmatpush3.bf16.msra.mxu1 %v365_v15 }
  0x14   :  { %328 = vmatprep.subr.bf16.mxu0 %v366_v22  ;;  %347 = vmatprep.subr.bf16.mxu1 %v366_v22 }
  0x15   :  { %264 = vperm.xlu0 %359, %v243_v29  }
  0x17   :  { %329 = vmatpush3.bf16.msra.mxu0 %v366_v22  ;;  %355 = vmatpush3.bf16.msra.mxu1 %v366_v22 }
  0x18   :  { %330 = vmatprep.subr.bf16.mxu0 %v367_v27  ;;  %348 = vmatprep.subr.bf16.mxu1 %v367_v27 }
  0x1b   :  { %331 = vmatpush3.bf16.msra.mxu0 %v367_v27  ;;  %356 = vmatpush3.bf16.msra.mxu1 %v367_v27 }
  0x1c   :  { %332 = vmatprep.subr.bf16.mxu0 %v368_v30  ;;  %349 = vmatprep.subr.bf16.mxu1 %v368_v30 }
  0x1f   :  { %333 = vmatpush3.bf16.msra.mxu0 %v368_v30  ;;  %357 = vmatpush3.bf16.msra.mxu1 %v368_v30 }
  0x22   :  { %335 = vmatmul.mubr.bf16.vlgmr.msra.gmra.mrb[0].mxu0 %v47_v35  ;;  %339 = vmatmul.mubr.bf16.vlgmr.msra.gmra.mrb[0].mxu1 %v49_v36 }
  0x85   :  { %v253_v37 = vpop.permute.xlu1 %252 }
  0x86   :  { %vm271_vm8 = vcmp.eq.s32.totalorder %v253_v37, 1 }
  0x88   :  { %v247_v38 = vpop.permute.xlu0 %246 }
  0x89   :  { %v256_v39 = vpop.permute.xlu1 %255  ;;  %vm269_vm9 = vcmp.eq.s32.totalorder %v247_v38, 1 }
  0x8a   :  { %vm272_vm10 = vcmp.eq.s32.totalorder %v256_v39, 1 }
  0x8c   :  { %v250_v40 = vpop.permute.xlu0 %249 }
  0x8d   :  { %v262_v41 = vpop.permute.xlu1 %261  ;;  %vm270_vm14 = vcmp.eq.s32.totalorder %v250_v40, 1 }
  0x8e   :  { %vm274_vm15 = vcmp.eq.s32.totalorder %v262_v41, 1 }
  0x90   :  { %v259_v42 = vpop.permute.xlu0 %258 }
  0x91   :  { %v268_v44 = vpop.permute.xlu1 %267  ;;  %vm273_vm11 = vcmp.eq.s32.totalorder %v259_v42, 1 }
  0x92   :  { %vm276_vm12 = vcmp.eq.s32.totalorder %v268_v44, 1 }
  0x94   :  { %v265_v45 = vpop.permute.xlu0 %264 }
  0x95   :  { %vm275_vm13 = vcmp.eq.s32.totalorder %v265_v45, 1 }
  0xf5   :  { %v336_v46 = vpop.f32.mrb[0].mxu0  ;;  %v340_v47 = vpop.f32.mrb[0].mxu1 }
  0xf6   :  { %v215_v48 = vadd.f32 %v336_v46, %v305_v43  ;;  %v219_v49 = vadd.f32 %v340_v47, %v305_v43  ;;  %v148_v50 = vpop.f32.mrb[1].mxu0  ;;  %v164_v51 = vpop.f32.mrb[1].mxu1 }
  0xf7   :  { %v213_v52 = vadd.f32 %v305_v43, %v148_v50  ;;  %v217_v53 = vadd.f32 %v305_v43, %v164_v51  ;;  %v337_v54 = vpop.f32.mrb[2].mxu0  ;;  %v341_v55 = vpop.f32.mrb[2].mxu1 }
  0xf8   :  { %v279_v56 = vsel %vm271_vm8, %v215_v48, -10000.0  ;;  %v283_v57 = vsel %vm275_vm13, %v219_v49, -10000.0  ;;  %v216_v58 = vadd.f32 %v337_v54, %v305_v43  ;;  %v220_v59 = vadd.f32 %v341_v55, %v305_v43  ;;  %v151_v60 = vpop.f32.mrb[3].mxu0  ;;  %v167_v61 = vpop.f32.mrb[3].mxu1 }
  0xf9   :  { %287 = vst [vmem:[%s513_s4 + $0x10] sm:$0xff] %v279_v56  ;;  %291 = vst [vmem:[%s513_s4 + $0x30] sm:$0xff] %v283_v57  ;;  %v277_v62 = vsel %vm269_vm9, %v213_v52, -10000.0  ;;  %v281_v63 = vsel %vm273_vm11, %v217_v53, -10000.0  ;;  %v214_v0 = vadd.f32 %v305_v43, %v151_v60  ;;  %v218_v1 = vadd.f32 %v305_v43, %v167_v61 }
  0xfa   :  { %285 = vst [vmem:[%s513_s4] sm:$0xff] %v277_v62  ;;  %289 = vst [vmem:[%s513_s4 + $0x20] sm:$0xff] %v281_v63  ;;  %v280_v2 = vsel %vm272_vm10, %v216_v58, -10000.0  ;;  %v284_v3 = vsel %vm276_vm12, %v220_v59, -10000.0 }
  0xfb   :  { %288 = vst [vmem:[%s513_s4 + $0x18] sm:$0xff] %v280_v2  ;;  %292 = vst [vmem:[%s513_s4 + $0x38] sm:$0xff] %v284_v3  ;;  %v278_v4 = vsel %vm270_vm14, %v214_v0, -10000.0  ;;  %v282_v5 = vsel %vm274_vm15, %v218_v1, -10000.0 }
  0xfc   :  { %286 = vst [vmem:[%s513_s4 + $0x8] sm:$0xff] %v278_v4  ;;  %290 = vst [vmem:[%s513_s4 + $0x28] sm:$0xff] %v282_v5 }

// kernel: encoder_image_aggr_forward.5
= control target key start
LH: loop header
LB: loop body
LE: loop exit
PB: predicated region body
PF: predicated region fallthrough
CT: control target
= control target key end

     0   :  { %v255_v0 = vmov 0   ;;  %vm75_vm0 = vcmask 261120   ;;  %vm148_vm1 = vcmask 1041409   ;;  %vm150_vm2 = vcmask 1042434   ;;  %s371_s1 = inlined_call_operand.vmem [shape: f32[8,8,1], index: 1, kind: input, shape index: {}]   ;;  %s372_s0 = inlined_call_operand.vmem [shape: f32[8,8,32], index: 0, kind: input, shape index: {}]   ;;  %s373_s2 = inlined_call_operand.vmem [shape: f32[8,32], index: 2, kind: output, shape index: {}]  }
   0x1   :  { %236 = vset.pattern.permute.xlu1 %v255_v0  ;;  %235 = vset.pattern.permute.xlu0 %v255_v0  ;;  %v21_v1 = vld [vmem:[%s371_s1 + $0x10] sm:$0xff]  ;;  %v19_v2 = vld [vmem:[%s371_s1] sm:$0xff]  ;;  %v22_v3 = vld [vmem:[%s371_s1 + $0x18] sm:$0xff]  ;;  %vm152_vm3 = vcmask 1043459   ;;  %vm154_vm4 = vcmask 1044484   ;;  %vm156_vm5 = vcmask 1045509  }
   0x2   :  { %39 = vperm.xlu1 %236, %v21_v1   ;;  %29 = vperm.xlu0 %235, %v19_v2   ;;  %v20_v4 = vld [vmem:[%s371_s1 + $0x8] sm:$0xff]  ;;  %v23_v6 = vld [vmem:[%s371_s1 + $0x20] sm:$0xff]  ;;  %v26_v7 = vld [vmem:[%s371_s1 + $0x38] sm:$0xff]  ;;  %vm158_vm6 = vcmask 1046534   ;;  %vm160_vm7 = vcmask 1047559  }
   0x3   :  { %v24_v5 = vld [vmem:[%s371_s1 + $0x28] sm:$0xff]  ;;  %v25_v8 = vld [vmem:[%s371_s1 + $0x30] sm:$0xff]  ;;  %v11_v10 = vld [vmem:[%s372_s0] sm:$0xff] }
   0x4   :  { %v13_v9 = vld [vmem:[%s372_s0 + $0x10] sm:$0xff]  ;;  %v14_v15 = vld [vmem:[%s372_s0 + $0x18] sm:$0xff]  ;;  %v12_v16 = vld [vmem:[%s372_s0 + $0x8] sm:$0xff] }
   0x5   :  { %v16_v27 = vld [vmem:[%s372_s0 + $0x28] sm:$0xff]  ;;  %v15_v28 = vld [vmem:[%s372_s0 + $0x20] sm:$0xff]  ;;  %v18_v43 = vld [vmem:[%s372_s0 + $0x38] sm:$0xff] }
   0x6   :  { %44 = vperm.xlu1 %236, %v22_v3   ;;  %34 = vperm.xlu0 %235, %v20_v4   ;;  %v17_v44 = vld [vmem:[%s372_s0 + $0x30] sm:$0xff] }
   0xa   :  { %54 = vperm.xlu1 %236, %v24_v5   ;;  %49 = vperm.xlu0 %235, %v23_v6  }
   0xe   :  { %64 = vperm.xlu1 %236, %v26_v7   ;;  %59 = vperm.xlu0 %235, %v25_v8  }
  0x81   :  { %v40_v11 = vpop.permute.xlu1 %39  ;;  %v30_v12 = vpop.permute.xlu0 %29 }
  0x82   :  { %v69_v13 = vmul.f32 %v40_v11, %v13_v9  ;;  %v67_v14 = vmul.f32 %v30_v12, %v11_v10 }
  0x84   :  { %v90_v17 = vsel %vm75_vm0, %v69_v13, 0.0  ;;  %v76_v18 = vsel %vm75_vm0, %v67_v14, 0.0 }
  0x85   :  { %v91_v19 = vrot.slane %v90_v17, 4  ;;  %v77_v20 = vrot.slane %v76_v18, 4  ;;  %v45_v21 = vpop.permute.xlu1 %44  ;;  %v35_v22 = vpop.permute.xlu0 %34 }
  0x86   :  { %v70_v23 = vmul.f32 %v45_v21, %v14_v15  ;;  %v68_v24 = vmul.f32 %v35_v22, %v12_v16 }
  0x87   :  { %v92_v25 = vadd.f32 %v91_v19, %v90_v17  ;;  %v78_v26 = vadd.f32 %v77_v20, %v76_v18 }
  0x88   :  { %v97_v29 = vsel %vm75_vm0, %v70_v23, 0.0  ;;  %v83_v30 = vsel %vm75_vm0, %v68_v24, 0.0 }
  0x89   :  { %v93_v31 = vrot.slane %v92_v25, 2  ;;  %v79_v32 = vrot.slane %v78_v26, 2  ;;  %v98_v33 = vrot.slane %v97_v29, 4  ;;  %v84_v34 = vrot.slane %v83_v30, 4  ;;  %v55_v35 = vpop.permute.xlu1 %54  ;;  %v50_v36 = vpop.permute.xlu0 %49 }
  0x8a   :  { %v72_v37 = vmul.f32 %v55_v35, %v16_v27  ;;  %v71_v38 = vmul.f32 %v50_v36, %v15_v28 }
  0x8b   :  { %v94_v39 = vadd.f32 %v93_v31, %v92_v25  ;;  %v80_v40 = vadd.f32 %v79_v32, %v78_v26  ;;  %v99_v41 = vadd.f32 %v98_v33, %v97_v29  ;;  %v85_v42 = vadd.f32 %v84_v34, %v83_v30 }
  0x8c   :  { %v111_v45 = vsel %vm75_vm0, %v72_v37, 0.0  ;;  %v104_v46 = vsel %vm75_vm0, %v71_v38, 0.0 }
  0x8d   :  { %v81_v47 = vrot.slane %v80_v40, 1  ;;  %v100_v48 = vrot.slane %v99_v41, 2  ;;  %v86_v49 = vrot.slane %v85_v42, 2  ;;  %v65_v50 = vpop.permute.xlu1 %64  ;;  %v60_v51 = vpop.permute.xlu0 %59  ;;  %v112_v52 = vrot.slane %v111_v45, 4 }
  0x8e   :  { %v105_v53 = vrot.slane %v104_v46, 4  ;;  %v74_v54 = vmul.f32 %v65_v50, %v18_v43  ;;  %v73_v55 = vmul.f32 %v60_v51, %v17_v44  ;;  %v95_v56 = vrot.slane %v94_v39, 1 }
  0x8f   :  { %v101_v57 = vadd.f32 %v100_v48, %v99_v41  ;;  %v87_v58 = vadd.f32 %v86_v49, %v85_v42  ;;  %v113_v59 = vadd.f32 %v112_v52, %v111_v45  ;;  %v327_v63 = vadd.f32 %v81_v47, %v80_v40 }
  0x90   :  { %v106_v60 = vadd.f32 %v105_v53, %v104_v46  ;;  %v125_v61 = vsel %vm75_vm0, %v74_v54, 0.0  ;;  %v118_v62 = vsel %vm75_vm0, %v73_v55, 0.0  ;;  %v329_v6 = vadd.f32 %v95_v56, %v94_v39 }
  0x91   :  { %v102_v0 = vrot.slane %v101_v57, 1  ;;  %v88_v1 = vrot.slane %v87_v58, 1  ;;  %v114_v2 = vrot.slane %v113_v59, 2  ;;  %v126_v4 = vrot.slane %v125_v61, 4 }
  0x92   :  { %v107_v3 = vrot.slane %v106_v60, 2  ;;  %v119_v5 = vrot.slane %v118_v62, 4  ;;  %v132_v12 = vmul.f32 %v327_v63, %v327_v63  ;;  %v134_v19 = vmul.f32 %v329_v6, %v329_v6 }
  0x93   :  { %v331_v7 = vadd.f32 %v88_v1, %v87_v58  ;;  %v115_v8 = vadd.f32 %v114_v2, %v113_v59  ;;  %v127_v10 = vadd.f32 %v126_v4, %v125_v61  ;;  %v335_v13 = vadd.f32 %v102_v0, %v101_v57 }
  0x94   :  { %v108_v9 = vadd.f32 %v107_v3, %v106_v60  ;;  %v120_v11 = vadd.f32 %v119_v5, %v118_v62 }
  0x95   :  { %v133_v14 = vmul.f32 %v331_v7, %v331_v7  ;;  %v116_v15 = vrot.slane %v115_v8, 1  ;;  %v128_v17 = vrot.slane %v127_v10, 2  ;;  %v135_v25 = vmul.f32 %v335_v13, %v335_v13 }
  0x96   :  { %v109_v16 = vrot.slane %v108_v9, 1  ;;  %v121_v18 = vrot.slane %v120_v11, 2 }
  0x97   :  { %v149_v20 = vsel %vm148_vm1, %v133_v14, %v132_v12  ;;  %v342_v21 = vadd.f32 %v116_v15, %v115_v8  ;;  %v129_v23 = vadd.f32 %v128_v17, %v127_v10 }
  0x98   :  { %v110_v22 = vadd.f32 %v109_v16, %v108_v9  ;;  %v122_v24 = vadd.f32 %v121_v18, %v120_v11  ;;  %v151_v26 = vsel %vm150_vm2, %v134_v19, %v149_v20 }
  0x99   :  { %v130_v28 = vrot.slane %v129_v23, 1  ;;  %v137_v30 = vmul.f32 %v342_v21, %v342_v21  ;;  %v153_v31 = vsel %vm152_vm3, %v135_v25, %v151_v26 }
  0x9a   :  { %v136_v27 = vmul.f32 %v110_v22, %v110_v22  ;;  %v123_v29 = vrot.slane %v122_v24, 1 }
  0x9b   :  { %v131_v32 = vadd.f32 %v130_v28, %v129_v23 }
  0x9c   :  { %v124_v33 = vadd.f32 %v123_v29, %v122_v24  ;;  %v155_v34 = vsel %vm154_vm4, %v136_v27, %v153_v31 }
  0x9d   :  { %v139_v36 = vmul.f32 %v131_v32, %v131_v32  ;;  %v157_v37 = vsel %vm156_vm5, %v137_v30, %v155_v34 }
  0x9e   :  { %v138_v35 = vmul.f32 %v124_v33, %v124_v33 }
  0xa0   :  { %v159_v38 = vsel %vm158_vm6, %v138_v35, %v157_v37 }
  0xa1   :  { %v161_v39 = vsel %vm160_vm7, %v139_v36, %v159_v38 }
  0xa2   :  { %v163_v40 = vsel %vm75_vm0, %v161_v39, 0.0 }
  0xa3   :  { %164 = vadd.xlane.f32.xlu0 %v163_v40 }
 0x130   :  { %v165_v41 = vpop.xlane.xlu0 %164 }
 0x131   :  { %237 = vrsqrt.f32 %v165_v41  ;;  %vm168_vm8 = vcmp.eq.f32.partialorder %v165_v41, inf  ;;  %v171_v44 = vand.u32 2147483648, %v165_v41  ;;  %vm170_vm9 = vcmp.eq.f32.partialorder %v165_v41, 0.0 }
 0x13b   :  { %v238_v42 = vpop.eup %237 }
 0x13c   :  { %v167_v43 = vmul.f32 %v238_v42, %v165_v41 }
 0x13e   :  { %v169_v45 = vsel %vm168_vm8, %v165_v41, %v167_v43 }
 0x13f   :  { %v172_v46 = vsel %vm170_vm9, %v171_v44, %v169_v45 }
 0x140   :  { %v173_v47 = vadd.f32 1e-08, %v172_v46 }
 0x142   :  { %v175_v48 = vrot.slane %v173_v47, 1  ;;  %v176_v49 = vrot.slane %v173_v47, 2  ;;  %v177_v50 = vrot.slane %v173_v47, 3  ;;  %v178_v51 = vrot.slane %v173_v47, 4 }
 0x143   :  { %239 = vrcp.f32 %v173_v47  ;;  %v179_v52 = vrot.slane %v173_v47, 5  ;;  %v180_v53 = vrot.slane %v173_v47, 6  ;;  %v181_v54 = vrot.slane %v173_v47, 7 }
 0x144   :  { %241 = vrcp.f32 %v175_v48 }
 0x145   :  { %243 = vrcp.f32 %v176_v49 }
 0x146   :  { %245 = vrcp.f32 %v177_v50 }
 0x147   :  { %247 = vrcp.f32 %v178_v51 }
 0x148   :  { %249 = vrcp.f32 %v179_v52 }
 0x149   :  { %251 = vrcp.f32 %v180_v53 }
 0x14a   :  { %253 = vrcp.f32 %v181_v54 }
 0x14d   :  { %v240_v55 = vpop.eup %239 }
 0x14e   :  { %v242_v56 = vpop.eup %241  ;;  %v191_v62 = vmul.f32 %v240_v55, %v327_v63 }
 0x14f   :  { %v244_v57 = vpop.eup %243  ;;  %v193_v58 = vmul.f32 %v242_v56, %v331_v7 }
 0x150   :  { %v246_v59 = vpop.eup %245  ;;  %v195_v60 = vmul.f32 %v244_v57, %v329_v6 }
 0x151   :  { %v248_v61 = vpop.eup %247  ;;  %v197_v0 = vmul.f32 %v246_v59, %v335_v13  ;;  %v214_v1 = vrot.slane %v193_v58, 7 }
 0x152   :  { %v250_v2 = vpop.eup %249  ;;  %v199_v3 = vmul.f32 %v248_v61, %v110_v22  ;;  %v216_v4 = vrot.slane %v195_v60, 6 }
 0x153   :  { %v252_v5 = vpop.eup %251  ;;  %v201_v8 = vmul.f32 %v250_v2, %v342_v21  ;;  %v215_v9 = vsel %vm148_vm1, %v214_v1, %v191_v62  ;;  %v218_v10 = vrot.slane %v197_v0, 5 }
 0x154   :  { %v254_v11 = vpop.eup %253  ;;  %v203_v7 = vmul.f32 %v252_v5, %v124_v33  ;;  %v217_v12 = vsel %vm150_vm2, %v216_v4, %v215_v9  ;;  %v220_v6 = vrot.slane %v199_v3, 4 }
 0x155   :  { %v205_v14 = vmul.f32 %v254_v11, %v131_v32  ;;  %v219_v63 = vsel %vm152_vm3, %v218_v10, %v217_v12  ;;  %v222_v15 = vrot.slane %v201_v8, 3 }
 0x156   :  { %v221_v13 = vsel %vm154_vm4, %v220_v6, %v219_v63  ;;  %v224_v16 = vrot.slane %v203_v7, 2 }
 0x157   :  { %v223_v17 = vsel %vm156_vm5, %v222_v15, %v221_v13  ;;  %v226_v18 = vrot.slane %v205_v14, 1 }
 0x158   :  { %v225_v19 = vsel %vm158_vm6, %v224_v16, %v223_v17 }
 0x159   :  { %v227_v20 = vsel %vm160_vm7, %v226_v18, %v225_v19 }
 0x15a   :  { %229 = vst.msk [vmem:[%s373_s2] sm:$0xff] %vm75_vm0, %v227_v20 }

// kernel: encoder_image_aggr_forward.4
= control target key start
LH: loop header
LB: loop body
LE: loop exit
PB: predicated region body
PF: predicated region fallthrough
CT: control target
= control target key end

     0   :  { %v2699_v0 = vmov 0.0|0.0   ;;  %vm2700_vm0 = vmmov 0   ;;  %v2701_v8 = vmov 0.0   ;;  %vm50_vm1 = vcmask 261120   ;;  %s2704_s14 = smov 96   ;;  %s2711_s17 = smov 32   ;;  %s3298_s5 = inlined_call_operand.vmem [shape: f32[32,96], index: 5, kind: input, shape index: {}]   ;;  %s3299_s1 = inlined_call_operand.vmem [shape: f32[32,96], index: 1, kind: input, shape index: {}]   ;;  %s3300_s6 = inlined_call_operand.vmem [shape: f32[32,96], index: 6, kind: input, shape index: {}]   ;;  %s3301_s2 = inlined_call_operand.vmem [shape: f32[32,96], index: 2, kind: input, shape index: {}]   ;;  %s3302_s0 = inlined_call_operand.vmem [shape: f32[8,32], index: 0, kind: input, shape index: {}]   ;;  %s3303_s7 = inlined_call_operand.vmem [shape: f32[1,96], index: 7, kind: input, shape index: {}]   ;;  %s3304_s3 = inlined_call_operand.vmem [shape: f32[1,96], index: 3, kind: input, shape index: {}]   ;;  %s3305_s8 = inlined_call_operand.vmem [shape: f32[1,96], index: 8, kind: input, shape index: {}]   ;;  %s3306_s4 = inlined_call_operand.vmem [shape: f32[1,96], index: 4, kind: input, shape index: {}]   ;;  %s3307_s10 = inlined_call_operand.vmem [shape: f32[8,8], index: 10, kind: input, shape index: {}]   ;;  %s3308_s9 = inlined_call_operand.vmem [shape: f32[1,32], index: 9, kind: input, shape index: {}]   ;;  %s3309_s11 = inlined_call_operand.vmem [shape: f32[8,8], index: 11, kind: output, shape index: {}]  }
   0x1   :  { %2473 = vmatprep.subr.bf16.mxu1 %v2699_v0  ;;  %v124_v1 = vld [vmem:[%s3298_s5] sm:$0xff]  ;;  %v125_v2 = vld [vmem:[%s3298_s5 + $0x8] sm:$0xff]  ;;  %2467 = vmatprep.subr.bf16.mxu0 %v2699_v0  ;;  %v126_v6 = vld [vmem:[%s3298_s5 + $0x10] sm:$0xff]  ;;  %v234_v27 = vlaneseq  ;;  %vm2141_vm11 = vcmask 64512  }
   0x2   :  { %v39_v3 = vld [vmem:[%s3299_s1] sm:$0xff]  ;;  %v2474_v4 = vpack.c.bf16 %v125_v2, %v124_v1  ;;  %v40_v5 = vld [vmem:[%s3299_s1 + $0x8] sm:$0xff]  ;;  %v127_v7 = vld [vmem:[%s3298_s5 + $0x18] sm:$0xff]  ;;  %2288 = vmatprep.mubr.msk.f32.mxu1 %vm2700_vm0, %v2701_v8  ;;  %2277 = vmatprep.mubr.msk.f32.mxu0 %vm2700_vm0, %v2701_v8 }
   0x3   :  { %v2468_v9 = vpack.c.bf16 %v40_v5, %v39_v3  ;;  %v41_v10 = vld [vmem:[%s3299_s1 + $0x10] sm:$0xff]  ;;  %v42_v11 = vld [vmem:[%s3299_s1 + $0x18] sm:$0xff]  ;;  %v2477_v12 = vpack.c.bf16 %v127_v7, %v126_v6  ;;  %v209_v14 = vld [vmem:[%s3300_s6] sm:$0xff]  ;;  %v310_v28 = vshrl.u32 %v234_v27, 7 }
   0x4   :  { %2475 = vmatpush3.bf16.msra.mxu1 %v2474_v4  ;;  %v2471_v13 = vpack.c.bf16 %v42_v11, %v41_v10  ;;  %v210_v15 = vld [vmem:[%s3300_s6 + $0x8] sm:$0xff]  ;;  %v205_v16 = vld [vmem:[%s3301_s2] sm:$0xff]  ;;  %v211_v21 = vld [vmem:[%s3300_s6 + $0x10] sm:$0xff] }
   0x5   :  { %2476 = vmatprep.subr.bf16.mxu1 %v2699_v0  ;;  %2469 = vmatpush3.bf16.msra.mxu0 %v2468_v9  ;;  %v206_v17 = vld [vmem:[%s3301_s2 + $0x8] sm:$0xff]  ;;  %v38_v18 = vld [vmem:[%s3302_s0] sm:$0xff]  ;;  %v2820_v19 = vpack.c.bf16 %v210_v15, %v209_v14  ;;  %v212_v22 = vld [vmem:[%s3300_s6 + $0x18] sm:$0xff]  ;;  %v664_v31 = vsub.s32 6, %v310_v28  ;;  %v905_v32 = vsub.s32 5, %v310_v28  ;;  %v1146_v33 = vsub.s32 4, %v310_v28 }
   0x6   :  { %2470 = vmatprep.subr.bf16.mxu0 %v2699_v0  ;;  %v2823_v20 = vpack.c.bf16 %v206_v17, %v205_v16  ;;  %v207_v23 = vld [vmem:[%s3301_s2 + $0x10] sm:$0xff]  ;;  %v208_v24 = vld [vmem:[%s3301_s2 + $0x18] sm:$0xff]  ;;  %v2841_v25 = vpack.c.bf16 %v212_v22, %v211_v21  ;;  %v2160_v29 = vld [vmem:[%s3303_s7] ss:$0 sm:$0xff]  ;;  %v792_v38 = vsub.s32 2, %v310_v28  ;;  %v1033_v39 = vsub.s32 3, %v310_v28 }
   0x7   :  { %v2845_v26 = vpack.c.bf16 %v208_v24, %v207_v23  ;;  %v2158_v30 = vld [vmem:[%s3304_s3] ss:$0 sm:$0xff]  ;;  %v311_v42 = vsub.s32 0, %v310_v28  ;;  %v551_v43 = vsub.s32 1, %v310_v28  ;;  %v422_v47 = vsub.s32 7, %v310_v28 }
   0x8   :  { %2478 = vmatpush3.bf16.msra.mxu1 %v2477_v12  ;;  %v2900_v55 = vld [vmem:[%s3305_s8] ss:$0 sm:$0xff]  ;;  %s2702_s8 = smov 64   ;;  %v2703_v17 = vmov 7  }
   0x9   :  { %2485 = vmatprep.subr.bf16.mxu1 %v2699_v0  ;;  %2472 = vmatpush3.bf16.msra.mxu0 %v2471_v13  ;;  %v2913_v61 = vld [vmem:[%s3306_s4] ss:$0 sm:$0xff] }
   0xa   :  { %2479 = vmatprep.subr.bf16.mxu0 %v2699_v0  ;;  %2589 = vset.pattern.permute.xlu0 %v2703_v17 }
   0xb   :  { %2289 = vmatmul.mubr.msk.f32.vlgmr.msra.gmra.mrb[0].mxu1 %vm50_vm1, %v38_v18 }
   0xc   :  { %2487 = vmatpush3.bf16.msra.mxu1 %v2820_v19  ;;  %2278 = vmatmul.mubr.msk.f32.vlgmr.msra.gmra.mrb[0].mxu0 %vm50_vm1, %v38_v18  ;;  %v2922_v18 = vld [vmem:[%s3307_s10] sm:$0xff] }
   0xd   :  { %2488 = vmatprep.subr.bf16.mxu1 %v2699_v0  ;;  %2481 = vmatpush3.bf16.msra.mxu0 %v2823_v20 }
   0xe   :  { %2310 = vmatprep.mubr.msk.f32.mxu1 %vm2700_vm0, %v2701_v8  ;;  %2482 = vmatprep.subr.bf16.mxu0 %v2699_v0 }
   0xf   :  { %2299 = vmatprep.mubr.msk.f32.mxu0 %vm2700_vm0, %v2701_v8 }
  0x10   :  { %2490 = vmatpush3.bf16.msra.mxu1 %v2841_v25 }
  0x11   :  { %2484 = vmatpush3.bf16.msra.mxu0 %v2845_v26  ;;  %2497 = vmatprep.subr.bf16.mxu1 %v2699_v0 }
  0x12   :  { %2491 = vmatprep.subr.bf16.mxu0 %v2699_v0 }
  0x13   :  { %2311 = vmatmul.mubr.f32.vlgmr.msra.gmra.mrb[2].mxu1 %v2701_v8 }
  0x14   :  { %2300 = vmatmul.mubr.f32.vlgmr.msra.gmra.mrb[2].mxu0 %v2701_v8  ;;  %2499 = vmatpush3.bf16.msra.mxu1 %v2820_v19 }
  0x15   :  { %2493 = vmatpush3.bf16.msra.mxu0 %v2823_v20  ;;  %2500 = vmatprep.subr.bf16.mxu1 %v2699_v0 }
  0x16   :  { %2494 = vmatprep.subr.bf16.mxu0 %v2699_v0  ;;  %2332 = vmatprep.mubr.msk.f32.mxu1 %vm2700_vm0, %v2701_v8 }
  0x17   :  { %2321 = vmatprep.mubr.msk.f32.mxu0 %vm2700_vm0, %v2701_v8 }
  0x18   :  { %2502 = vmatpush3.bf16.msra.mxu1 %v2841_v25 }
  0x19   :  { %2496 = vmatpush3.bf16.msra.mxu0 %v2845_v26  ;;  %2509 = vmatprep.subr.bf16.mxu1 %v2699_v0 }
  0x1a   :  { %2503 = vmatprep.subr.bf16.mxu0 %v2699_v0 }
  0xde   :  { %v201_v34 = vpop.f32.mrb[0].mxu1 }
  0xdf   :  { %v202_v35 = vadd.f32 %v2160_v29, %v201_v34  ;;  %v2290_v36 = vpop.f32.mrb[1].mxu1  ;;  %v120_v37 = vpop.f32.mrb[0].mxu0 }
  0xe0   :  { %v121_v40 = vadd.f32 %v2158_v30, %v120_v37  ;;  %v2279_v41 = vpop.f32.mrb[1].mxu0 }
  0xe1   :  { %v2877_v44 = vrot.slane %v202_v35, %v664_v31  ;;  %v2879_v45 = vrot.slane %v202_v35, %v905_v32  ;;  %v2881_v46 = vrot.slane %v202_v35, %v1146_v33  ;;  %v2889_v51 = vrot.slane %v202_v35, %v1033_v39 }
  0xe2   :  { %v2883_v48 = vrot.slane %v121_v40, %v551_v43  ;;  %v2885_v49 = vrot.slane %v121_v40, %v792_v38  ;;  %v2887_v50 = vrot.slane %v121_v40, %v1033_v39  ;;  %v2891_v52 = vrot.slane %v121_v40, %v1146_v33 }
  0xe3   :  { %v2893_v53 = vrot.slane %v202_v35, %v792_v38  ;;  %v2895_v54 = vrot.slane %v121_v40, %v905_v32  ;;  %v2902_v56 = vrot.slane %v202_v35, %v551_v43  ;;  %v2904_v57 = vrot.slane %v121_v40, %v664_v31 }
  0xe4   :  { %v2906_v58 = vrot.slane %v202_v35, %v311_v42  ;;  %v2908_v59 = vrot.slane %v121_v40, %v422_v47  ;;  %v423_v4 = vrot.slane %v202_v35, %v422_v47  ;;  %v312_v6 = vrot.slane %v121_v40, %v311_v42 }
  0xe6   :  { %v416_v60 = vpop.f32.mrb[2].mxu1 }
  0xe7   :  { %v417_v62 = vadd.f32 %v2900_v55, %v416_v60  ;;  %v2312_v63 = vpop.f32.mrb[3].mxu1  ;;  %v305_v1 = vpop.f32.mrb[2].mxu0 }
  0xe8   :  { %v2301_v2 = vpop.f32.mrb[3].mxu0  ;;  %v306_v3 = vadd.f32 %v2913_v61, %v305_v1 }
  0xe9   :  { %432 = vrot.lane.b32.xlu0 %v417_v62, %s2702_s8  ;;  %v424_v5 = vadd.f32 %v423_v4, %v417_v62 }
  0xea   :  { %v313_v9 = vadd.f32 %v312_v6, %v306_v3 }
  0xeb   :  { %v425_v7 = vsub.f32 0.0, %v424_v5 }
  0xec   :  { %v314_v11 = vsub.f32 0.0, %v313_v9 }
  0xed   :  { %321 = vrot.lane.b32.xlu0 %v306_v3, %s2702_s8  ;;  %v426_v10 = vmul.f32 1.442695, %v425_v7 }
  0xee   :  { %v315_v12 = vmul.f32 1.442695, %v314_v11 }
  0xef   :  { %2598 = vpow2.f32 %v426_v10 }
  0xf0   :  { %2600 = vpow2.f32 %v315_v12 }
  0xf1   :  { %452 = vperm.xlu0 %2589, %v2922_v18  }
  0xf9   :  { %v2599_v13 = vpop.eup %2598 }
  0xfa   :  { %v428_v14 = vadd.f32 1.0, %v2599_v13  ;;  %v2601_v15 = vpop.eup %2600 }
  0xfb   :  { %v317_v16 = vadd.f32 1.0, %v2601_v15 }
  0xfc   :  { %2602 = vrcp.f32 %v428_v14 }
  0xfd   :  { %2604 = vrcp.f32 %v317_v16 }
 0x106   :  { %v2603_v21 = vpop.eup %2602 }
 0x107   :  { %v2605_v24 = vpop.eup %2604  ;;  %v442_v36 = vsub.f32 1.0, %v2603_v21  ;;  %v448_v39 = vmul.f32 0.0, %v2603_v21 }
 0x108   :  { %v331_v42 = vsub.f32 1.0, %v2605_v24  ;;  %v337_v60 = vmul.f32 0.0, %v2605_v24 }
 0x15b   :  { %v433_v22 = vpop.permute.xlu0 %432 }
 0x15c   :  { %v435_v23 = vmul.f32 %v2603_v21, %v433_v22 }
 0x15e   :  { %437 = vrot.lane.b32.xlu1 %v435_v23, %s2702_s8  ;;  %v2705_v23 = vmov 6  }
 0x15f   :  { %v322_v28 = vpop.permute.xlu0 %321  ;;  %2590 = vset.pattern.permute.xlu0 %v2705_v23 }
 0x160   :  { %v324_v29 = vmul.f32 %v2605_v24, %v322_v28 }
 0x162   :  { %326 = vrot.lane.b32.xlu1 %v324_v29, %s2702_s8 }
 0x170   :  { %v453_v40 = vpop.permute.xlu0 %452 }
 0x1d0   :  { %v438_v30 = vpop.permute.xlu1 %437 }
 0x1d1   :  { %v440_v31 = vadd.f32 %v438_v30, %v423_v4 }
 0x1d3   :  { %2606 = vtanh.f32 %v440_v31 }
 0x1d4   :  { %v327_v32 = vpop.permute.xlu1 %326 }
 0x1d5   :  { %v329_v33 = vadd.f32 %v327_v32, %v312_v6 }
 0x1d7   :  { %2608 = vtanh.f32 %v329_v33 }
 0x1dd   :  { %v2607_v34 = vpop.eup %2606 }
 0x1de   :  { %444 = vrot.lane.b32.xlu1 %v2607_v34, %s2704_s14 }
 0x1e1   :  { %v2609_v35 = vpop.eup %2608 }
 0x1e2   :  { %333 = vrot.lane.b32.xlu1 %v2609_v35, %s2704_s14 }
 0x250   :  { %v445_v37 = vpop.permute.xlu1 %444 }
 0x251   :  { %v447_v38 = vmul.f32 %v445_v37, %v442_v36 }
 0x253   :  { %v449_v41 = vadd.f32 %v448_v39, %v447_v38 }
 0x254   :  { %v334_v43 = vpop.permute.xlu1 %333 }
 0x255   :  { %v2929_v47 = vmul.f32 %v453_v40, %v449_v41  ;;  %v336_v62 = vmul.f32 %v334_v43, %v331_v42 }
 0x257   :  { %v2931_v63 = vadd.f32 %v337_v60, %v336_v62  ;;  %588 = vrot.lane.b32.xlu0 %v2929_v47, %s2704_s14 }
 0x259   :  { %475 = vrot.lane.b32.xlu1 %v2931_v63, %s2704_s14 }
 0x2c9   :  { %v589_v1 = vpop.permute.xlu0 %588 }
 0x2ca   :  { %2333 = vmatmul.mubr.msk.f32.vlgmr.msra.gmra.mrb[4].mxu1 %vm50_vm1, %v589_v1 }
 0x2cb   :  { %v476_v2 = vpop.permute.xlu1 %475  ;;  %2511 = vmatpush3.bf16.msra.mxu1 %v2820_v19  ;;  %2354 = vmatprep.mubr.msk.f32.mxu1 %vm2700_vm0, %v2701_v8 }
 0x2cc   :  { %2322 = vmatmul.mubr.msk.f32.vlgmr.msra.gmra.mrb[4].mxu0 %vm50_vm1, %v476_v2  ;;  %2512 = vmatprep.subr.bf16.mxu1 %v2699_v0 }
 0x2cd   :  { %2505 = vmatpush3.bf16.msra.mxu0 %v2823_v20  ;;  %2343 = vmatprep.mubr.msk.f32.mxu0 %vm2700_vm0, %v2701_v8 }
 0x2ce   :  { %2506 = vmatprep.subr.bf16.mxu0 %v2699_v0 }
 0x2cf   :  { %2514 = vmatpush3.bf16.msra.mxu1 %v2841_v25 }
 0x2d0   :  { %2521 = vmatprep.subr.bf16.mxu1 %v2699_v0 }
 0x2d1   :  { %2508 = vmatpush3.bf16.msra.mxu0 %v2845_v26 }
 0x2d2   :  { %2515 = vmatprep.subr.bf16.mxu0 %v2699_v0 }
 0x39d   :  { %v658_v3 = vpop.f32.mrb[4].mxu1 }
 0x39e   :  { %v659_v4 = vadd.f32 %v2900_v55, %v658_v3  ;;  %v2334_v5 = vpop.f32.mrb[5].mxu1 }
 0x39f   :  { %v545_v6 = vpop.f32.mrb[4].mxu0 }
 0x3a0   :  { %v546_v7 = vadd.f32 %v2913_v61, %v545_v6  ;;  %674 = vrot.lane.b32.xlu0 %v659_v4, %s2702_s8  ;;  %v2323_v9 = vpop.f32.mrb[5].mxu0  ;;  %v666_v10 = vadd.f32 %v2877_v44, %v659_v4 }
 0x3a2   :  { %561 = vrot.lane.b32.xlu1 %v546_v7, %s2702_s8  ;;  %v553_v11 = vadd.f32 %v2883_v48, %v546_v7  ;;  %v667_v12 = vsub.f32 0.0, %v666_v10 }
 0x3a4   :  { %v554_v13 = vsub.f32 0.0, %v553_v11  ;;  %v668_v14 = vmul.f32 1.442695, %v667_v12 }
 0x3a6   :  { %v555_v15 = vmul.f32 1.442695, %v554_v13  ;;  %2610 = vpow2.f32 %v668_v14 }
 0x3a8   :  { %2612 = vpow2.f32 %v555_v15 }
 0x3b0   :  { %v2611_v16 = vpop.eup %2610 }
 0x3b1   :  { %v670_v21 = vadd.f32 1.0, %v2611_v16 }
 0x3b2   :  { %v2613_v17 = vpop.eup %2612 }
 0x3b3   :  { %v557_v22 = vadd.f32 1.0, %v2613_v17  ;;  %2614 = vrcp.f32 %v670_v21 }
 0x3b5   :  { %2616 = vrcp.f32 %v557_v22 }
 0x3bd   :  { %v2615_v24 = vpop.eup %2614 }
 0x3be   :  { %v684_v39 = vsub.f32 1.0, %v2615_v24  ;;  %v690_v42 = vmul.f32 %v2615_v24, %v2929_v47 }
 0x3bf   :  { %v2617_v30 = vpop.eup %2616 }
 0x3c0   :  { %v571_v62 = vsub.f32 1.0, %v2617_v30 }
 0x412   :  { %v675_v28 = vpop.permute.xlu0 %674 }
 0x413   :  { %v677_v29 = vmul.f32 %v2615_v24, %v675_v28 }
 0x414   :  { %v562_v31 = vpop.permute.xlu1 %561 }
 0x415   :  { %v564_v32 = vmul.f32 %v2617_v30, %v562_v31  ;;  %679 = vrot.lane.b32.xlu0 %v677_v29, %s2702_s8  ;;  %v2706_v29 = vmov 5  }
 0x417   :  { %566 = vrot.lane.b32.xlu1 %v564_v32, %s2702_s8 }
 0x419   :  { %693 = vperm.xlu0 %2590, %v2922_v18  }
 0x41d   :  { %2591 = vset.pattern.permute.xlu0 %v2706_v29 }
 0x487   :  { %v680_v33 = vpop.permute.xlu0 %679 }
 0x488   :  { %v682_v34 = vadd.f32 %v680_v33, %v2877_v44 }
 0x489   :  { %v567_v35 = vpop.permute.xlu1 %566 }
 0x48a   :  { %2618 = vtanh.f32 %v682_v34  ;;  %v569_v36 = vadd.f32 %v567_v35, %v2883_v48  ;;  %v577_v48 = vmul.f32 %v2617_v30, %v2931_v63 }
 0x48c   :  { %2620 = vtanh.f32 %v569_v36 }
 0x494   :  { %v2619_v37 = vpop.eup %2618 }
 0x495   :  { %686 = vrot.lane.b32.xlu1 %v2619_v37, %s2704_s14 }
 0x496   :  { %v2621_v38 = vpop.eup %2620 }
 0x498   :  { %v694_v43 = vpop.permute.xlu0 %693 }
 0x499   :  { %573 = vrot.lane.b32.xlu1 %v2621_v38, %s2704_s14 }
 0x507   :  { %v687_v40 = vpop.permute.xlu1 %686 }
 0x508   :  { %v689_v41 = vmul.f32 %v687_v40, %v684_v39 }
 0x50a   :  { %v691_v60 = vadd.f32 %v690_v42, %v689_v41 }
 0x50b   :  { %v574_v44 = vpop.permute.xlu1 %573 }
 0x50c   :  { %v2965_v1 = vmul.f32 %v694_v43, %v691_v60  ;;  %v576_v2 = vmul.f32 %v574_v44, %v571_v62 }
 0x50e   :  { %v2968_v3 = vadd.f32 %v577_v48, %v576_v2  ;;  %829 = vrot.lane.b32.xlu0 %v2965_v1, %s2704_s14 }
 0x510   :  { %716 = vrot.lane.b32.xlu1 %v2968_v3, %s2704_s14 }
 0x580   :  { %v830_v4 = vpop.permute.xlu0 %829 }
 0x581   :  { %2355 = vmatmul.mubr.msk.f32.vlgmr.msra.gmra.mrb[6].mxu1 %vm50_vm1, %v830_v4 }
 0x582   :  { %v717_v5 = vpop.permute.xlu1 %716  ;;  %2523 = vmatpush3.bf16.msra.mxu1 %v2820_v19  ;;  %2376 = vmatprep.mubr.msk.f32.mxu1 %vm2700_vm0, %v2701_v8 }
 0x583   :  { %2344 = vmatmul.mubr.msk.f32.vlgmr.msra.gmra.mrb[6].mxu0 %vm50_vm1, %v717_v5  ;;  %2524 = vmatprep.subr.bf16.mxu1 %v2699_v0 }
 0x584   :  { %2517 = vmatpush3.bf16.msra.mxu0 %v2823_v20  ;;  %2365 = vmatprep.mubr.msk.f32.mxu0 %vm2700_vm0, %v2701_v8 }
 0x585   :  { %2518 = vmatprep.subr.bf16.mxu0 %v2699_v0 }
 0x586   :  { %2526 = vmatpush3.bf16.msra.mxu1 %v2841_v25 }
 0x587   :  { %2533 = vmatprep.subr.bf16.mxu1 %v2699_v0 }
 0x588   :  { %2520 = vmatpush3.bf16.msra.mxu0 %v2845_v26 }
 0x589   :  { %2527 = vmatprep.subr.bf16.mxu0 %v2699_v0 }
 0x654   :  { %v899_v6 = vpop.f32.mrb[6].mxu1 }
 0x655   :  { %v900_v7 = vadd.f32 %v2900_v55, %v899_v6  ;;  %v2356_v9 = vpop.f32.mrb[7].mxu1 }
 0x656   :  { %v786_v10 = vpop.f32.mrb[6].mxu0 }
 0x657   :  { %v787_v11 = vadd.f32 %v2913_v61, %v786_v10  ;;  %915 = vrot.lane.b32.xlu0 %v900_v7, %s2702_s8  ;;  %v2345_v12 = vpop.f32.mrb[7].mxu0  ;;  %v907_v13 = vadd.f32 %v2879_v45, %v900_v7 }
 0x659   :  { %802 = vrot.lane.b32.xlu1 %v787_v11, %s2702_s8  ;;  %v794_v14 = vadd.f32 %v2885_v49, %v787_v11  ;;  %v908_v15 = vsub.f32 0.0, %v907_v13 }
 0x65b   :  { %v795_v16 = vsub.f32 0.0, %v794_v14  ;;  %v909_v17 = vmul.f32 1.442695, %v908_v15 }
 0x65d   :  { %v796_v21 = vmul.f32 1.442695, %v795_v16  ;;  %2622 = vpow2.f32 %v909_v17 }
 0x65f   :  { %2624 = vpow2.f32 %v796_v21 }
 0x667   :  { %v2623_v22 = vpop.eup %2622 }
 0x668   :  { %v911_v24 = vadd.f32 1.0, %v2623_v22 }
 0x669   :  { %v2625_v23 = vpop.eup %2624 }
 0x66a   :  { %v798_v28 = vadd.f32 1.0, %v2625_v23  ;;  %2626 = vrcp.f32 %v911_v24 }
 0x66c   :  { %2628 = vrcp.f32 %v798_v28 }
 0x674   :  { %v2627_v30 = vpop.eup %2626 }
 0x675   :  { %v925_v42 = vsub.f32 1.0, %v2627_v30  ;;  %v931_v62 = vmul.f32 %v2627_v30, %v2965_v1 }
 0x676   :  { %v2629_v33 = vpop.eup %2628 }
 0x677   :  { %v812_v2 = vsub.f32 1.0, %v2629_v33 }
 0x6c9   :  { %v916_v31 = vpop.permute.xlu0 %915 }
 0x6ca   :  { %v918_v32 = vmul.f32 %v2627_v30, %v916_v31 }
 0x6cb   :  { %v803_v34 = vpop.permute.xlu1 %802 }
 0x6cc   :  { %v805_v35 = vmul.f32 %v2629_v33, %v803_v34  ;;  %920 = vrot.lane.b32.xlu0 %v918_v32, %s2702_s8  ;;  %v2707_v32 = vmov 4  }
 0x6ce   :  { %807 = vrot.lane.b32.xlu1 %v805_v35, %s2702_s8 }
 0x6d0   :  { %934 = vperm.xlu0 %2591, %v2922_v18  }
 0x6d4   :  { %2592 = vset.pattern.permute.xlu0 %v2707_v32 }
 0x73e   :  { %v921_v36 = vpop.permute.xlu0 %920 }
 0x73f   :  { %v923_v37 = vadd.f32 %v921_v36, %v2879_v45 }
 0x740   :  { %v808_v38 = vpop.permute.xlu1 %807 }
 0x741   :  { %2630 = vtanh.f32 %v923_v37  ;;  %v810_v39 = vadd.f32 %v808_v38, %v2885_v49  ;;  %v818_v49 = vmul.f32 %v2629_v33, %v2968_v3 }
 0x743   :  { %2632 = vtanh.f32 %v810_v39 }
 0x74b   :  { %v2631_v40 = vpop.eup %2630 }
 0x74c   :  { %927 = vrot.lane.b32.xlu1 %v2631_v40, %s2704_s14 }
 0x74d   :  { %v2633_v41 = vpop.eup %2632 }
 0x74f   :  { %v935_v44 = vpop.permute.xlu0 %934 }
 0x750   :  { %814 = vrot.lane.b32.xlu1 %v2633_v41, %s2704_s14 }
 0x7be   :  { %v928_v43 = vpop.permute.xlu1 %927 }
 0x7bf   :  { %v930_v60 = vmul.f32 %v928_v43, %v925_v42 }
 0x7c1   :  { %v932_v48 = vadd.f32 %v931_v62, %v930_v60 }
 0x7c2   :  { %v815_v45 = vpop.permute.xlu1 %814 }
 0x7c3   :  { %v3002_v4 = vmul.f32 %v935_v44, %v932_v48  ;;  %v817_v5 = vmul.f32 %v815_v45, %v812_v2 }
 0x7c5   :  { %v3005_v6 = vadd.f32 %v818_v49, %v817_v5  ;;  %1070 = vrot.lane.b32.xlu0 %v3002_v4, %s2704_s14 }
 0x7c7   :  { %957 = vrot.lane.b32.xlu1 %v3005_v6, %s2704_s14 }
 0x837   :  { %v1071_v7 = vpop.permute.xlu0 %1070 }
 0x838   :  { %2377 = vmatmul.mubr.msk.f32.vlgmr.msra.gmra.mrb[8].mxu1 %vm50_vm1, %v1071_v7 }
 0x839   :  { %v958_v9 = vpop.permute.xlu1 %957  ;;  %2535 = vmatpush3.bf16.msra.mxu1 %v2820_v19  ;;  %2398 = vmatprep.mubr.msk.f32.mxu1 %vm2700_vm0, %v2701_v8 }
 0x83a   :  { %2366 = vmatmul.mubr.msk.f32.vlgmr.msra.gmra.mrb[8].mxu0 %vm50_vm1, %v958_v9  ;;  %2536 = vmatprep.subr.bf16.mxu1 %v2699_v0 }
 0x83b   :  { %2529 = vmatpush3.bf16.msra.mxu0 %v2823_v20  ;;  %2387 = vmatprep.mubr.msk.f32.mxu0 %vm2700_vm0, %v2701_v8 }
 0x83c   :  { %2530 = vmatprep.subr.bf16.mxu0 %v2699_v0 }
 0x83d   :  { %2538 = vmatpush3.bf16.msra.mxu1 %v2841_v25 }
 0x83e   :  { %2545 = vmatprep.subr.bf16.mxu1 %v2699_v0 }
 0x83f   :  { %2532 = vmatpush3.bf16.msra.mxu0 %v2845_v26 }
 0x840   :  { %2539 = vmatprep.subr.bf16.mxu0 %v2699_v0 }
 0x90b   :  { %v1140_v10 = vpop.f32.mrb[8].mxu1 }
 0x90c   :  { %v1141_v11 = vadd.f32 %v2900_v55, %v1140_v10  ;;  %v2378_v12 = vpop.f32.mrb[9].mxu1 }
 0x90d   :  { %v1027_v13 = vpop.f32.mrb[8].mxu0 }
 0x90e   :  { %v1028_v14 = vadd.f32 %v2913_v61, %v1027_v13  ;;  %1156 = vrot.lane.b32.xlu0 %v1141_v11, %s2702_s8  ;;  %v2367_v15 = vpop.f32.mrb[9].mxu0  ;;  %v1148_v16 = vadd.f32 %v2881_v46, %v1141_v11 }
 0x910   :  { %1043 = vrot.lane.b32.xlu1 %v1028_v14, %s2702_s8  ;;  %v1035_v17 = vadd.f32 %v2887_v50, %v1028_v14  ;;  %v1149_v21 = vsub.f32 0.0, %v1148_v16 }
 0x912   :  { %v1036_v22 = vsub.f32 0.0, %v1035_v17  ;;  %v1150_v23 = vmul.f32 1.442695, %v1149_v21 }
 0x914   :  { %v1037_v24 = vmul.f32 1.442695, %v1036_v22  ;;  %2634 = vpow2.f32 %v1150_v23 }
 0x916   :  { %2636 = vpow2.f32 %v1037_v24 }
 0x91e   :  { %v2635_v28 = vpop.eup %2634 }
 0x91f   :  { %v1152_v30 = vadd.f32 1.0, %v2635_v28 }
 0x920   :  { %v2637_v29 = vpop.eup %2636 }
 0x921   :  { %v1039_v31 = vadd.f32 1.0, %v2637_v29  ;;  %2638 = vrcp.f32 %v1152_v30 }
 0x923   :  { %2640 = vrcp.f32 %v1039_v31 }
 0x92b   :  { %v2639_v33 = vpop.eup %2638 }
 0x92c   :  { %v1166_v62 = vsub.f32 1.0, %v2639_v33  ;;  %v1172_v2 = vmul.f32 %v2639_v33, %v3002_v4 }
 0x92d   :  { %v2641_v36 = vpop.eup %2640 }
 0x92e   :  { %v1053_v5 = vsub.f32 1.0, %v2641_v36 }
 0x980   :  { %v1157_v34 = vpop.permute.xlu0 %1156 }
 0x981   :  { %v1159_v35 = vmul.f32 %v2639_v33, %v1157_v34 }
 0x982   :  { %v1044_v37 = vpop.permute.xlu1 %1043 }
 0x983   :  { %v1046_v38 = vmul.f32 %v2641_v36, %v1044_v37  ;;  %1161 = vrot.lane.b32.xlu0 %v1159_v35, %s2702_s8  ;;  %v2708_v35 = vmov 3  }
 0x985   :  { %1048 = vrot.lane.b32.xlu1 %v1046_v38, %s2702_s8 }
 0x987   :  { %1175 = vperm.xlu0 %2592, %v2922_v18  }
 0x98b   :  { %2593 = vset.pattern.permute.xlu0 %v2708_v35 }
 0x9f5   :  { %v1162_v39 = vpop.permute.xlu0 %1161 }
 0x9f6   :  { %v1164_v40 = vadd.f32 %v1162_v39, %v2881_v46 }
 0x9f7   :  { %v1049_v41 = vpop.permute.xlu1 %1048 }
 0x9f8   :  { %2642 = vtanh.f32 %v1164_v40  ;;  %v1051_v42 = vadd.f32 %v1049_v41, %v2887_v50  ;;  %v1059_v50 = vmul.f32 %v2641_v36, %v3005_v6 }
 0x9fa   :  { %2644 = vtanh.f32 %v1051_v42 }
 0xa02   :  { %v2643_v43 = vpop.eup %2642 }
 0xa03   :  { %1168 = vrot.lane.b32.xlu1 %v2643_v43, %s2704_s14 }
 0xa04   :  { %v2645_v60 = vpop.eup %2644 }
 0xa06   :  { %v1176_v45 = vpop.permute.xlu0 %1175 }
 0xa07   :  { %1055 = vrot.lane.b32.xlu1 %v2645_v60, %s2704_s14 }
 0xa75   :  { %v1169_v44 = vpop.permute.xlu1 %1168 }
 0xa76   :  { %v1171_v48 = vmul.f32 %v1169_v44, %v1166_v62 }
 0xa78   :  { %v1173_v49 = vadd.f32 %v1172_v2, %v1171_v48 }
 0xa79   :  { %v1056_v46 = vpop.permute.xlu1 %1055 }
 0xa7a   :  { %v3039_v7 = vmul.f32 %v1176_v45, %v1173_v49  ;;  %v1058_v9 = vmul.f32 %v1056_v46, %v1053_v5 }
 0xa7c   :  { %v3042_v10 = vadd.f32 %v1059_v50, %v1058_v9  ;;  %1311 = vrot.lane.b32.xlu0 %v3039_v7, %s2704_s14 }
 0xa7e   :  { %1198 = vrot.lane.b32.xlu1 %v3042_v10, %s2704_s14 }
 0xaee   :  { %v1312_v11 = vpop.permute.xlu0 %1311 }
 0xaef   :  { %2399 = vmatmul.mubr.msk.f32.vlgmr.msra.gmra.mrb[10].mxu1 %vm50_vm1, %v1312_v11 }
 0xaf0   :  { %v1199_v12 = vpop.permute.xlu1 %1198  ;;  %2547 = vmatpush3.bf16.msra.mxu1 %v2820_v19  ;;  %2420 = vmatprep.mubr.msk.f32.mxu1 %vm2700_vm0, %v2701_v8 }
 0xaf1   :  { %2388 = vmatmul.mubr.msk.f32.vlgmr.msra.gmra.mrb[10].mxu0 %vm50_vm1, %v1199_v12  ;;  %2548 = vmatprep.subr.bf16.mxu1 %v2699_v0 }
 0xaf2   :  { %2541 = vmatpush3.bf16.msra.mxu0 %v2823_v20  ;;  %2409 = vmatprep.mubr.msk.f32.mxu0 %vm2700_vm0, %v2701_v8 }
 0xaf3   :  { %2542 = vmatprep.subr.bf16.mxu0 %v2699_v0 }
 0xaf4   :  { %2550 = vmatpush3.bf16.msra.mxu1 %v2841_v25 }
 0xaf5   :  { %2557 = vmatprep.subr.bf16.mxu1 %v2699_v0 }
 0xaf6   :  { %2544 = vmatpush3.bf16.msra.mxu0 %v2845_v26 }
 0xaf7   :  { %2551 = vmatprep.subr.bf16.mxu0 %v2699_v0 }
 0xbc2   :  { %v1381_v13 = vpop.f32.mrb[10].mxu1 }
 0xbc3   :  { %v1382_v14 = vadd.f32 %v2900_v55, %v1381_v13  ;;  %v2400_v15 = vpop.f32.mrb[11].mxu1 }
 0xbc4   :  { %v1268_v16 = vpop.f32.mrb[10].mxu0 }
 0xbc5   :  { %v1269_v17 = vadd.f32 %v2913_v61, %v1268_v16  ;;  %1397 = vrot.lane.b32.xlu0 %v1382_v14, %s2702_s8  ;;  %v2389_v21 = vpop.f32.mrb[11].mxu0  ;;  %v1389_v22 = vadd.f32 %v2889_v51, %v1382_v14 }
 0xbc7   :  { %1284 = vrot.lane.b32.xlu1 %v1269_v17, %s2702_s8  ;;  %v1276_v23 = vadd.f32 %v2891_v52, %v1269_v17  ;;  %v1390_v24 = vsub.f32 0.0, %v1389_v22 }
 0xbc9   :  { %v1277_v28 = vsub.f32 0.0, %v1276_v23  ;;  %v1391_v29 = vmul.f32 1.442695, %v1390_v24 }
 0xbcb   :  { %v1278_v30 = vmul.f32 1.442695, %v1277_v28  ;;  %2646 = vpow2.f32 %v1391_v29 }
 0xbcd   :  { %2648 = vpow2.f32 %v1278_v30 }
 0xbd5   :  { %v2647_v31 = vpop.eup %2646 }
 0xbd6   :  { %v1393_v33 = vadd.f32 1.0, %v2647_v31 }
 0xbd7   :  { %v2649_v32 = vpop.eup %2648 }
 0xbd8   :  { %v1280_v34 = vadd.f32 1.0, %v2649_v32  ;;  %2650 = vrcp.f32 %v1393_v33 }
 0xbda   :  { %2652 = vrcp.f32 %v1280_v34 }
 0xbe2   :  { %v2651_v36 = vpop.eup %2650 }
 0xbe3   :  { %v1407_v2 = vsub.f32 1.0, %v2651_v36  ;;  %v1413_v5 = vmul.f32 %v2651_v36, %v3039_v7 }
 0xbe4   :  { %v2653_v39 = vpop.eup %2652 }
 0xbe5   :  { %v1294_v9 = vsub.f32 1.0, %v2653_v39 }
 0xc37   :  { %v1398_v37 = vpop.permute.xlu0 %1397 }
 0xc38   :  { %v1400_v38 = vmul.f32 %v2651_v36, %v1398_v37 }
 0xc39   :  { %v1285_v40 = vpop.permute.xlu1 %1284 }
 0xc3a   :  { %v1287_v41 = vmul.f32 %v2653_v39, %v1285_v40  ;;  %1402 = vrot.lane.b32.xlu0 %v1400_v38, %s2702_s8  ;;  %v2709_v38 = vmov 2  }
 0xc3c   :  { %1289 = vrot.lane.b32.xlu1 %v1287_v41, %s2702_s8 }
 0xc3e   :  { %1416 = vperm.xlu0 %2593, %v2922_v18  }
 0xc42   :  { %2594 = vset.pattern.permute.xlu0 %v2709_v38 }
 0xcac   :  { %v1403_v42 = vpop.permute.xlu0 %1402 }
 0xcad   :  { %v1405_v43 = vadd.f32 %v1403_v42, %v2889_v51 }
 0xcae   :  { %v1290_v60 = vpop.permute.xlu1 %1289 }
 0xcaf   :  { %2654 = vtanh.f32 %v1405_v43  ;;  %v1292_v62 = vadd.f32 %v1290_v60, %v2891_v52  ;;  %v1300_v52 = vmul.f32 %v2653_v39, %v3042_v10 }
 0xcb1   :  { %2656 = vtanh.f32 %v1292_v62 }
 0xcb9   :  { %v2655_v44 = vpop.eup %2654 }
 0xcba   :  { %1409 = vrot.lane.b32.xlu1 %v2655_v44, %s2704_s14 }
 0xcbb   :  { %v2657_v48 = vpop.eup %2656 }
 0xcbd   :  { %v1417_v46 = vpop.permute.xlu0 %1416 }
 0xcbe   :  { %1296 = vrot.lane.b32.xlu1 %v2657_v48, %s2704_s14 }
 0xd2c   :  { %v1410_v45 = vpop.permute.xlu1 %1409 }
 0xd2d   :  { %v1412_v49 = vmul.f32 %v1410_v45, %v1407_v2 }
 0xd2f   :  { %v1414_v50 = vadd.f32 %v1413_v5, %v1412_v49 }
 0xd30   :  { %v1297_v51 = vpop.permute.xlu1 %1296 }
 0xd31   :  { %v3076_v11 = vmul.f32 %v1417_v46, %v1414_v50  ;;  %v1299_v12 = vmul.f32 %v1297_v51, %v1294_v9 }
 0xd33   :  { %v3079_v13 = vadd.f32 %v1300_v52, %v1299_v12  ;;  %1546 = vrot.lane.b32.xlu0 %v3076_v11, %s2704_s14 }
 0xd35   :  { %1433 = vrot.lane.b32.xlu1 %v3079_v13, %s2704_s14 }
 0xda5   :  { %v1547_v14 = vpop.permute.xlu0 %1546 }
 0xda6   :  { %2421 = vmatmul.mubr.msk.f32.vlgmr.msra.gmra.mrb[12].mxu1 %vm50_vm1, %v1547_v14 }
 0xda7   :  { %v1434_v15 = vpop.permute.xlu1 %1433  ;;  %2559 = vmatpush3.bf16.msra.mxu1 %v2820_v19  ;;  %2442 = vmatprep.mubr.msk.f32.mxu1 %vm2700_vm0, %v2701_v8 }
 0xda8   :  { %2410 = vmatmul.mubr.msk.f32.vlgmr.msra.gmra.mrb[12].mxu0 %vm50_vm1, %v1434_v15  ;;  %2560 = vmatprep.subr.bf16.mxu1 %v2699_v0 }
 0xda9   :  { %2553 = vmatpush3.bf16.msra.mxu0 %v2823_v20  ;;  %2431 = vmatprep.mubr.msk.f32.mxu0 %vm2700_vm0, %v2701_v8 }
 0xdaa   :  { %2554 = vmatprep.subr.bf16.mxu0 %v2699_v0 }
 0xdab   :  { %2562 = vmatpush3.bf16.msra.mxu1 %v2841_v25 }
 0xdac   :  { %2569 = vmatprep.subr.bf16.mxu1 %v2699_v0 }
 0xdad   :  { %2556 = vmatpush3.bf16.msra.mxu0 %v2845_v26 }
 0xdae   :  { %2563 = vmatprep.subr.bf16.mxu0 %v2699_v0 }
 0xe79   :  { %v1616_v16 = vpop.f32.mrb[12].mxu1 }
 0xe7a   :  { %v1617_v17 = vadd.f32 %v2900_v55, %v1616_v16  ;;  %v2422_v21 = vpop.f32.mrb[13].mxu1 }
 0xe7b   :  { %v1503_v22 = vpop.f32.mrb[12].mxu0 }
 0xe7c   :  { %v1504_v23 = vadd.f32 %v2913_v61, %v1503_v22  ;;  %1632 = vrot.lane.b32.xlu0 %v1617_v17, %s2702_s8  ;;  %v2411_v24 = vpop.f32.mrb[13].mxu0  ;;  %v1624_v28 = vadd.f32 %v2893_v53, %v1617_v17 }
 0xe7e   :  { %1519 = vrot.lane.b32.xlu1 %v1504_v23, %s2702_s8  ;;  %v1511_v29 = vadd.f32 %v2895_v54, %v1504_v23  ;;  %v1625_v30 = vsub.f32 0.0, %v1624_v28 }
 0xe80   :  { %v1512_v31 = vsub.f32 0.0, %v1511_v29  ;;  %v1626_v32 = vmul.f32 1.442695, %v1625_v30 }
 0xe82   :  { %v1513_v33 = vmul.f32 1.442695, %v1512_v31  ;;  %2658 = vpow2.f32 %v1626_v32 }
 0xe84   :  { %2660 = vpow2.f32 %v1513_v33 }
 0xe8c   :  { %v2659_v34 = vpop.eup %2658 }
 0xe8d   :  { %v1628_v36 = vadd.f32 1.0, %v2659_v34 }
 0xe8e   :  { %v2661_v35 = vpop.eup %2660 }
 0xe8f   :  { %v1515_v37 = vadd.f32 1.0, %v2661_v35  ;;  %2662 = vrcp.f32 %v1628_v36  ;;  %v2710_v35 = vmov 1  }
 0xe91   :  { %2664 = vrcp.f32 %v1515_v37 }
 0xe99   :  { %v2663_v39 = vpop.eup %2662 }
 0xe9a   :  { %v1642_v5 = vsub.f32 1.0, %v2663_v39  ;;  %v1648_v9 = vmul.f32 %v2663_v39, %v3076_v11 }
 0xe9b   :  { %v2665_v42 = vpop.eup %2664 }
 0xe9c   :  { %v1529_v12 = vsub.f32 1.0, %v2665_v42 }
 0xeee   :  { %v1633_v40 = vpop.permute.xlu0 %1632 }
 0xeef   :  { %v1635_v41 = vmul.f32 %v2663_v39, %v1633_v40 }
 0xef0   :  { %v1520_v43 = vpop.permute.xlu1 %1519 }
 0xef1   :  { %v1522_v60 = vmul.f32 %v2665_v42, %v1520_v43  ;;  %1637 = vrot.lane.b32.xlu0 %v1635_v41, %s2702_s8 }
 0xef3   :  { %1524 = vrot.lane.b32.xlu1 %v1522_v60, %s2702_s8 }
 0xef5   :  { %1651 = vperm.xlu0 %2594, %v2922_v18  }
 0xef9   :  { %2595 = vset.pattern.permute.xlu0 %v2710_v35 }
 0xf63   :  { %v1638_v62 = vpop.permute.xlu0 %1637 }
 0xf64   :  { %v1640_v44 = vadd.f32 %v1638_v62, %v2893_v53 }
 0xf65   :  { %v1525_v48 = vpop.permute.xlu1 %1524 }
 0xf66   :  { %2666 = vtanh.f32 %v1640_v44  ;;  %v1527_v2 = vadd.f32 %v1525_v48, %v2895_v54  ;;  %v1535_v54 = vmul.f32 %v2665_v42, %v3079_v13 }
 0xf68   :  { %2668 = vtanh.f32 %v1527_v2 }
 0xf70   :  { %v2667_v45 = vpop.eup %2666 }
 0xf71   :  { %1644 = vrot.lane.b32.xlu1 %v2667_v45, %s2704_s14 }
 0xf72   :  { %v2669_v49 = vpop.eup %2668 }
 0xf74   :  { %v1652_v51 = vpop.permute.xlu0 %1651 }
 0xf75   :  { %1531 = vrot.lane.b32.xlu1 %v2669_v49, %s2704_s14 }
 0xfe3   :  { %v1645_v46 = vpop.permute.xlu1 %1644 }
 0xfe4   :  { %v1647_v50 = vmul.f32 %v1645_v46, %v1642_v5 }
 0xfe6   :  { %v1649_v52 = vadd.f32 %v1648_v9, %v1647_v50 }
 0xfe7   :  { %v1532_v53 = vpop.permute.xlu1 %1531 }
 0xfe8   :  { %v3113_v14 = vmul.f32 %v1652_v51, %v1649_v52  ;;  %v1534_v15 = vmul.f32 %v1532_v53, %v1529_v12 }
 0xfea   :  { %v3116_v16 = vadd.f32 %v1535_v54, %v1534_v15  ;;  %1781 = vrot.lane.b32.xlu0 %v3113_v14, %s2704_s14 }
 0xfec   :  { %1668 = vrot.lane.b32.xlu1 %v3116_v16, %s2704_s14 }
0x105c   :  { %v1782_v17 = vpop.permute.xlu0 %1781 }
0x105d   :  { %2443 = vmatmul.mubr.msk.f32.vlgmr.msra.gmra.mrb[14].mxu1 %vm50_vm1, %v1782_v17 }
0x105e   :  { %v1669_v21 = vpop.permute.xlu1 %1668  ;;  %2571 = vmatpush3.bf16.msra.mxu1 %v2820_v19  ;;  %2464 = vmatprep.mubr.msk.f32.mxu1 %vm2700_vm0, %v2701_v8 }
0x105f   :  { %2432 = vmatmul.mubr.msk.f32.vlgmr.msra.gmra.mrb[14].mxu0 %vm50_vm1, %v1669_v21  ;;  %2572 = vmatprep.subr.bf16.mxu1 %v2699_v0 }
0x1060   :  { %2565 = vmatpush3.bf16.msra.mxu0 %v2823_v20  ;;  %2453 = vmatprep.mubr.msk.f32.mxu0 %vm2700_vm0, %v2701_v8 }
0x1061   :  { %2566 = vmatprep.subr.bf16.mxu0 %v2699_v0 }
0x1062   :  { %2574 = vmatpush3.bf16.msra.mxu1 %v2841_v25 }
0x1064   :  { %2568 = vmatpush3.bf16.msra.mxu0 %v2845_v26 }
0x1130   :  { %v1851_v22 = vpop.f32.mrb[14].mxu1 }
0x1131   :  { %v1852_v19 = vadd.f32 %v2900_v55, %v1851_v22  ;;  %v2444_v23 = vpop.f32.mrb[15].mxu1 }
0x1132   :  { %v1738_v24 = vpop.f32.mrb[14].mxu0  ;;  %v2164_v23 = vld [vmem:[%s3308_s9] ss:$0 sm:$0xff] }
0x1133   :  { %v1739_v28 = vadd.f32 %v2913_v61, %v1738_v24  ;;  %1867 = vrot.lane.b32.xlu0 %v1852_v19, %s2702_s8  ;;  %v2433_v29 = vpop.f32.mrb[15].mxu0  ;;  %v1859_v8 = vadd.f32 %v2902_v56, %v1852_v19 }
0x1135   :  { %1754 = vrot.lane.b32.xlu1 %v1739_v28, %s2702_s8  ;;  %v1746_v0 = vadd.f32 %v2904_v57, %v1739_v28  ;;  %v1860_v20 = vsub.f32 0.0, %v1859_v8 }
0x1137   :  { %v1747_v25 = vsub.f32 0.0, %v1746_v0  ;;  %v1861_v30 = vmul.f32 1.442695, %v1860_v20 }
0x1139   :  { %v1748_v26 = vmul.f32 1.442695, %v1747_v25  ;;  %2670 = vpow2.f32 %v1861_v30 }
0x113b   :  { %2672 = vpow2.f32 %v1748_v26 }
0x1143   :  { %v2671_v31 = vpop.eup %2670 }
0x1144   :  { %v1863_v33 = vadd.f32 1.0, %v2671_v31 }
0x1145   :  { %v2673_v32 = vpop.eup %2672 }
0x1146   :  { %v1750_v34 = vadd.f32 1.0, %v2673_v32  ;;  %2674 = vrcp.f32 %v1863_v33 }
0x1148   :  { %2676 = vrcp.f32 %v1750_v34 }
0x1150   :  { %v2675_v36 = vpop.eup %2674 }
0x1151   :  { %v1877_v2 = vsub.f32 1.0, %v2675_v36  ;;  %v1883_v5 = vmul.f32 %v2675_v36, %v3113_v14 }
0x1152   :  { %v2677_v39 = vpop.eup %2676 }
0x1153   :  { %v1764_v50 = vsub.f32 1.0, %v2677_v39 }
0x11a5   :  { %v1868_v37 = vpop.permute.xlu0 %1867 }
0x11a6   :  { %v1870_v38 = vmul.f32 %v2675_v36, %v1868_v37 }
0x11a7   :  { %v1755_v40 = vpop.permute.xlu1 %1754 }
0x11a8   :  { %v1757_v41 = vmul.f32 %v2677_v39, %v1755_v40  ;;  %1872 = vrot.lane.b32.xlu0 %v1870_v38, %s2702_s8 }
0x11aa   :  { %1759 = vrot.lane.b32.xlu1 %v1757_v41, %s2702_s8 }
0x11ac   :  { %1886 = vperm.xlu0 %2595, %v2922_v18  }
0x121a   :  { %v1873_v42 = vpop.permute.xlu0 %1872 }
0x121b   :  { %v1875_v43 = vadd.f32 %v1873_v42, %v2902_v56 }
0x121c   :  { %v1760_v60 = vpop.permute.xlu1 %1759 }
0x121d   :  { %2678 = vtanh.f32 %v1875_v43  ;;  %v1762_v62 = vadd.f32 %v1760_v60, %v2904_v57  ;;  %v1770_v57 = vmul.f32 %v2677_v39, %v3116_v16  ;;  %v2712_v39 = vmov 0  }
0x121e   :  { %2596 = vset.pattern.permute.xlu1 %v2712_v39  ;;  %2597 = vset.pattern.permute.xlu0 %v2712_v39 }
0x121f   :  { %2680 = vtanh.f32 %v1762_v62 }
0x1227   :  { %v2679_v44 = vpop.eup %2678 }
0x1228   :  { %1879 = vrot.lane.b32.xlu1 %v2679_v44, %s2704_s14 }
0x1229   :  { %v2681_v48 = vpop.eup %2680 }
0x122b   :  { %v1887_v18 = vpop.permute.xlu0 %1886 }
0x122c   :  { %1766 = vrot.lane.b32.xlu1 %v2681_v48, %s2704_s14  ;;  %v3193_v48 = vld [vmem:[%s3307_s10] sm:$0xff] }
0x122d   :  { %vm2138_vm10 = vcmp.gt.f32.partialorder %v3193_v48, 0.5 }
0x129a   :  { %v1880_v45 = vpop.permute.xlu1 %1879 }
0x129b   :  { %v1882_v49 = vmul.f32 %v1880_v45, %v1877_v2 }
0x129d   :  { %v1884_v46 = vadd.f32 %v1883_v5, %v1882_v49 }
0x129e   :  { %v1767_v56 = vpop.permute.xlu1 %1766 }
0x129f   :  { %v3148_v9 = vmul.f32 %v1887_v18, %v1884_v46  ;;  %v1769_v51 = vmul.f32 %v1767_v56, %v1764_v50 }
0x12a1   :  { %v3151_v52 = vadd.f32 %v1770_v57, %v1769_v51  ;;  %2016 = vrot.lane.b32.xlu1 %v3148_v9, %s2704_s14 }
0x12a3   :  { %1903 = vrot.lane.b32.xlu0 %v3151_v52, %s2704_s14 }
0x1313   :  { %v2017_v12 = vpop.permute.xlu1 %2016 }
0x1314   :  { %2465 = vmatmul.mubr.msk.f32.vlgmr.msra.gmra.mrb[16].mxu1 %vm50_vm1, %v2017_v12 }
0x1315   :  { %v1904_v53 = vpop.permute.xlu0 %1903 }
0x1316   :  { %2454 = vmatmul.mubr.msk.f32.vlgmr.msra.gmra.mrb[16].mxu0 %vm50_vm1, %v1904_v53 }
0x13e7   :  { %v2086_v54 = vpop.f32.mrb[16].mxu1 }
0x13e8   :  { %v2087_v15 = vadd.f32 %v2900_v55, %v2086_v54  ;;  %v2466_v17 = vpop.f32.mrb[17].mxu1 }
0x13e9   :  { %v1973_v21 = vpop.f32.mrb[16].mxu0 }
0x13ea   :  { %v1974_v22 = vadd.f32 %v2913_v61, %v1973_v21  ;;  %2102 = vrot.lane.b32.xlu1 %v2087_v15, %s2702_s8  ;;  %v2455_v19 = vpop.f32.mrb[17].mxu0  ;;  %v2094_v24 = vadd.f32 %v2906_v58, %v2087_v15 }
0x13ec   :  { %1989 = vrot.lane.b32.xlu0 %v1974_v22, %s2702_s8  ;;  %v1981_v28 = vadd.f32 %v2908_v59, %v1974_v22  ;;  %v2095_v55 = vsub.f32 0.0, %v2094_v24 }
0x13ee   :  { %v1982_v29 = vsub.f32 0.0, %v1981_v28  ;;  %v2096_v8 = vmul.f32 1.442695, %v2095_v55 }
0x13f0   :  { %339 = vrot.lane.b32.xlu0 %v2164_v23, %s2711_s17  ;;  %v1983_v0 = vmul.f32 1.442695, %v1982_v29  ;;  %2682 = vpow2.f32 %v2096_v8 }
0x13f2   :  { %2684 = vpow2.f32 %v1983_v0 }
0x13fa   :  { %v2683_v61 = vpop.eup %2682 }
0x13fb   :  { %v2098_v25 = vadd.f32 1.0, %v2683_v61 }
0x13fc   :  { %v2685_v20 = vpop.eup %2684 }
0x13fd   :  { %v1985_v30 = vadd.f32 1.0, %v2685_v20  ;;  %2686 = vrcp.f32 %v2098_v25 }
0x13ff   :  { %2688 = vrcp.f32 %v1985_v30 }
0x1407   :  { %v3168_v26 = vpop.eup %2686 }
0x1408   :  { %v2112_v17 = vsub.f32 1.0, %v3168_v26 }
0x1409   :  { %v3171_v33 = vpop.eup %2688 }
0x145c   :  { %v2103_v31 = vpop.permute.xlu1 %2102 }
0x145d   :  { %v2105_v32 = vmul.f32 %v3168_v26, %v2103_v31 }
0x145e   :  { %v1990_v34 = vpop.permute.xlu0 %1989 }
0x145f   :  { %v1992_v35 = vmul.f32 %v3171_v33, %v1990_v34  ;;  %2107 = vrot.lane.b32.xlu1 %v2105_v32, %s2702_s8 }
0x1461   :  { %1994 = vrot.lane.b32.xlu0 %v1992_v35, %s2702_s8 }
0x1462   :  { %v3176_v36 = vpop.permute.xlu0 %339 }
0x1463   :  { %v342_v37 = vmul.f32 %v3176_v36, %v2931_v63  ;;  %v456_v38 = vmul.f32 %v2929_v47, %v3176_v36  ;;  %v579_v47 = vmul.f32 %v2968_v3, %v3176_v36  ;;  %v697_v2 = vmul.f32 %v2965_v1, %v3176_v36 }
0x1464   :  { %v3203_v3 = vand.u32 127, %v234_v27  ;;  %v820_v57 = vmul.f32 %v3005_v6, %v3176_v36  ;;  %v1061_v12 = vmul.f32 %v3042_v10, %v3176_v36  ;;  %v1179_v53 = vmul.f32 %v3039_v7, %v3176_v36 }
0x1465   :  { %344 = vrot.lane.b32.xlu1 %v342_v37, %s2704_s14  ;;  %v938_v15 = vmul.f32 %v3002_v4, %v3176_v36  ;;  %v1420_v21 = vmul.f32 %v3076_v11, %v3176_v36  ;;  %v1302_v10 = vmul.f32 %v3079_v13, %v3176_v36  ;;  %v2118_v7 = vmul.f32 %v3168_v26, %v3148_v9 }
0x1466   :  { %vm464_vm2 = vcmp.eq.s32.totalorder %v3203_v3, 0  ;;  %vm469_vm3 = vcmp.eq.s32.totalorder %v3203_v3, 7  ;;  %v1999_v4 = vsub.f32 1.0, %v3171_v33  ;;  %v1655_v19 = vmul.f32 %v3113_v14, %v3176_v36 }
0x1467   :  { %v1537_v11 = vmul.f32 %v3116_v16, %v3176_v36  ;;  %v2005_v13 = vmul.f32 %v3171_v33, %v3151_v52  ;;  %v1890_v55 = vmul.f32 %v3148_v9, %v3176_v36  ;;  %v1772_v14 = vmul.f32 %v3151_v52, %v3176_v36 }
0x1468   :  { %vm705_vm4 = vcmp.eq.s32.totalorder %v3203_v3, 1  ;;  %vm710_vm5 = vcmp.eq.s32.totalorder %v3203_v3, 6  ;;  %vm946_vm6 = vcmp.eq.s32.totalorder %v3203_v3, 2  ;;  %vm951_vm7 = vcmp.eq.s32.totalorder %v3203_v3, 5 }
0x1469   :  { %458 = vrot.lane.b32.xlu1 %v456_v38, %s2704_s14  ;;  %vm1187_vm8 = vcmp.eq.s32.totalorder %v3203_v3, 3  ;;  %vm1192_vm9 = vcmp.eq.s32.totalorder %v3203_v3, 4 }
0x14d1   :  { %v2108_v40 = vpop.permute.xlu1 %2107 }
0x14d2   :  { %v2110_v44 = vadd.f32 %v2108_v40, %v2906_v58 }
0x14d3   :  { %v1995_v63 = vpop.permute.xlu0 %1994 }
0x14d4   :  { %v1997_v62 = vadd.f32 %v1995_v63, %v2908_v59 }
0x14d6   :  { %2690 = vtanh.f32 %v1997_v62 }
0x14d7   :  { %v345_v41 = vpop.permute.xlu1 %344  ;;  %2692 = vtanh.f32 %v2110_v44 }
0x14d8   :  { %v347_v42 = vsel %vm50_vm1, %v345_v41, 0.0 }
0x14d9   :  { %348 = vadd.xlane.f32.xlu0 %v347_v42 }
0x14db   :  { %v459_v43 = vpop.permute.xlu1 %458 }
0x14dc   :  { %v461_v60 = vsel %vm50_vm1, %v459_v43, 0.0 }
0x14dd   :  { %462 = vadd.xlane.f32.xlu1 %v461_v60 }
0x14e0   :  { %v2691_v58 = vpop.eup %2690 }
0x14e1   :  { %v2693_v59 = vpop.eup %2692 }
0x14ee   :  { %2121 = vperm.xlu1 %2596, %v3193_v48  }
0x14ef   :  { %581 = vrot.lane.b32.xlu0 %v579_v47, %s2704_s14 }
0x14f3   :  { %699 = vrot.lane.b32.xlu0 %v697_v2, %s2704_s14 }
0x14f7   :  { %2001 = vrot.lane.b32.xlu0 %v2691_v58, %s2704_s14 }
0x14fb   :  { %2114 = vrot.lane.b32.xlu0 %v2693_v59, %s2704_s14 }
0x1566   :  { %v349_v45 = vpop.xlane.xlu0 %348 }
0x1567   :  { %v467_v1 = vsel %vm464_vm2, %v349_v45, 0.0 }
0x156a   :  { %v463_v49 = vpop.xlane.xlu1 %462  ;;  %v582_v5 = vpop.permute.xlu0 %581 }
0x156b   :  { %v472_v18 = vsel %vm469_vm3, %v463_v49, 0.0  ;;  %v584_v46 = vsel %vm50_vm1, %v582_v5, 0.0 }
0x156c   :  { %v473_v50 = vadd.f32 %v472_v18, %v467_v1  ;;  %585 = vadd.xlane.f32.xlu1 %v584_v46 }
0x156e   :  { %v700_v56 = vpop.permute.xlu0 %699  ;;  %v2122_v24 = vpop.permute.xlu1 %2121 }
0x156f   :  { %v702_v27 = vsel %vm50_vm1, %v700_v56, 0.0 }
0x1570   :  { %703 = vadd.xlane.f32.xlu0 %v702_v27 }
0x1572   :  { %v2002_v51 = vpop.permute.xlu0 %2001 }
0x1573   :  { %v2004_v23 = vmul.f32 %v2002_v51, %v1999_v4 }
0x1575   :  { %v2006_v29 = vadd.f32 %v2005_v13, %v2004_v23 }
0x1576   :  { %v2115_v54 = vpop.permute.xlu0 %2114 }
0x1577   :  { %v2117_v6 = vmul.f32 %v2115_v54, %v2112_v17  ;;  %v2007_v8 = vmul.f32 %v2006_v29, %v3176_v36 }
0x1579   :  { %v2119_v22 = vadd.f32 %v2118_v7, %v2117_v6 }
0x157b   :  { %v2124_v28 = vmul.f32 %v2122_v24, %v2119_v22 }
0x157d   :  { %822 = vrot.lane.b32.xlu1 %v820_v57, %s2704_s14  ;;  %v2125_v16 = vmul.f32 %v2124_v28, %v3176_v36 }
0x1581   :  { %1063 = vrot.lane.b32.xlu1 %v1061_v12, %s2704_s14 }
0x1585   :  { %1181 = vrot.lane.b32.xlu1 %v1179_v53, %s2704_s14 }
0x1586   :  { %940 = vrot.lane.b32.xlu0 %v938_v15, %s2704_s14 }
0x1589   :  { %1422 = vrot.lane.b32.xlu1 %v1420_v21, %s2704_s14 }
0x158a   :  { %1304 = vrot.lane.b32.xlu0 %v1302_v10, %s2704_s14 }
0x158d   :  { %1657 = vrot.lane.b32.xlu1 %v1655_v19, %s2704_s14 }
0x158e   :  { %1539 = vrot.lane.b32.xlu0 %v1537_v11, %s2704_s14 }
0x1591   :  { %1892 = vrot.lane.b32.xlu1 %v1890_v55, %s2704_s14 }
0x1592   :  { %1774 = vrot.lane.b32.xlu0 %v1772_v14, %s2704_s14 }
0x1595   :  { %2127 = vrot.lane.b32.xlu1 %v2125_v16, %s2704_s14 }
0x1596   :  { %2009 = vrot.lane.b32.xlu0 %v2007_v8, %s2704_s14 }
0x15f9   :  { %v586_v0 = vpop.xlane.xlu1 %585 }
0x15fa   :  { %v708_v9 = vsel %vm705_vm4, %v586_v0, 0.0 }
0x15fb   :  { %v709_v61 = vadd.f32 %v708_v9, %v473_v50 }
0x15fd   :  { %v823_v52 = vpop.permute.xlu1 %822  ;;  %v704_v20 = vpop.xlane.xlu0 %703 }
0x15fe   :  { %v713_v25 = vsel %vm710_vm5, %v704_v20, 0.0  ;;  %v825_v30 = vsel %vm50_vm1, %v823_v52, 0.0 }
0x15ff   :  { %v714_v26 = vadd.f32 %v713_v25, %v709_v61  ;;  %826 = vadd.xlane.f32.xlu0 %v825_v30 }
0x1601   :  { %v1064_v31 = vpop.permute.xlu1 %1063  ;;  %v941_v32 = vpop.permute.xlu0 %940 }
0x1602   :  { %v943_v33 = vsel %vm50_vm1, %v941_v32, 0.0  ;;  %v1066_v34 = vsel %vm50_vm1, %v1064_v31, 0.0 }
0x1603   :  { %1067 = vadd.xlane.f32.xlu0 %v1066_v34  ;;  %944 = vadd.xlane.f32.xlu1 %v943_v33 }
0x1605   :  { %v1182_v35 = vpop.permute.xlu1 %1181  ;;  %v1305_v36 = vpop.permute.xlu0 %1304 }
0x1606   :  { %v1307_v37 = vsel %vm50_vm1, %v1305_v36, 0.0  ;;  %v1184_v38 = vsel %vm50_vm1, %v1182_v35, 0.0 }
0x1607   :  { %1185 = vadd.xlane.f32.xlu0 %v1184_v38  ;;  %1308 = vadd.xlane.f32.xlu1 %v1307_v37 }
0x1609   :  { %v1423_v39 = vpop.permute.xlu1 %1422  ;;  %v1540_v40 = vpop.permute.xlu0 %1539 }
0x160a   :  { %v1542_v41 = vsel %vm50_vm1, %v1540_v40, 0.0  ;;  %v1425_v42 = vsel %vm50_vm1, %v1423_v39, 0.0 }
0x160b   :  { %1426 = vadd.xlane.f32.xlu0 %v1425_v42  ;;  %1543 = vadd.xlane.f32.xlu1 %v1542_v41 }
0x160d   :  { %v1658_v43 = vpop.permute.xlu1 %1657  ;;  %v1775_v60 = vpop.permute.xlu0 %1774 }
0x160e   :  { %v1777_v63 = vsel %vm50_vm1, %v1775_v60, 0.0  ;;  %v1660_v62 = vsel %vm50_vm1, %v1658_v43, 0.0 }
0x160f   :  { %1661 = vadd.xlane.f32.xlu0 %v1660_v62  ;;  %1778 = vadd.xlane.f32.xlu1 %v1777_v63 }
0x1611   :  { %v1893_v44 = vpop.permute.xlu1 %1892  ;;  %v2010_v47 = vpop.permute.xlu0 %2009 }
0x1612   :  { %v2012_v2 = vsel %vm50_vm1, %v2010_v47, 0.0  ;;  %v1895_v58 = vsel %vm50_vm1, %v1893_v44, 0.0 }
0x1613   :  { %1896 = vadd.xlane.f32.xlu0 %v1895_v58  ;;  %2013 = vadd.xlane.f32.xlu1 %v2012_v2 }
0x1615   :  { %v2128_v59 = vpop.permute.xlu1 %2127 }
0x1616   :  { %v2130_v45 = vsel %vm50_vm1, %v2128_v59, 0.0 }
0x1617   :  { %2131 = vadd.xlane.f32.xlu0 %v2130_v45 }
0x168c   :  { %v827_v49 = vpop.xlane.xlu0 %826 }
0x168d   :  { %v949_v5 = vsel %vm946_vm6, %v827_v49, 0.0 }
0x168e   :  { %v950_v1 = vadd.f32 %v949_v5, %v714_v26 }
0x1690   :  { %v945_v18 = vpop.xlane.xlu1 %944  ;;  %v1068_v46 = vpop.xlane.xlu0 %1067 }
0x1691   :  { %v954_v50 = vsel %vm951_vm7, %v945_v18, 0.0  ;;  %v1190_v27 = vsel %vm1187_vm8, %v1068_v46, 0.0 }
0x1692   :  { %v955_v56 = vadd.f32 %v954_v50, %v950_v1 }
0x1694   :  { %v1191_v57 = vadd.f32 %v1190_v27, %v955_v56  ;;  %v1309_v51 = vpop.xlane.xlu1 %1308  ;;  %v1186_v12 = vpop.xlane.xlu0 %1185 }
0x1695   :  { %v1195_v53 = vsel %vm1192_vm9, %v1186_v12, 0.0  ;;  %v1428_v15 = vsel %vm1192_vm9, %v1309_v51, 0.0 }
0x1696   :  { %v1196_v54 = vadd.f32 %v1195_v53, %v1191_v57 }
0x1698   :  { %v1544_v17 = vpop.xlane.xlu1 %1543  ;;  %v1429_v6 = vadd.f32 %v1428_v15, %v1196_v54  ;;  %v1427_v21 = vpop.xlane.xlu0 %1426 }
0x1699   :  { %v1430_v10 = vsel %vm1187_vm8, %v1427_v21, 0.0  ;;  %v1663_v4 = vsel %vm951_vm7, %v1544_v17, 0.0 }
0x169a   :  { %v1431_v7 = vadd.f32 %v1430_v10, %v1429_v6 }
0x169c   :  { %v1779_v22 = vpop.xlane.xlu1 %1778  ;;  %v1664_v19 = vadd.f32 %v1663_v4, %v1431_v7  ;;  %v1662_v23 = vpop.xlane.xlu0 %1661 }
0x169d   :  { %v1665_v24 = vsel %vm946_vm6, %v1662_v23, 0.0  ;;  %v1898_v13 = vsel %vm710_vm5, %v1779_v22, 0.0 }
0x169e   :  { %v1666_v11 = vadd.f32 %v1665_v24, %v1664_v19 }
0x16a0   :  { %v2014_v28 = vpop.xlane.xlu1 %2013  ;;  %v1899_v55 = vadd.f32 %v1898_v13, %v1666_v11  ;;  %v1897_v29 = vpop.xlane.xlu0 %1896 }
0x16a1   :  { %v1900_v14 = vsel %vm705_vm4, %v1897_v29, 0.0  ;;  %v2133_v8 = vsel %vm469_vm3, %v2014_v28, 0.0 }
0x16a2   :  { %v1901_v16 = vadd.f32 %v1900_v14, %v1899_v55 }
0x16a4   :  { %v2134_v0 = vadd.f32 %v2133_v8, %v1901_v16  ;;  %v2132_v9 = vpop.xlane.xlu0 %2131 }
0x16a5   :  { %v2135_v61 = vsel %vm464_vm2, %v2132_v9, 0.0 }
0x16a6   :  { %v2136_v52 = vadd.f32 %v2135_v61, %v2134_v0 }
0x16a8   :  { %v2137_v20 = vmul.f32 0.5, %v2136_v52 }
0x16aa   :  { %v2139_v25 = vsel %vm2138_vm10, %v2137_v20, -10000.0 }
0x16ab   :  { %v2140_v30 = vmul.f32 10.0, %v2139_v25 }
0x16ad   :  { %v2142_v26 = vsel %vm2141_vm11, %v2140_v30, -inf }
0x16ae   :  { %2143 = vmax.xlane.f32.xlu1 %v2142_v26 }
0x173b   :  { %v2144_v31 = vpop.xlane.xlu1 %2143 }
0x173c   :  { %v2145_v32 = vsub.f32 %v2140_v30, %v2144_v31 }
0x173e   :  { %v2146_v33 = vmul.f32 1.442695, %v2145_v32 }
0x1740   :  { %2694 = vpow2.f32 %v2146_v33 }
0x174a   :  { %v2695_v34 = vpop.eup %2694 }
0x174b   :  { %v2148_v35 = vsel %vm2141_vm11, %v2695_v34, 0.0 }
0x174c   :  { %2149 = vadd.xlane.f32.xlu0 %v2148_v35 }
0x17d9   :  { %v2150_v3 = vpop.xlane.xlu0 %2149 }
0x17da   :  { %2696 = vrcp.f32 %v2150_v3 }
0x17e4   :  { %v2697_v36 = vpop.eup %2696 }
0x17e5   :  { %v2152_v37 = vmul.f32 %v2697_v36, %v2695_v34 }
0x17e7   :  { %2153 = vst.msk [vmem:[%s3309_s11] sm:$0xff] %vm2141_vm11, %v2152_v37 }

</bundles_post_ra>
